<compile_context>
chip_gen: v5e
topology: v5e:2x2
jax: 0.10.0
libtpu: 0.0.40
codegen_flags: <defaults>
</compile_context>

<pallas_src>
import jax
import jax.numpy as jnp
from jax import lax
from jax.experimental import pallas as pl
from jax.experimental.pallas import tpu as pltpu


_TAPS = tuple((kh, kw) for kh in range(3) for kw in range(3))


# ----------------------------- Pallas kernel ------------------------------ #
def _cr_fused_kernel(x_ref, w1_ref, b1_ref, w2_ref, b2_ref, o_ref, mid_ref):
    """One (batch, row-tile) grid step of the fused (conv3x3+BN+ReLU) x2 block.

    x_ref  : (1, H+4, W+2, Cin) bf16  whole padded image (2-row / 1-col halo),
                                      resident across the row-tile axis
    w1_ref : (9, Cin,  Cmid)    bf16  conv1 weights (BN1 scale folded), per tap
    b1_ref : (1, Cmid)          f32   folded BN1 bias
    w2_ref : (9, Cmid, CoutP)   bf16  conv2 weights (BN2 scale folded), per tap
    b2_ref : (1, CoutP)         f32   folded BN2 bias
    o_ref  : (1, th, W, CoutP)  bf16  output row tile
    mid_ref: (th+2, W+2, Cmid)  bf16  scratch: layer-1 activation + 1-px halo
    """
    r = pl.program_id(1)
    last_r = pl.num_programs(1) - 1

    th2, wp2, cmid = mid_ref.shape          # th + 2, W + 2, Cmid
    th, w = th2 - 2, wp2 - 2
    cin = x_ref.shape[3]
    coutp = o_ref.shape[3]

    # First padded-input row of this tile's slab (2-row halo already in x).
    r0 = pl.multiple_of(r * th, th)

    # ---------------- layer 1: conv3x3 (+folded BN) + ReLU ---------------- #
    # Nine per-tap MXU matmuls accumulated in f32 (no im2col scratch).
    y1 = None
    for t, (kh, kw) in enumerate(_TAPS):
        xt = x_ref[0, pl.ds(r0 + kh, th2), kw:kw + w, :]        # (th+2, W, Cin)
        p = jnp.dot(xt.reshape(th2 * w, cin), w1_ref[t],
                    preferred_element_type=jnp.float32)
        y1 = p if y1 is None else y1 + p
    y1 = jnp.maximum(y1 + b1_ref[...], 0.0)

    # Layer-1 activation stays in VMEM (never written to HBM).  Only the 1-px
    # column border strips are zeroed; the interior is rewritten every step.
    mid_ref[:, 1:1 + w, :] = y1.reshape(th2, w, cmid).astype(mid_ref.dtype)
    zcol = jnp.zeros((th2, 1, cmid), mid_ref.dtype)
    mid_ref[:, 0:1, :] = zcol
    mid_ref[:, 1 + w:2 + w, :] = zcol

    # Top/bottom halo rows hold real neighbouring mid rows except at the image
    # edges, where conv2's zero padding requires them to be zero.
    @pl.when(r == 0)
    def _():
        mid_ref[0:1, :, :] = jnp.zeros((1, wp2, cmid), mid_ref.dtype)

    @pl.when(r == last_r)
    def _():
        mid_ref[th + 1:th + 2, :, :] = jnp.zeros((1, wp2, cmid), mid_ref.dtype)

    # ---------------- layer 2: conv3x3 (+folded BN) + ReLU ---------------- #
    y2 = None
    for t, (kh, kw) in enumerate(_TAPS):
        mt = mid_ref[kh:kh + th, kw:kw + w, :]                  # (th, W, Cmid)
        p = jnp.dot(mt.reshape(th * w, cmid), w2_ref[t],
                    preferred_element_type=jnp.float32)
        y2 = p if y2 is None else y2 + p
    y2 = jnp.maximum(y2 + b2_ref[...], 0.0)
    o_ref[0] = y2.reshape(th, w, coutp).astype(o_ref.dtype)     # bf16 store


# ------------------------------ wrapper ----------------------------------- #
def _round_up(x, m):
    return (x + m - 1) // m * m


def _choose_row_tile(h):
    """Rows per grid step: multiple of the sublane tile, >= 2 tiles per image."""
    for th in (32, 16, 8):
        if h % th == 0 and h // th >= 2:
            return th
    return h


def fold_bn(gamma, beta, mean, var, eps=1e-5):
    scale = gamma * lax.rsqrt(var + eps)
    bias = beta - mean * scale
    return scale, bias


def prepare_params(params):
    """Hoisted weight prep (run ONCE per weight set, not per forward call).

    Folds the BN scales into the conv weights, reshapes them to a per-tap
    (9, Cin, Cout) layout (no lane-offset weight slicing in-kernel), casts to
    bf16, and lane-pads the final output channels only when Cout >= 128.
    """
    w1, bn1, w2, bn2 = params
    cin, cmid = w1.shape[2], w1.shape[3]
    cout = w2.shape[3]
    coutp = _round_up(cout, 128) if cout >= 128 else cout

    s1, b1 = fold_bn(*bn1)
    s2, b2 = fold_bn(*bn2)
    w1p = (w1 * s1).reshape(9, cin, cmid).astype(jnp.bfloat16)
    w2p = (w2 * s2).reshape(9, cmid, cout)
    if coutp != cout:
        w2p = jnp.pad(w2p, ((0, 0), (0, 0), (0, coutp - cout)))
        b2 = jnp.pad(b2, (0, coutp - cout))
    w2p = w2p.astype(jnp.bfloat16)
    b1p = b1.reshape(1, cmid).astype(jnp.float32)
    b2p = b2.reshape(1, coutp).astype(jnp.float32)
    return (w1p, b1p, w2p, b2p)


def cr_forward_nhwc(x_nhwc, prepped, *, out_channels):
    """Fused CR forward on an NHWC input; returns NHWC bf16 (no wrapper transposes)."""
    w1p, b1p, w2p, b2p = prepped
    n, h, w, cin = x_nhwc.shape
    cmid = w1p.shape[-1]
    coutp = w2p.shape[-1]

    th = _choose_row_tile(h)
    rt = h // th

    # bf16 activations; 2-row / 1-col zero halo (fused two-conv row tiling
    # needs a 2-row input halo; columns only ever need 1 thanks to the mid
    # scratch's zero column border).
    xp = jnp.pad(x_nhwc.astype(jnp.bfloat16), ((0, 0), (2, 2), (1, 1), (0, 0)))

    out = pl.pallas_call(
        _cr_fused_kernel,
        out_shape=jax.ShapeDtypeStruct((n, h, w, coutp), jnp.bfloat16),
        grid_spec=pltpu.PrefetchScalarGridSpec(
            num_scalar_prefetch=0,
            grid=(n, rt),
            in_specs=[
                # Whole padded image; index_map ignores r -> DMA'd once per
                # image, reused by every row tile of that image.
                pl.BlockSpec((1, h + 4, w + 2, cin), lambda i, r: (i, 0, 0, 0)),
                pl.BlockSpec((9, cin, cmid), lambda i, r: (0, 0, 0)),
                pl.BlockSpec((1, cmid), lambda i, r: (0, 0)),
                pl.BlockSpec((9, cmid, coutp), lambda i, r: (0, 0, 0)),
                pl.BlockSpec((1, coutp), lambda i, r: (0, 0)),
            ],
            out_specs=pl.BlockSpec((1, th, w, coutp), lambda i, r: (i, r, 0, 0)),
            scratch_shapes=[
                pltpu.VMEM((th + 2, w + 2, cmid), jnp.bfloat16),  # mid + halo
            ],
        ),
        compiler_params=pltpu.CompilerParams(
            # batch x row-tiles both independent -> shard across TCs (v7x) and
            # keep grid steps >> #cores for pipelining.
            dimension_semantics=("parallel", "parallel"),
            # Explicit budget: fits every generation (v7x physical = 64 MiB).
            vmem_limit_bytes=48 * 1024 * 1024,
        ),
    )(xp, w1p, b1p, w2p, b2p)

    if coutp != out_channels:
        out = out[..., :out_channels]
    return out


def cr_forward(x_nchw, prepped, *, out_channels):
    """CR.forward with the PyTorch NCHW interface (thin layout shim)."""
    x_nhwc = jnp.transpose(x_nchw, (0, 2, 3, 1))
    y = cr_forward_nhwc(x_nhwc, prepped, out_channels=out_channels)
    return jnp.transpose(y, (0, 3, 1, 2)).astype(x_nchw.dtype)


# -------------------------- reference (pure JAX) --------------------------- #
def cr_reference(x_nchw, params):
    """Reference with the kernel's quantization points (bf16 data, f32 math)."""
    w1, bn1, w2, bn2 = params
    s1, b1 = fold_bn(*bn1)
    s2, b2 = fold_bn(*bn2)

    def q(a):  # bf16 rounding; arithmetic stays f32 (matches MXU f32 accum)
        return a.astype(jnp.bfloat16).astype(jnp.float32)

    def block(x, wf, b):
        y = lax.conv_general_dilated(
            x, wf, window_strides=(1, 1), padding="SAME",
            dimension_numbers=("NHWC", "HWIO", "NHWC"))
        return jnp.maximum(y + b, 0.0)

    x = q(jnp.transpose(x_nchw, (0, 2, 3, 1)))
    y = block(x, q(w1 * s1), b1)
    y = block(q(y), q(w2 * s2), b2)       # kernel keeps mid activation in bf16
    return jnp.transpose(y, (0, 3, 1, 2))


# ------------------------- deterministic params ---------------------------- #
def init_params(key, cin, cout):
    ks = jax.random.split(key, 10)

    def bn_params(kg, kb, km, kv, c):
        gamma = 1.0 + 0.1 * jax.random.normal(kg, (c,), jnp.float32)
        beta = 0.1 * jax.random.normal(kb, (c,), jnp.float32)
        mean = 0.05 * jax.random.normal(km, (c,), jnp.float32)
        var = 0.5 + 0.25 * jnp.abs(jax.random.normal(kv, (c,), jnp.float32))
        return gamma, beta, mean, var

    # Conv weights in HWIO layout (equivalent to permuted torch OIHW weights).
    w1 = 0.2 * jax.random.normal(ks[0], (3, 3, cin, cout), jnp.float32)
    w2 = 0.2 * jax.random.normal(ks[1], (3, 3, cout, cout), jnp.float32)
    bn1 = bn_params(ks[2], ks[3], ks[4], ks[5], cout)
    bn2 = bn_params(ks[6], ks[7], ks[8], ks[9], cout)
    return w1, bn1, w2, bn2


if __name__ == "__main__":
    key = jax.random.PRNGKey(0)
    kx, kp = jax.random.split(key)

    N, Cin, Cout, H, W = 2, 4, 8, 16, 16
    x = jax.random.normal(kx, (N, Cin, H, W), jnp.float32)   # NCHW input
    params = init_params(kp, Cin, Cout)

    prepped = prepare_params(params)                          # hoisted (once)
    fwd = jax.jit(cr_forward, static_argnames=("out_channels",))
    out = fwd(x, prepped, out_channels=Cout)
    out = jax.block_until_ready(out)

    ref = cr_reference(x, params)
    assert out.shape == (N, Cout, H, W), out.shape
    err = float(jnp.max(jnp.abs(out - ref)))
    # bf16 activations/weights/output with f32 accumulation: tolerance loosened
    # accordingly (observed error is a few 1e-3).
    assert jnp.allclose(out, ref, atol=2e-2, rtol=2e-2), err
    print("KERNEL_OK")
</pallas_src>

<mosaic_0001>
module attributes {stable_mosaic.version = 11 : i64} {
  func.func @_cr_fused_kernel(%arg0: i32, %arg1: i32, %arg2: memref<1x20x18x4xbf16, #tpu.memory_space<vmem>>, %arg3: memref<9x4x8xbf16, #tpu.memory_space<vmem>>, %arg4: memref<1x8xf32, #tpu.memory_space<vmem>>, %arg5: memref<9x8x8xbf16, #tpu.memory_space<vmem>>, %arg6: memref<1x8xf32, #tpu.memory_space<vmem>>, %arg7: memref<1x8x16x8xbf16, #tpu.memory_space<vmem>>, %arg8: memref<10x18x8xbf16, #tpu.memory_space<vmem>>) attributes {dimension_semantics = [#tpu.dimension_semantics<parallel>, #tpu.dimension_semantics<parallel>], iteration_bounds = array<i64: 2, 2>, scalar_prefetch = 0 : i64, scratch_operands = 1 : i64, tpu.core_type = #tpu.core_type<tc>, window_params = [{transform_indices = @transform_0, window_bounds = array<i64: 1, 20, 18, 4>}, {pipeline_mode = #tpu.pipeline_mode<synchronous>, transform_indices = @transform_1, window_bounds = array<i64: 9, 4, 8>}, {pipeline_mode = #tpu.pipeline_mode<synchronous>, transform_indices = @transform_2, window_bounds = array<i64: 1, 8>}, {pipeline_mode = #tpu.pipeline_mode<synchronous>, transform_indices = @transform_3, window_bounds = array<i64: 9, 8, 8>}, {pipeline_mode = #tpu.pipeline_mode<synchronous>, transform_indices = @transform_4, window_bounds = array<i64: 1, 8>}, {transform_indices = @transform_5, window_bounds = array<i64: 1, 8, 16, 8>}]} {
    %c8_i32 = arith.constant 8 : i32
    %0 = arith.muli %arg1, %c8_i32 : i32
    %1 = tpu.assume_multiple %0, 8 : i32
    %c0_i32 = arith.constant 0 : i32
    %2 = arith.addi %1, %c0_i32 : i32
    %c0 = arith.constant 0 : index
    %3 = arith.index_cast %2 : i32 to index
    %c0_0 = arith.constant 0 : index
    %c0_1 = arith.constant 0 : index
    %4 = vector.load %arg2[%c0, %3, %c0_0, %c0_1] : memref<1x20x18x4xbf16, #tpu.memory_space<vmem>>, vector<1x10x16x4xbf16>
    %5 = vector.shape_cast %4 : vector<1x10x16x4xbf16> to vector<10x16x4xbf16>
    %6 = vector.shape_cast %5 : vector<10x16x4xbf16> to vector<160x4xbf16>
    %c0_2 = arith.constant 0 : index
    %c0_3 = arith.constant 0 : index
    %c0_4 = arith.constant 0 : index
    %7 = vector.load %arg3[%c0_2, %c0_3, %c0_4] : memref<9x4x8xbf16, #tpu.memory_space<vmem>>, vector<1x4x8xbf16>
    %8 = vector.shape_cast %7 : vector<1x4x8xbf16> to vector<4x8xbf16>
    %cst = arith.constant dense<0.000000e+00> : vector<160x8xf32>
    %9 = tpu.matmul %6, %8, %cst {dimension_numbers = #tpu.dot_dimension_numbers<[1], [0], [0], [1], [0, 0, 1, 1], [], []>} : vector<160x4xbf16>, vector<4x8xbf16>, vector<160x8xf32> -> vector<160x8xf32>
    %c0_i32_5 = arith.constant 0 : i32
    %10 = arith.addi %1, %c0_i32_5 : i32
    %c0_6 = arith.constant 0 : index
    %11 = arith.index_cast %10 : i32 to index
    %c1 = arith.constant 1 : index
    %c0_7 = arith.constant 0 : index
    %12 = vector.load %arg2[%c0_6, %11, %c1, %c0_7] : memref<1x20x18x4xbf16, #tpu.memory_space<vmem>>, vector<1x10x16x4xbf16>
    %13 = vector.shape_cast %12 : vector<1x10x16x4xbf16> to vector<10x16x4xbf16>
    %14 = vector.shape_cast %13 : vector<10x16x4xbf16> to vector<160x4xbf16>
    %c1_8 = arith.constant 1 : index
    %c0_9 = arith.constant 0 : index
    %c0_10 = arith.constant 0 : index
    %15 = vector.load %arg3[%c1_8, %c0_9, %c0_10] : memref<9x4x8xbf16, #tpu.memory_space<vmem>>, vector<1x4x8xbf16>
    %16 = vector.shape_cast %15 : vector<1x4x8xbf16> to vector<4x8xbf16>
    %cst_11 = arith.constant dense<0.000000e+00> : vector<160x8xf32>
    %17 = tpu.matmul %14, %16, %cst_11 {dimension_numbers = #tpu.dot_dimension_numbers<[1], [0], [0], [1], [0, 0, 1, 1], [], []>} : vector<160x4xbf16>, vector<4x8xbf16>, vector<160x8xf32> -> vector<160x8xf32>
    %18 = arith.addf %9, %17 : vector<160x8xf32>
    %c0_i32_12 = arith.constant 0 : i32
    %19 = arith.addi %1, %c0_i32_12 : i32
    %c0_13 = arith.constant 0 : index
    %20 = arith.index_cast %19 : i32 to index
    %c2 = arith.constant 2 : index
    %c0_14 = arith.constant 0 : index
    %21 = vector.load %arg2[%c0_13, %20, %c2, %c0_14] : memref<1x20x18x4xbf16, #tpu.memory_space<vmem>>, vector<1x10x16x4xbf16>
    %22 = vector.shape_cast %21 : vector<1x10x16x4xbf16> to vector<10x16x4xbf16>
    %23 = vector.shape_cast %22 : vector<10x16x4xbf16> to vector<160x4xbf16>
    %c2_15 = arith.constant 2 : index
    %c0_16 = arith.constant 0 : index
    %c0_17 = arith.constant 0 : index
    %24 = vector.load %arg3[%c2_15, %c0_16, %c0_17] : memref<9x4x8xbf16, #tpu.memory_space<vmem>>, vector<1x4x8xbf16>
    %25 = vector.shape_cast %24 : vector<1x4x8xbf16> to vector<4x8xbf16>
    %cst_18 = arith.constant dense<0.000000e+00> : vector<160x8xf32>
    %26 = tpu.matmul %23, %25, %cst_18 {dimension_numbers = #tpu.dot_dimension_numbers<[1], [0], [0], [1], [0, 0, 1, 1], [], []>} : vector<160x4xbf16>, vector<4x8xbf16>, vector<160x8xf32> -> vector<160x8xf32>
    %27 = arith.addf %18, %26 : vector<160x8xf32>
    %c1_i32 = arith.constant 1 : i32
    %28 = arith.addi %1, %c1_i32 : i32
    %c0_19 = arith.constant 0 : index
    %29 = arith.index_cast %28 : i32 to index
    %c0_20 = arith.constant 0 : index
    %c0_21 = arith.constant 0 : index
    %30 = vector.load %arg2[%c0_19, %29, %c0_20, %c0_21] : memref<1x20x18x4xbf16, #tpu.memory_space<vmem>>, vector<1x10x16x4xbf16>
    %31 = vector.shape_cast %30 : vector<1x10x16x4xbf16> to vector<10x16x4xbf16>
    %32 = vector.shape_cast %31 : vector<10x16x4xbf16> to vector<160x4xbf16>
    %c3 = arith.constant 3 : index
    %c0_22 = arith.constant 0 : index
    %c0_23 = arith.constant 0 : index
    %33 = vector.load %arg3[%c3, %c0_22, %c0_23] : memref<9x4x8xbf16, #tpu.memory_space<vmem>>, vector<1x4x8xbf16>
    %34 = vector.shape_cast %33 : vector<1x4x8xbf16> to vector<4x8xbf16>
    %cst_24 = arith.constant dense<0.000000e+00> : vector<160x8xf32>
    %35 = tpu.matmul %32, %34, %cst_24 {dimension_numbers = #tpu.dot_dimension_numbers<[1], [0], [0], [1], [0, 0, 1, 1], [], []>} : vector<160x4xbf16>, vector<4x8xbf16>, vector<160x8xf32> -> vector<160x8xf32>
    %36 = arith.addf %27, %35 : vector<160x8xf32>
    %c1_i32_25 = arith.constant 1 : i32
    %37 = arith.addi %1, %c1_i32_25 : i32
    %c0_26 = arith.constant 0 : index
    %38 = arith.index_cast %37 : i32 to index
    %c1_27 = arith.constant 1 : index
    %c0_28 = arith.constant 0 : index
    %39 = vector.load %arg2[%c0_26, %38, %c1_27, %c0_28] : memref<1x20x18x4xbf16, #tpu.memory_space<vmem>>, vector<1x10x16x4xbf16>
    %40 = vector.shape_cast %39 : vector<1x10x16x4xbf16> to vector<10x16x4xbf16>
    %41 = vector.shape_cast %40 : vector<10x16x4xbf16> to vector<160x4xbf16>
    %c4 = arith.constant 4 : index
    %c0_29 = arith.constant 0 : index
    %c0_30 = arith.constant 0 : index
    %42 = vector.load %arg3[%c4, %c0_29, %c0_30] : memref<9x4x8xbf16, #tpu.memory_space<vmem>>, vector<1x4x8xbf16>
    %43 = vector.shape_cast %42 : vector<1x4x8xbf16> to vector<4x8xbf16>
    %cst_31 = arith.constant dense<0.000000e+00> : vector<160x8xf32>
    %44 = tpu.matmul %41, %43, %cst_31 {dimension_numbers = #tpu.dot_dimension_numbers<[1], [0], [0], [1], [0, 0, 1, 1], [], []>} : vector<160x4xbf16>, vector<4x8xbf16>, vector<160x8xf32> -> vector<160x8xf32>
    %45 = arith.addf %36, %44 : vector<160x8xf32>
    %c1_i32_32 = arith.constant 1 : i32
    %46 = arith.addi %1, %c1_i32_32 : i32
    %c0_33 = arith.constant 0 : index
    %47 = arith.index_cast %46 : i32 to index
    %c2_34 = arith.constant 2 : index
    %c0_35 = arith.constant 0 : index
    %48 = vector.load %arg2[%c0_33, %47, %c2_34, %c0_35] : memref<1x20x18x4xbf16, #tpu.memory_space<vmem>>, vector<1x10x16x4xbf16>
    %49 = vector.shape_cast %48 : vector<1x10x16x4xbf16> to vector<10x16x4xbf16>
    %50 = vector.shape_cast %49 : vector<10x16x4xbf16> to vector<160x4xbf16>
    %c5 = arith.constant 5 : index
    %c0_36 = arith.constant 0 : index
    %c0_37 = arith.constant 0 : index
    %51 = vector.load %arg3[%c5, %c0_36, %c0_37] : memref<9x4x8xbf16, #tpu.memory_space<vmem>>, vector<1x4x8xbf16>
    %52 = vector.shape_cast %51 : vector<1x4x8xbf16> to vector<4x8xbf16>
    %cst_38 = arith.constant dense<0.000000e+00> : vector<160x8xf32>
    %53 = tpu.matmul %50, %52, %cst_38 {dimension_numbers = #tpu.dot_dimension_numbers<[1], [0], [0], [1], [0, 0, 1, 1], [], []>} : vector<160x4xbf16>, vector<4x8xbf16>, vector<160x8xf32> -> vector<160x8xf32>
    %54 = arith.addf %45, %53 : vector<160x8xf32>
    %c2_i32 = arith.constant 2 : i32
    %55 = arith.addi %1, %c2_i32 : i32
    %c0_39 = arith.constant 0 : index
    %56 = arith.index_cast %55 : i32 to index
    %c0_40 = arith.constant 0 : index
    %c0_41 = arith.constant 0 : index
    %57 = vector.load %arg2[%c0_39, %56, %c0_40, %c0_41] : memref<1x20x18x4xbf16, #tpu.memory_space<vmem>>, vector<1x10x16x4xbf16>
    %58 = vector.shape_cast %57 : vector<1x10x16x4xbf16> to vector<10x16x4xbf16>
    %59 = vector.shape_cast %58 : vector<10x16x4xbf16> to vector<160x4xbf16>
    %c6 = arith.constant 6 : index
    %c0_42 = arith.constant 0 : index
    %c0_43 = arith.constant 0 : index
    %60 = vector.load %arg3[%c6, %c0_42, %c0_43] : memref<9x4x8xbf16, #tpu.memory_space<vmem>>, vector<1x4x8xbf16>
    %61 = vector.shape_cast %60 : vector<1x4x8xbf16> to vector<4x8xbf16>
    %cst_44 = arith.constant dense<0.000000e+00> : vector<160x8xf32>
    %62 = tpu.matmul %59, %61, %cst_44 {dimension_numbers = #tpu.dot_dimension_numbers<[1], [0], [0], [1], [0, 0, 1, 1], [], []>} : vector<160x4xbf16>, vector<4x8xbf16>, vector<160x8xf32> -> vector<160x8xf32>
    %63 = arith.addf %54, %62 : vector<160x8xf32>
    %c2_i32_45 = arith.constant 2 : i32
    %64 = arith.addi %1, %c2_i32_45 : i32
    %c0_46 = arith.constant 0 : index
    %65 = arith.index_cast %64 : i32 to index
    %c1_47 = arith.constant 1 : index
    %c0_48 = arith.constant 0 : index
    %66 = vector.load %arg2[%c0_46, %65, %c1_47, %c0_48] : memref<1x20x18x4xbf16, #tpu.memory_space<vmem>>, vector<1x10x16x4xbf16>
    %67 = vector.shape_cast %66 : vector<1x10x16x4xbf16> to vector<10x16x4xbf16>
    %68 = vector.shape_cast %67 : vector<10x16x4xbf16> to vector<160x4xbf16>
    %c7 = arith.constant 7 : index
    %c0_49 = arith.constant 0 : index
    %c0_50 = arith.constant 0 : index
    %69 = vector.load %arg3[%c7, %c0_49, %c0_50] : memref<9x4x8xbf16, #tpu.memory_space<vmem>>, vector<1x4x8xbf16>
    %70 = vector.shape_cast %69 : vector<1x4x8xbf16> to vector<4x8xbf16>
    %cst_51 = arith.constant dense<0.000000e+00> : vector<160x8xf32>
    %71 = tpu.matmul %68, %70, %cst_51 {dimension_numbers = #tpu.dot_dimension_numbers<[1], [0], [0], [1], [0, 0, 1, 1], [], []>} : vector<160x4xbf16>, vector<4x8xbf16>, vector<160x8xf32> -> vector<160x8xf32>
    %72 = arith.addf %63, %71 : vector<160x8xf32>
    %c2_i32_52 = arith.constant 2 : i32
    %73 = arith.addi %1, %c2_i32_52 : i32
    %c0_53 = arith.constant 0 : index
    %74 = arith.index_cast %73 : i32 to index
    %c2_54 = arith.constant 2 : index
    %c0_55 = arith.constant 0 : index
    %75 = vector.load %arg2[%c0_53, %74, %c2_54, %c0_55] : memref<1x20x18x4xbf16, #tpu.memory_space<vmem>>, vector<1x10x16x4xbf16>
    %76 = vector.shape_cast %75 : vector<1x10x16x4xbf16> to vector<10x16x4xbf16>
    %77 = vector.shape_cast %76 : vector<10x16x4xbf16> to vector<160x4xbf16>
    %c8 = arith.constant 8 : index
    %c0_56 = arith.constant 0 : index
    %c0_57 = arith.constant 0 : index
    %78 = vector.load %arg3[%c8, %c0_56, %c0_57] : memref<9x4x8xbf16, #tpu.memory_space<vmem>>, vector<1x4x8xbf16>
    %79 = vector.shape_cast %78 : vector<1x4x8xbf16> to vector<4x8xbf16>
    %cst_58 = arith.constant dense<0.000000e+00> : vector<160x8xf32>
    %80 = tpu.matmul %77, %79, %cst_58 {dimension_numbers = #tpu.dot_dimension_numbers<[1], [0], [0], [1], [0, 0, 1, 1], [], []>} : vector<160x4xbf16>, vector<4x8xbf16>, vector<160x8xf32> -> vector<160x8xf32>
    %81 = arith.addf %72, %80 : vector<160x8xf32>
    %c0_59 = arith.constant 0 : index
    %c0_60 = arith.constant 0 : index
    %82 = vector.load %arg4[%c0_59, %c0_60] : memref<1x8xf32, #tpu.memory_space<vmem>>, vector<1x8xf32>
    %83 = vector.broadcast %82 : vector<1x8xf32> to vector<160x8xf32>
    %84 = arith.addf %81, %83 : vector<160x8xf32>
    %cst_61 = arith.constant 0.000000e+00 : f32
    %85 = vector.broadcast %cst_61 : f32 to vector<160x8xf32>
    %86 = arith.maximumf %84, %85 : vector<160x8xf32>
    %87 = vector.shape_cast %86 : vector<160x8xf32> to vector<10x16x8xf32>
    %88 = arith.truncf %87 : vector<10x16x8xf32> to vector<10x16x8xbf16>
    %c0_62 = arith.constant 0 : index
    %c1_63 = arith.constant 1 : index
    %c0_64 = arith.constant 0 : index
    %89 = vector.load %arg8[%c0_62, %c1_63, %c0_64] : memref<10x18x8xbf16, #tpu.memory_space<vmem>>, vector<10x16x8xbf16>
    tpu.vector_store %arg8[%c0_62, %c1_63, %c0_64], %88 {strides = array<i32>} : memref<10x18x8xbf16, #tpu.memory_space<vmem>>, vector<10x16x8xbf16>,
    %cst_65 = arith.constant 0.000000e+00 : bf16
    %90 = vector.broadcast %cst_65 : bf16 to vector<10x1x8xbf16>
    %c0_66 = arith.constant 0 : index
    %c0_67 = arith.constant 0 : index
    %c0_68 = arith.constant 0 : index
    %91 = vector.load %arg8[%c0_66, %c0_67, %c0_68] : memref<10x18x8xbf16, #tpu.memory_space<vmem>>, vector<10x1x8xbf16>
    tpu.vector_store %arg8[%c0_66, %c0_67, %c0_68], %90 {strides = array<i32>} : memref<10x18x8xbf16, #tpu.memory_space<vmem>>, vector<10x1x8xbf16>,
    %c0_69 = arith.constant 0 : index
    %c17 = arith.constant 17 : index
    %c0_70 = arith.constant 0 : index
    %92 = vector.load %arg8[%c0_69, %c17, %c0_70] : memref<10x18x8xbf16, #tpu.memory_space<vmem>>, vector<10x1x8xbf16>
    tpu.vector_store %arg8[%c0_69, %c17, %c0_70], %90 {strides = array<i32>} : memref<10x18x8xbf16, #tpu.memory_space<vmem>>, vector<10x1x8xbf16>,
    %c0_i32_71 = arith.constant 0 : i32
    %93 = arith.cmpi eq, %arg1, %c0_i32_71 : i32
    %94 = arith.extui %93 : i1 to i32
    %c0_i32_72 = arith.constant 0 : i32
    %95 = arith.cmpi ne, %94, %c0_i32_72 : i32
    scf.if %95 {
      %cst_145 = arith.constant 0.000000e+00 : bf16
      %162 = vector.broadcast %cst_145 : bf16 to vector<1x18x8xbf16>
      %c0_146 = arith.constant 0 : index
      %c0_147 = arith.constant 0 : index
      %c0_148 = arith.constant 0 : index
      %163 = vector.load %arg8[%c0_146, %c0_147, %c0_148] : memref<10x18x8xbf16, #tpu.memory_space<vmem>>, vector<1x18x8xbf16>
      tpu.vector_store %arg8[%c0_146, %c0_147, %c0_148], %162 {strides = array<i32>} : memref<10x18x8xbf16, #tpu.memory_space<vmem>>, vector<1x18x8xbf16>,
    } else {
    }
    %c1_i32_73 = arith.constant 1 : i32
    %96 = arith.cmpi eq, %arg1, %c1_i32_73 : i32
    %97 = arith.extui %96 : i1 to i32
    %c0_i32_74 = arith.constant 0 : i32
    %98 = arith.cmpi ne, %97, %c0_i32_74 : i32
    scf.if %98 {
      %cst_145 = arith.constant 0.000000e+00 : bf16
      %162 = vector.broadcast %cst_145 : bf16 to vector<1x18x8xbf16>
      %c9 = arith.constant 9 : index
      %c0_146 = arith.constant 0 : index
      %c0_147 = arith.constant 0 : index
      %163 = vector.load %arg8[%c9, %c0_146, %c0_147] : memref<10x18x8xbf16, #tpu.memory_space<vmem>>, vector<1x18x8xbf16>
      tpu.vector_store %arg8[%c9, %c0_146, %c0_147], %162 {strides = array<i32>} : memref<10x18x8xbf16, #tpu.memory_space<vmem>>, vector<1x18x8xbf16>,
    } else {
    }
    %c0_75 = arith.constant 0 : index
    %c0_76 = arith.constant 0 : index
    %c0_77 = arith.constant 0 : index
    %99 = vector.load %arg8[%c0_75, %c0_76, %c0_77] : memref<10x18x8xbf16, #tpu.memory_space<vmem>>, vector<8x16x8xbf16>
    %100 = vector.shape_cast %99 : vector<8x16x8xbf16> to vector<128x8xbf16>
    %c0_78 = arith.constant 0 : index
    %c0_79 = arith.constant 0 : index
    %c0_80 = arith.constant 0 : index
    %101 = vector.load %arg5[%c0_78, %c0_79, %c0_80] : memref<9x8x8xbf16, #tpu.memory_space<vmem>>, vector<1x8x8xbf16>
    %102 = vector.shape_cast %101 : vector<1x8x8xbf16> to vector<8x8xbf16>
    %cst_81 = arith.constant dense<0.000000e+00> : vector<128x8xf32>
    %103 = tpu.matmul %100, %102, %cst_81 {dimension_numbers = #tpu.dot_dimension_numbers<[1], [0], [0], [1], [0, 0, 1, 1], [], []>} : vector<128x8xbf16>, vector<8x8xbf16>, vector<128x8xf32> -> vector<128x8xf32>
    %c0_82 = arith.constant 0 : index
    %c1_83 = arith.constant 1 : index
    %c0_84 = arith.constant 0 : index
    %104 = vector.load %arg8[%c0_82, %c1_83, %c0_84] : memref<10x18x8xbf16, #tpu.memory_space<vmem>>, vector<8x16x8xbf16>
    %105 = vector.shape_cast %104 : vector<8x16x8xbf16> to vector<128x8xbf16>
    %c1_85 = arith.constant 1 : index
    %c0_86 = arith.constant 0 : index
    %c0_87 = arith.constant 0 : index
    %106 = vector.load %arg5[%c1_85, %c0_86, %c0_87] : memref<9x8x8xbf16, #tpu.memory_space<vmem>>, vector<1x8x8xbf16>
    %107 = vector.shape_cast %106 : vector<1x8x8xbf16> to vector<8x8xbf16>
    %cst_88 = arith.constant dense<0.000000e+00> : vector<128x8xf32>
    %108 = tpu.matmul %105, %107, %cst_88 {dimension_numbers = #tpu.dot_dimension_numbers<[1], [0], [0], [1], [0, 0, 1, 1], [], []>} : vector<128x8xbf16>, vector<8x8xbf16>, vector<128x8xf32> -> vector<128x8xf32>
    %109 = arith.addf %103, %108 : vector<128x8xf32>
    %c0_89 = arith.constant 0 : index
    %c2_90 = arith.constant 2 : index
    %c0_91 = arith.constant 0 : index
    %110 = vector.load %arg8[%c0_89, %c2_90, %c0_91] : memref<10x18x8xbf16, #tpu.memory_space<vmem>>, vector<8x16x8xbf16>
    %111 = vector.shape_cast %110 : vector<8x16x8xbf16> to vector<128x8xbf16>
    %c2_92 = arith.constant 2 : index
    %c0_93 = arith.constant 0 : index
    %c0_94 = arith.constant 0 : index
    %112 = vector.load %arg5[%c2_92, %c0_93, %c0_94] : memref<9x8x8xbf16, #tpu.memory_space<vmem>>, vector<1x8x8xbf16>
    %113 = vector.shape_cast %112 : vector<1x8x8xbf16> to vector<8x8xbf16>
    %cst_95 = arith.constant dense<0.000000e+00> : vector<128x8xf32>
    %114 = tpu.matmul %111, %113, %cst_95 {dimension_numbers = #tpu.dot_dimension_numbers<[1], [0], [0], [1], [0, 0, 1, 1], [], []>} : vector<128x8xbf16>, vector<8x8xbf16>, vector<128x8xf32> -> vector<128x8xf32>
    %115 = arith.addf %109, %114 : vector<128x8xf32>
    %c1_96 = arith.constant 1 : index
    %c0_97 = arith.constant 0 : index
    %c0_98 = arith.constant 0 : index
    %116 = vector.load %arg8[%c1_96, %c0_97, %c0_98] : memref<10x18x8xbf16, #tpu.memory_space<vmem>>, vector<8x16x8xbf16>
    %117 = vector.shape_cast %116 : vector<8x16x8xbf16> to vector<128x8xbf16>
    %c3_99 = arith.constant 3 : index
    %c0_100 = arith.constant 0 : index
    %c0_101 = arith.constant 0 : index
    %118 = vector.load %arg5[%c3_99, %c0_100, %c0_101] : memref<9x8x8xbf16, #tpu.memory_space<vmem>>, vector<1x8x8xbf16>
    %119 = vector.shape_cast %118 : vector<1x8x8xbf16> to vector<8x8xbf16>
    %cst_102 = arith.constant dense<0.000000e+00> : vector<128x8xf32>
    %120 = tpu.matmul %117, %119, %cst_102 {dimension_numbers = #tpu.dot_dimension_numbers<[1], [0], [0], [1], [0, 0, 1, 1], [], []>} : vector<128x8xbf16>, vector<8x8xbf16>, vector<128x8xf32> -> vector<128x8xf32>
    %121 = arith.addf %115, %120 : vector<128x8xf32>
    %c1_103 = arith.constant 1 : index
    %c1_104 = arith.constant 1 : index
    %c0_105 = arith.constant 0 : index
    %122 = vector.load %arg8[%c1_103, %c1_104, %c0_105] : memref<10x18x8xbf16, #tpu.memory_space<vmem>>, vector<8x16x8xbf16>
    %123 = vector.shape_cast %122 : vector<8x16x8xbf16> to vector<128x8xbf16>
    %c4_106 = arith.constant 4 : index
    %c0_107 = arith.constant 0 : index
    %c0_108 = arith.constant 0 : index
    %124 = vector.load %arg5[%c4_106, %c0_107, %c0_108] : memref<9x8x8xbf16, #tpu.memory_space<vmem>>, vector<1x8x8xbf16>
    %125 = vector.shape_cast %124 : vector<1x8x8xbf16> to vector<8x8xbf16>
    %cst_109 = arith.constant dense<0.000000e+00> : vector<128x8xf32>
    %126 = tpu.matmul %123, %125, %cst_109 {dimension_numbers = #tpu.dot_dimension_numbers<[1], [0], [0], [1], [0, 0, 1, 1], [], []>} : vector<128x8xbf16>, vector<8x8xbf16>, vector<128x8xf32> -> vector<128x8xf32>
    %127 = arith.addf %121, %126 : vector<128x8xf32>
    %c1_110 = arith.constant 1 : index
    %c2_111 = arith.constant 2 : index
    %c0_112 = arith.constant 0 : index
    %128 = vector.load %arg8[%c1_110, %c2_111, %c0_112] : memref<10x18x8xbf16, #tpu.memory_space<vmem>>, vector<8x16x8xbf16>
    %129 = vector.shape_cast %128 : vector<8x16x8xbf16> to vector<128x8xbf16>
    %c5_113 = arith.constant 5 : index
    %c0_114 = arith.constant 0 : index
    %c0_115 = arith.constant 0 : index
    %130 = vector.load %arg5[%c5_113, %c0_114, %c0_115] : memref<9x8x8xbf16, #tpu.memory_space<vmem>>, vector<1x8x8xbf16>
    %131 = vector.shape_cast %130 : vector<1x8x8xbf16> to vector<8x8xbf16>
    %cst_116 = arith.constant dense<0.000000e+00> : vector<128x8xf32>
    %132 = tpu.matmul %129, %131, %cst_116 {dimension_numbers = #tpu.dot_dimension_numbers<[1], [0], [0], [1], [0, 0, 1, 1], [], []>} : vector<128x8xbf16>, vector<8x8xbf16>, vector<128x8xf32> -> vector<128x8xf32>
    %133 = arith.addf %127, %132 : vector<128x8xf32>
    %c2_117 = arith.constant 2 : index
    %c0_118 = arith.constant 0 : index
    %c0_119 = arith.constant 0 : index
    %134 = vector.load %arg8[%c2_117, %c0_118, %c0_119] : memref<10x18x8xbf16, #tpu.memory_space<vmem>>, vector<8x16x8xbf16>
    %135 = vector.shape_cast %134 : vector<8x16x8xbf16> to vector<128x8xbf16>
    %c6_120 = arith.constant 6 : index
    %c0_121 = arith.constant 0 : index
    %c0_122 = arith.constant 0 : index
    %136 = vector.load %arg5[%c6_120, %c0_121, %c0_122] : memref<9x8x8xbf16, #tpu.memory_space<vmem>>, vector<1x8x8xbf16>
    %137 = vector.shape_cast %136 : vector<1x8x8xbf16> to vector<8x8xbf16>
    %cst_123 = arith.constant dense<0.000000e+00> : vector<128x8xf32>
    %138 = tpu.matmul %135, %137, %cst_123 {dimension_numbers = #tpu.dot_dimension_numbers<[1], [0], [0], [1], [0, 0, 1, 1], [], []>} : vector<128x8xbf16>, vector<8x8xbf16>, vector<128x8xf32> -> vector<128x8xf32>
    %139 = arith.addf %133, %138 : vector<128x8xf32>
    %c2_124 = arith.constant 2 : index
    %c1_125 = arith.constant 1 : index
    %c0_126 = arith.constant 0 : index
    %140 = vector.load %arg8[%c2_124, %c1_125, %c0_126] : memref<10x18x8xbf16, #tpu.memory_space<vmem>>, vector<8x16x8xbf16>
    %141 = vector.shape_cast %140 : vector<8x16x8xbf16> to vector<128x8xbf16>
    %c7_127 = arith.constant 7 : index
    %c0_128 = arith.constant 0 : index
    %c0_129 = arith.constant 0 : index
    %142 = vector.load %arg5[%c7_127, %c0_128, %c0_129] : memref<9x8x8xbf16, #tpu.memory_space<vmem>>, vector<1x8x8xbf16>
    %143 = vector.shape_cast %142 : vector<1x8x8xbf16> to vector<8x8xbf16>
    %cst_130 = arith.constant dense<0.000000e+00> : vector<128x8xf32>
    %144 = tpu.matmul %141, %143, %cst_130 {dimension_numbers = #tpu.dot_dimension_numbers<[1], [0], [0], [1], [0, 0, 1, 1], [], []>} : vector<128x8xbf16>, vector<8x8xbf16>, vector<128x8xf32> -> vector<128x8xf32>
    %145 = arith.addf %139, %144 : vector<128x8xf32>
    %c2_131 = arith.constant 2 : index
    %c2_132 = arith.constant 2 : index
    %c0_133 = arith.constant 0 : index
    %146 = vector.load %arg8[%c2_131, %c2_132, %c0_133] : memref<10x18x8xbf16, #tpu.memory_space<vmem>>, vector<8x16x8xbf16>
    %147 = vector.shape_cast %146 : vector<8x16x8xbf16> to vector<128x8xbf16>
    %c8_134 = arith.constant 8 : index
    %c0_135 = arith.constant 0 : index
    %c0_136 = arith.constant 0 : index
    %148 = vector.load %arg5[%c8_134, %c0_135, %c0_136] : memref<9x8x8xbf16, #tpu.memory_space<vmem>>, vector<1x8x8xbf16>
    %149 = vector.shape_cast %148 : vector<1x8x8xbf16> to vector<8x8xbf16>
    %cst_137 = arith.constant dense<0.000000e+00> : vector<128x8xf32>
    %150 = tpu.matmul %147, %149, %cst_137 {dimension_numbers = #tpu.dot_dimension_numbers<[1], [0], [0], [1], [0, 0, 1, 1], [], []>} : vector<128x8xbf16>, vector<8x8xbf16>, vector<128x8xf32> -> vector<128x8xf32>
    %151 = arith.addf %145, %150 : vector<128x8xf32>
    %c0_138 = arith.constant 0 : index
    %c0_139 = arith.constant 0 : index
    %152 = vector.load %arg6[%c0_138, %c0_139] : memref<1x8xf32, #tpu.memory_space<vmem>>, vector<1x8xf32>
    %153 = vector.broadcast %152 : vector<1x8xf32> to vector<128x8xf32>
    %154 = arith.addf %151, %153 : vector<128x8xf32>
    %cst_140 = arith.constant 0.000000e+00 : f32
    %155 = vector.broadcast %cst_140 : f32 to vector<128x8xf32>
    %156 = arith.maximumf %154, %155 : vector<128x8xf32>
    %157 = vector.shape_cast %156 : vector<128x8xf32> to vector<8x16x8xf32>
    %158 = arith.truncf %157 : vector<8x16x8xf32> to vector<8x16x8xbf16>
    %c0_141 = arith.constant 0 : index
    %c0_142 = arith.constant 0 : index
    %c0_143 = arith.constant 0 : index
    %c0_144 = arith.constant 0 : index
    %159 = vector.load %arg7[%c0_141, %c0_142, %c0_143, %c0_144] : memref<1x8x16x8xbf16, #tpu.memory_space<vmem>>, vector<1x8x16x8xbf16>
    %160 = vector.shape_cast %159 : vector<1x8x16x8xbf16> to vector<8x16x8xbf16>
    %161 = vector.shape_cast %158 : vector<8x16x8xbf16> to vector<1x8x16x8xbf16>
    tpu.vector_store %arg7[%c0_141, %c0_142, %c0_143, %c0_144], %161 {strides = array<i32>} : memref<1x8x16x8xbf16, #tpu.memory_space<vmem>>, vector<1x8x16x8xbf16>,
    return
  }
  func.func @transform_0(%arg0: i32, %arg1: i32) -> (i32, i32, i32, i32) {
    %c0_i32 = arith.constant 0 : i32
    %c0_i32_0 = arith.constant 0 : i32
    %c0_i32_1 = arith.constant 0 : i32
    %c0_i32_2 = arith.constant 0 : i32
    return %arg0, %c0_i32, %c0_i32_0, %c0_i32_1 : i32, i32, i32, i32
  }
  func.func @transform_1(%arg0: i32, %arg1: i32) -> (i32, i32, i32) {
    %c0_i32 = arith.constant 0 : i32
    %c0_i32_0 = arith.constant 0 : i32
    %c0_i32_1 = arith.constant 0 : i32
    %c0_i32_2 = arith.constant 0 : i32
    return %c0_i32, %c0_i32_0, %c0_i32_1 : i32, i32, i32
  }
  func.func @transform_2(%arg0: i32, %arg1: i32) -> (i32, i32) {
    %c0_i32 = arith.constant 0 : i32
    %c0_i32_0 = arith.constant 0 : i32
    %c0_i32_1 = arith.constant 0 : i32
    return %c0_i32, %c0_i32_0 : i32, i32
  }
  func.func @transform_3(%arg0: i32, %arg1: i32) -> (i32, i32, i32) {
    %c0_i32 = arith.constant 0 : i32
    %c0_i32_0 = arith.constant 0 : i32
    %c0_i32_1 = arith.constant 0 : i32
    %c0_i32_2 = arith.constant 0 : i32
    return %c0_i32, %c0_i32_0, %c0_i32_1 : i32, i32, i32
  }
  func.func @transform_4(%arg0: i32, %arg1: i32) -> (i32, i32) {
    %c0_i32 = arith.constant 0 : i32
    %c0_i32_0 = arith.constant 0 : i32
    %c0_i32_1 = arith.constant 0 : i32
    return %c0_i32, %c0_i32_0 : i32, i32
  }
  func.func @transform_5(%arg0: i32, %arg1: i32) -> (i32, i32, i32, i32) {
    %c0_i32 = arith.constant 0 : i32
    %c0_i32_0 = arith.constant 0 : i32
    %c0_i32_1 = arith.constant 0 : i32
    return %arg0, %arg1, %c0_i32, %c0_i32_0 : i32, i32, i32, i32
  }
}

</mosaic_0001>

<bundles_post_ra>
// kernel: cr_forward.1
= control target key start
LH: loop header
LB: loop body
LE: loop exit
PB: predicated region body
PF: predicated region fallthrough
CT: control target
= control target key end

     0   :  { %s6134_s18 = smov 0   ;;  %s6136_s19 = smov 0   ;;  %s7925_s0 = inlined_call_operand.vmem [shape: bf16[2,20,18,4], index: 0, kind: input, shape index: {}]   ;;  %s7926_s1 = inlined_call_operand.vmem [shape: bf16[9,4,8], index: 1, kind: input, shape index: {}]   ;;  %s7927_s2 = inlined_call_operand.vmem [shape: f32[1,8], index: 2, kind: input, shape index: {}]   ;;  %s7928_s3 = inlined_call_operand.vmem [shape: bf16[9,8,8], index: 3, kind: input, shape index: {}]   ;;  %s7929_s4 = inlined_call_operand.vmem [shape: f32[1,8], index: 4, kind: input, shape index: {}]   ;;  %s7930_s5 = inlined_call_operand.vmem [shape: bf16[2,16,16,8], index: 5, kind: output, shape index: {}]  }
   0x1   :  { %s6138_s20 = smov 0   ;;  %s6140_s21 = smov 0  }
   0x2   :  { %s6142_s22 = smov 0  }
   0x3 LB: > { %s24_s23 = sadd.s32 1, %s6092_s20  ;;  %s27_s24 = sadd.s32 1, %s6096_s21  ;;  %s6100_s22 = sphi %s6142_s22, %s15_s22   ;;  %s6096_s21 = sphi %s6140_s21, %s7961_s21   ;;  %s6092_s20 = sphi %s6138_s20, %s7960_s20   ;;  %s6088_s19 = sphi %s6136_s19, %s7959_s19   ;;  %s6084_s18 = sphi %s6134_s18, %s7958_s18  }
   0x4   : > { %p25_p0 = scmp.ge.s32.totalorder %s24_s23, 2  ;;  %p5366_p1 = scmp.ge.s32.totalorder %s6100_s22, 1 }
   0x5   : > { %p201_p2 = scmp.lt.s32.totalorder %s6100_s22, 5 }
   0x6   : > { %s7963_s23 = smov (%p25_p0, %s24_s23), 0  ;;  %s7965_s24 = smov (!%p25_p0, %s27_s24), %s6096_s21 }
   0x7   : > { %p202_p3 = pnand %p5366_p1, %p201_p2  ;;  %p29_p4 = scmp.ge.s32.totalorder %s7965_s24, 2 }
   0x9   : > { %s7967_s24 = smov (%p29_p4, %s7965_s24), 0  ;;  %205 = sbr.rel (%p202_p3) target bundleno = 1254 (0x4e6), region = 40 }
   0xe   : > { %v275_v0 = vld [vmem:[%s7926_s1] sm:$0x3]  ;;  %vm592_vm0 = vcmask 1041408   ;;  %p234_p5 = scmp.lt.s32.totalorder %s6088_s19, 1  ;;  %s5368_s27 = sshll.u32 %s6084_s18, 3  ;;  %vm561_vm1 = vcmask 31744  }
   0xf   : > { %v736_v1 = vsel %vm592_vm0, %v275_v0, 0  ;;  %p242_p6 = scmp.lt.s32.totalorder %s5368_s27, 15  ;;  %s5951_s28 = smul.u32 96, %s6084_s18  ;;  %v5375_v2 = vld [vmem:[%s7926_s1 + $0x2] sm:$0x3]  ;;  %vm827_vm5 = vcmask 1042432  }
  0x10   : > { %6006 = vmatpush.bf16.msra.mxu3 %v736_v1  ;;  %s7969_s19 = smov (!%p234_p5, %s6088_s19), 1  ;;  %v594_v3 = vsel %vm592_vm0, %v5375_v2, 0  ;;  %745 = vmatpush.bf16.msra.mxu1 %v736_v1  ;;  %v5446_v4 = vld [vmem:[%s7926_s1 + $0x4] sm:$0x3]  ;;  %vm286_vm2 = vsmask.f32 3328 }
  0x11   : > { %s7971_s27 = smov (!%p242_p6, %s5368_s27), 15  ;;  %603 = vmatpush.bf16.msra.mxu0 %v594_v3  ;;  %s6008_s8 = smul.u32 240, %s7969_s19  ;;  %v963_v5 = vsel %vm592_vm0, %v5446_v4, 0  ;;  %vm287_vm3 = vsmask.f32 7440  ;;  %vm828_vm6 = vcmask 1046532  }
  0x12   : > { %s5370_s9 = sshll.u32 %s7969_s19, 5  ;;  %s5369_s10 = sshll.u32 %s7971_s27, 1  ;;  %6007 = vmatpush.bf16.msra.mxu2 %v963_v5  ;;  %vm6212_vm4 = vmor %vm286_vm2, %vm287_vm3  ;;  %v5479_v46 = vld [vmem:[%s7926_s1 + $0x6] sm:$0x3]  ;;  %vm3023_vm8 = vcmask 60416   ;;  %vm3031_vm12 = vcmask 57344  }
  0x13   : > { %s238_s13 = scalar_lea.vmem %s7925_s0, %s6008_s8  ;;  %s246_s14 = sadd.s32 %s5370_s9, %s5369_s10  ;;  %v1151_v50 = vsel %vm592_vm0, %v5479_v46, 0  ;;  %vm6250_vm7 = vmor %vm827_vm5, %vm828_vm6  ;;  %vm3024_vm9 = vsmask.f32 7938  ;;  %vm2820_vm11 = vsmask.f32 256 }
  0x14   : > { %s5371_s15 = sshll.u32 %s246_s14, 2  ;;  %s6183_s16 = scalar_lea.vmem %s238_s13, %s5951_s28  ;;  %1160 = vmatpush.bf16.msrb.mxu3 %v1151_v50  ;;  %vm7209_vm10 = vmand %vm3023_vm8, %vm3024_vm9  ;;  %vm2821_vm13 = vsmask.f32 4368 }
  0x15   : > { %972 = vmatpush.bf16.msrb.mxu0 %v963_v5  ;;  %s6188_s25 = scalar_lea.vmem %s7930_s5, %s5371_s15  ;;  %v5959_v6 = vld [vmem:[%s6183_s16 + $0x54] sm:$0xff]  ;;  %v255_v7 = vld [vmem:[%s6183_s16] sm:$0xf]  ;;  %v6193_v8 = vld [vmem:[%s6183_s16 + $0x4] sm:$0xf]  ;;  %p5747_p7 = scmp.ne.s32.totalorder %s6084_s18, 0 }
  0x16   : > { %v6196_v9 = vld [vmem:[%s6183_s16 + $0x8] sm:$0x1]  ;;  %v290_v10 = vshrl.u32 %v255_v7, 16  ;;  %v293_v11 = vshll.u32 %v255_v7, 16  ;;  %v299_v12 = vshll.u32 %v6193_v8, 16  ;;  %v303_v13 = vshrl.u32 %v6193_v8, 16  ;;  %5433 = vmatmul.msk.bf16.vlgmr.msra.gmra.mxu3 %vm561_vm1, %v5959_v6  ;;  %vm7224_vm14 = vmand %vm3031_vm12, %vm2820_vm11 }
  0x17   : > { %v309_v14 = vshll.u32 %v6196_v9, 16  ;;  %v5952_v15 = vld [vmem:[%s6183_s16] sm:$0xff]  ;;  %v257_v16 = vld [vmem:[%s6183_s16 + $0xc] sm:$0xf]  ;;  %v6205_v21 = vld [vmem:[%s6183_s16 + $0x10] sm:$0xf] }
  0x18   : > { %v292_v17 = vrot.slane %v290_v10, 4  ;;  %v295_v18 = vrot.slane %v293_v11, 5  ;;  %v301_v19 = vrot.slane %v299_v12, 5  ;;  %v305_v20 = vrot.slane %v303_v13, 4  ;;  %5426 = vmatmul.msk.bf16.vlgmr.msra.gmra.mxu1 %vm561_vm1, %v5952_v15  ;;  %v6217_v36 = vld [vmem:[%s6183_s16 + $0x14] sm:$0x1]  ;;  %vm7233_vm15 = vmor %vm2820_vm11, %vm2821_vm13 }
  0x19   : > { %v314_v22 = vshrl.u32 %v257_v16, 16  ;;  %v317_v23 = vshll.u32 %v257_v16, 16  ;;  %v323_v24 = vshll.u32 %v6205_v21, 16  ;;  %v311_v27 = vrot.slane %v309_v14, 5  ;;  %v259_v45 = vld [vmem:[%s6183_s16 + $0x18] sm:$0xf] }
  0x1a   : > { %v296_v25 = vor.u32 %v295_v18, %v292_v17  ;;  %v306_v26 = vor.u32 %v305_v20, %v301_v19  ;;  %v327_v28 = vshrl.u32 %v6205_v21, 16  ;;  %v333_v43 = vshll.u32 %v6217_v36, 16  ;;  %v5960_v47 = vld [vmem:[%s6183_s16 + $0x60] sm:$0xff]  ;;  %v6231_v49 = vld [vmem:[%s6183_s16 + $0x1c] sm:$0xf]  ;;  %v5953_v53 = vld [vmem:[%s6183_s16 + $0xc] sm:$0xff] }
  0x1b   : > { %v316_v30 = vrot.slane %v314_v22, 4  ;;  %v319_v31 = vrot.slane %v317_v23, 5  ;;  %v325_v34 = vrot.slane %v323_v24, 5  ;;  %v338_v54 = vshrl.u32 %v259_v45, 16  ;;  %v6236_v56 = vld [vmem:[%s6183_s16 + $0x28] sm:$0xf] }
  0x1c   : > { %v297_v32 = vrot.slane %v296_v25, 4  ;;  %v307_v33 = vrot.slane %v306_v26, 4  ;;  %v329_v35 = vrot.slane %v327_v28, 4  ;;  %v335_v52 = vrot.slane %v333_v43, 5  ;;  %v6245_v61 = vld [vmem:[%s6183_s16 + $0x2c] sm:$0x1] }
  0x1d   : > { %v320_v41 = vor.u32 %v319_v31, %v316_v30  ;;  %v341_v55 = vshll.u32 %v259_v45, 16  ;;  %v347_v57 = vshll.u32 %v6231_v49, 16  ;;  %v351_v58 = vshrl.u32 %v6231_v49, 16  ;;  %v800_v62 = vld [vmem:[%s6183_s16 + $0x24] sm:$0xe]  ;;  %v5961_v23 = vld [vmem:[%s6183_s16 + $0x6c] sm:$0xff] }
  0x1e   : > { %v302_v37 = vsel %vm6212_vm4, %v297_v32, %v301_v19  ;;  %v312_v38 = vsel %vm6212_vm4, %v307_v33, %v311_v27  ;;  %v330_v42 = vor.u32 %v329_v35, %v325_v34  ;;  %v853_v59 = vrot.slane %v6236_v56, 5  ;;  %v6261_v16 = vld [vmem:[%s6183_s16 + $0x20] sm:$0x1]  ;;  %v261_v27 = vld [vmem:[%s6183_s16 + $0x24] sm:$0xf]  ;;  %v5954_v28 = vld [vmem:[%s6183_s16 + $0x18] sm:$0xff] }
  0x1f   : > { %v531_v39 = vunpack.c.l.b16 %v302_v37  ;;  %v532_v40 = vunpack.c.l.b16 %v312_v38  ;;  %v321_v48 = vrot.slane %v320_v41, 4  ;;  %v5439_v1 = vrot.slane %v800_v62, 9  ;;  %v264_v30 = vld [vmem:[%s6183_s16 + $0x34] sm:$0xf]  ;;  %v6277_v38 = vld [vmem:[%s6183_s16 + $0x38] sm:$0x1] }
  0x20   : > { %v331_v51 = vrot.slane %v330_v42, 4  ;;  %v855_v2 = vrot.slane %v853_v59, 4  ;;  %v856_v3 = vrot.slane %v6245_v61, 5  ;;  %v340_v4 = vrot.slane %v338_v54, 4  ;;  %v5962_v62 = vld [vmem:[%s6183_s16 + $0xc] sm:$0xff] }
  0x21   : > { %v551_v44 = vpack.c.b16 %v532_v40, %v531_v39  ;;  %v326_v60 = vsel %vm6212_vm4, %v321_v48, %v325_v34  ;;  %v343_v5 = vrot.slane %v341_v55, 5  ;;  %v349_v6 = vrot.slane %v347_v57, 5  ;;  %v801_v39 = vld [vmem:[%s6183_s16 + $0x30] sm:$0xe] }
  0x22   : > { %v336_v63 = vsel %vm6212_vm4, %v331_v51, %v335_v52  ;;  %v353_v7 = vrot.slane %v351_v58, 4  ;;  %v854_v10 = vsel %vm6250_vm7, %v5439_v1, %v853_v59  ;;  %v857_v11 = vsel %vm6250_vm7, %v855_v2, %v856_v3  ;;  %v5955_v3 = vld [vmem:[%s6183_s16 + $0x24] sm:$0xff] }
  0x23   : > { %5376 = vmatmul.msk.bf16.vlgmr.msra.gmra.mxu0 %vm561_vm1, %v551_v44  ;;  %v533_v12 = vunpack.c.l.b16 %v326_v60  ;;  %v534_v13 = vunpack.c.l.b16 %v336_v63  ;;  %v908_v14 = vunpack.c.l.b16 %v854_v10  ;;  %v909_v15 = vunpack.c.l.b16 %v857_v11  ;;  %v263_v60 = vld [vmem:[%s6183_s16 + $0x30] sm:$0xf] }
  0x24   : > { %v344_v19 = vor.u32 %v343_v5, %v340_v4  ;;  %v354_v20 = vor.u32 %v353_v7, %v349_v6  ;;  %v357_v22 = vshll.u32 %v6261_v16, 16  ;;  %v362_v31 = vshrl.u32 %v261_v27, 16 }
  0x25   : > { %v925_v17 = vpack.c.b16 %v909_v15, %v908_v14  ;;  %v552_v18 = vpack.c.b16 %v534_v13, %v533_v12  ;;  %v860_v32 = vrot.slane %v264_v30, 5  ;;  %v365_v35 = vshll.u32 %v261_v27, 16  ;;  %v6298_v12 = vld [vmem:[%s6183_s16 + $0x44] sm:$0x1]  ;;  %v802_v13 = vld [vmem:[%s6183_s16 + $0x3c] sm:$0xe] }
  0x26   : > { %5434 = vmatmul.msk.bf16.gmra.mxu3 %vm561_vm1, %v5960_v47  ;;  %v345_v24 = vrot.slane %v344_v19, 4  ;;  %v355_v25 = vrot.slane %v354_v20, 4  ;;  %v359_v26 = vrot.slane %v357_v22, 5  ;;  %v371_v37 = vshll.u32 %v6236_v56, 16 }
  0x27   : > { %5450 = vmatmul.msk.bf16.vlgmr.msra.gmra.mxu2 %vm561_vm1, %v925_v17  ;;  %v375_v40 = vshrl.u32 %v6236_v56, 16  ;;  %v5440_v41 = vrot.slane %v801_v39, 9  ;;  %v862_v42 = vrot.slane %v860_v32, 4  ;;  %v863_v43 = vrot.slane %v6277_v38, 5 }
  0x28   : > { %5427 = vmatmul.msk.bf16.gmra.mxu1 %vm561_vm1, %v5953_v53  ;;  %v350_v33 = vsel %vm6212_vm4, %v345_v24, %v349_v6  ;;  %v360_v34 = vsel %vm6212_vm4, %v355_v25, %v359_v26  ;;  %v364_v48 = vrot.slane %v362_v31, 4  ;;  %v367_v50 = vrot.slane %v365_v35, 5  ;;  %v266_v6 = vld [vmem:[%s6183_s16 + $0x40] sm:$0xf] }
  0x29   : > { %v535_v44 = vunpack.c.l.b16 %v350_v33  ;;  %v536_v45 = vunpack.c.l.b16 %v360_v34  ;;  %v861_v46 = vsel %vm6250_vm7, %v5440_v41, %v860_v32  ;;  %v864_v47 = vsel %vm6250_vm7, %v862_v42, %v863_v43  ;;  %v5963_v41 = vld [vmem:[%s6183_s16 + $0x18] sm:$0xff] }
  0x2a   : > { %v910_v51 = vunpack.c.l.b16 %v861_v46  ;;  %v911_v52 = vunpack.c.l.b16 %v864_v47  ;;  %v373_v53 = vrot.slane %v371_v37, 5  ;;  %v377_v54 = vrot.slane %v375_v40, 4  ;;  %v265_v42 = vld [vmem:[%s6183_s16 + $0x3c] sm:$0xf] }
  0x2b   : > { %v553_v56 = vpack.c.b16 %v536_v45, %v535_v44  ;;  %v368_v57 = vor.u32 %v367_v50, %v364_v48  ;;  %v381_v59 = vshll.u32 %v6245_v61, 16  ;;  %v386_v4 = vshrl.u32 %v263_v60, 16  ;;  %v5956_v44 = vld [vmem:[%s6183_s16 + $0x30] sm:$0xff]  ;;  %v268_v45 = vld [vmem:[%s6183_s16 + $0x4c] sm:$0xf] }
  0x2c   : > { %v926_v55 = vpack.c.b16 %v911_v52, %v910_v51  ;;  %v378_v58 = vor.u32 %v377_v54, %v373_v53  ;;  %v389_v5 = vshll.u32 %v263_v60, 16  ;;  %v395_v7 = vshll.u32 %v264_v30, 16  ;;  %v6322_v52 = vld [vmem:[%s6183_s16 + $0x50] sm:$0x1] }
  0x2d   : > { %v369_v63 = vrot.slane %v368_v57, 4  ;;  %v383_v2 = vrot.slane %v381_v59, 5  ;;  %v399_v10 = vshrl.u32 %v264_v30, 16  ;;  %v867_v11 = vrot.slane %v266_v6, 5 }
  0x2e   : > { %v379_v1 = vrot.slane %v378_v58, 4  ;;  %v5441_v15 = vrot.slane %v802_v13, 9  ;;  %v388_v19 = vrot.slane %v386_v4, 4  ;;  %v391_v20 = vrot.slane %v389_v5, 5 }
  0x2f   : > { %v374_v61 = vsel %vm6212_vm4, %v369_v63, %v373_v53  ;;  %v869_v17 = vrot.slane %v867_v11, 4  ;;  %v397_v22 = vrot.slane %v395_v7, 5  ;;  %v405_v34 = vshll.u32 %v6277_v38, 16  ;;  %v803_v53 = vld [vmem:[%s6183_s16 + $0x48] sm:$0xe] }
  0x30   : > { %v384_v14 = vsel %vm6212_vm4, %v379_v1, %v383_v2  ;;  %v868_v24 = vsel %vm6250_vm7, %v5441_v15, %v867_v11  ;;  %v537_v26 = vunpack.c.l.b16 %v374_v61  ;;  %v392_v31 = vor.u32 %v391_v20, %v388_v19  ;;  %v5964_v61 = vld [vmem:[%s6183_s16 + $0x24] sm:$0xff]  ;;  %v270_v19 = vld [vmem:[%s6183_s16 + $0x58] sm:$0xf] }
  0x31   : > { %v538_v27 = vunpack.c.l.b16 %v384_v14  ;;  %v407_v40 = vrot.slane %v405_v34, 5  ;;  %v410_v46 = vshrl.u32 %v265_v42, 16  ;;  %v413_v47 = vshll.u32 %v265_v42, 16 }
  0x32   : > { %v393_v37 = vrot.slane %v392_v31, 4  ;;  %v874_v48 = vrot.slane %v268_v45, 5  ;;  %v419_v50 = vshll.u32 %v266_v6, 16  ;;  %v423_v51 = vshrl.u32 %v266_v6, 16 }
  0x33   : > { %5377 = vmatmul.msk.bf16.gmra.mxu0 %vm561_vm1, %v552_v18  ;;  %v870_v18 = vrot.slane %v6298_v12, 5  ;;  %v554_v35 = vpack.c.b16 %v538_v27, %v537_v26  ;;  %v5442_v54 = vrot.slane %v803_v53, 9  ;;  %v412_v59 = vrot.slane %v410_v46, 4  ;;  %v6344_v26 = vld [vmem:[%s6183_s16 + $0x5c] sm:$0x1] }
  0x34   : > { %v398_v43 = vsel %vm6212_vm4, %v393_v37, %v397_v22  ;;  %v415_v60 = vrot.slane %v413_v47, 5  ;;  %v421_v1 = vrot.slane %v419_v50, 5  ;;  %v425_v2 = vrot.slane %v423_v51, 4  ;;  %v804_v27 = vld [vmem:[%s6183_s16 + $0x54] sm:$0xe] }
  0x35   : > { %v871_v25 = vsel %vm6250_vm7, %v869_v17, %v870_v18  ;;  %v539_v57 = vunpack.c.l.b16 %v398_v43  ;;  %v429_v11 = vshll.u32 %v6298_v12, 16  ;;  %v267_v17 = vld [vmem:[%s6183_s16 + $0x48] sm:$0xf]  ;;  %v5957_v18 = vld [vmem:[%s6183_s16 + $0x3c] sm:$0xff]  ;;  %v269_v50 = vld [vmem:[%s6183_s16 + $0x54] sm:$0xf] }
  0x36   : > { %5435 = vmatmul.msk.bf16.gmra.mxu3 %vm561_vm1, %v5961_v23  ;;  %v401_v23 = vrot.slane %v399_v10, 4  ;;  %v913_v30 = vunpack.c.l.b16 %v871_v25  ;;  %v416_v7 = vor.u32 %v415_v60, %v412_v59  ;;  %v426_v10 = vor.u32 %v425_v2, %v421_v1  ;;  %v5965_v51 = vld [vmem:[%s6183_s16 + $0x30] sm:$0xff]  ;;  %v272_v59 = vld [vmem:[%s6183_s16 + $0x64] sm:$0xf]  ;;  %v805_v2 = vld [vmem:[%s6183_s16 + $0x60] sm:$0xe] }
  0x37   : > { %5451 = vmatmul.msk.bf16.gmra.mxu2 %vm561_vm1, %v926_v55  ;;  %v876_v55 = vrot.slane %v874_v48, 4  ;;  %v431_v15 = vrot.slane %v429_v11, 5  ;;  %v434_v20 = vshrl.u32 %v267_v17, 16  ;;  %v443_v25 = vshll.u32 %v268_v45, 16 }
  0x38   : > { %5428 = vmatmul.msk.bf16.gmra.mxu1 %vm561_vm1, %v5954_v28  ;;  %v912_v28 = vunpack.c.l.b16 %v868_v24  ;;  %v402_v33 = vor.u32 %v401_v23, %v397_v22  ;;  %v417_v13 = vrot.slane %v416_v7, 4  ;;  %v427_v14 = vrot.slane %v426_v10, 4 }
  0x39   : > { %v881_v22 = vrot.slane %v270_v19, 5  ;;  %v437_v24 = vshll.u32 %v267_v17, 16  ;;  %v445_v43 = vrot.slane %v443_v25, 5  ;;  %v467_v60 = vshll.u32 %v270_v19, 16 }
  0x3a   : > { %v927_v32 = vpack.c.b16 %v913_v30, %v912_v28  ;;  %v403_v39 = vrot.slane %v402_v33, 4  ;;  %v422_v12 = vsel %vm6212_vm4, %v417_v13, %v421_v1  ;;  %v432_v23 = vsel %vm6212_vm4, %v427_v14, %v431_v15  ;;  %v6364_v1 = vld [vmem:[%s6183_s16 + $0x68] sm:$0x1] }
  0x3b   : > { %v447_v28 = vshrl.u32 %v268_v45, 16  ;;  %v5443_v30 = vrot.slane %v804_v27, 9  ;;  %v883_v31 = vrot.slane %v881_v22, 4  ;;  %v541_v33 = vunpack.c.l.b16 %v422_v12 }
  0x3c   : > { %v408_v38 = vsel %vm6212_vm4, %v403_v39, %v407_v40  ;;  %v542_v34 = vunpack.c.l.b16 %v432_v23  ;;  %v436_v39 = vrot.slane %v434_v20, 4  ;;  %v439_v40 = vrot.slane %v437_v24, 5 }
  0x3d   : > { %v540_v58 = vunpack.c.l.b16 %v408_v38  ;;  %v469_v11 = vrot.slane %v467_v60, 5  ;;  %v477_v23 = vshll.u32 %v6344_v26, 16 }
  0x3e   : > { %v556_v38 = vpack.c.b16 %v542_v34, %v541_v33  ;;  %v440_v46 = vor.u32 %v439_v40, %v436_v39  ;;  %v274_v33 = vld [vmem:[%s6183_s16 + $0x70] sm:$0xf]  ;;  %v491_v39 = vshll.u32 %v272_v59, 16  ;;  %v495_v40 = vshrl.u32 %v272_v59, 16 }
  0x3f   : > { %v555_v6 = vpack.c.b16 %v540_v58, %v539_v57  ;;  %v458_v57 = vshrl.u32 %v269_v50, 16  ;;  %v461_v58 = vshll.u32 %v269_v50, 16 }
  0x40   : > { %v441_v53 = vrot.slane %v440_v46, 4 }
  0x41   : > { %v460_v7 = vrot.slane %v458_v57, 4  ;;  %v463_v10 = vrot.slane %v461_v58, 5 }
  0x43   : > { %5378 = vmatmul.msk.bf16.gmra.mxu0 %vm561_vm1, %v553_v56  ;;  %v877_v56 = vrot.slane %v6322_v52, 5  ;;  %v464_v20 = vor.u32 %v463_v10, %v460_v7 }
  0x45   : > { %v878_v63 = vsel %vm6250_vm7, %v876_v55, %v877_v56  ;;  %v5958_v56 = vld [vmem:[%s6183_s16 + $0x48] sm:$0xff]  ;;  %v465_v25 = vrot.slane %v464_v20, 4 }
  0x46   : > { %5520 = vmatmul.msk.bf16.vlgmr.msrb.gmra.mxu3 %vm561_vm1, %v5962_v62  ;;  %v875_v62 = vsel %vm6250_vm7, %v5442_v54, %v874_v48  ;;  %v915_v4 = vunpack.c.l.b16 %v878_v63  ;;  %v453_v48 = vshll.u32 %v6322_v52, 16  ;;  %v888_v63 = vrot.slane %v272_v59, 5 }
  0x47   : > { %5452 = vmatmul.msk.bf16.gmra.mxu2 %vm561_vm1, %v927_v32  ;;  %v884_v32 = vrot.slane %v6344_v26, 5  ;;  %v446_v52 = vsel %vm6212_vm4, %v441_v53, %v445_v43  ;;  %v493_v53 = vrot.slane %v491_v39, 5 }
  0x48   : > { %5429 = vmatmul.msk.bf16.gmra.mxu1 %vm561_vm1, %v5955_v3  ;;  %v914_v3 = vunpack.c.l.b16 %v875_v62  ;;  %v455_v55 = vrot.slane %v453_v48, 5  ;;  %v471_v62 = vshrl.u32 %v270_v19, 16  ;;  %v543_v15 = vunpack.c.l.b16 %v446_v52 }
  0x49   : > { %v885_v37 = vsel %vm6250_vm7, %v883_v31, %v884_v32  ;;  %v271_v31 = vld [vmem:[%s6183_s16 + $0x60] sm:$0xf]  ;;  %v470_v32 = vsel %vm6212_vm4, %v465_v25, %v469_v11 }
  0x4a   : > { %v928_v5 = vpack.c.b16 %v915_v4, %v914_v3  ;;  %v917_v42 = vunpack.c.l.b16 %v885_v37  ;;  %v5444_v4 = vrot.slane %v805_v2, 9  ;;  %v482_v26 = vshrl.u32 %v271_v31, 16 }
  0x4b   : > { %v895_v37 = vrot.slane %v274_v33, 5 }
  0x4c   : > { %v889_v13 = vsel %vm6250_vm7, %v5444_v4, %v888_v63  ;;  %v273_v4 = vld [vmem:[%s6183_s16 + $0x6c] sm:$0xf] }
  0x4d   : > { %v506_v10 = vshrl.u32 %v273_v4, 16 }
  0x53   : > { %5379 = vmatmul.msk.bf16.gmra.mxu0 %vm561_vm1, %v554_v35  ;;  %v882_v35 = vsel %vm6250_vm7, %v5443_v30, %v881_v22  ;;  %v5966_v30 = vld [vmem:[%s6183_s16 + $0x3c] sm:$0xff] }
  0x56   : > { %5521 = vmatmul.msk.bf16.gmra.mxu3 %vm561_vm1, %v5963_v41  ;;  %v916_v41 = vunpack.c.l.b16 %v882_v35  ;;  %v485_v35 = vshll.u32 %v271_v31, 16  ;;  %v5968_v31 = vld [vmem:[%s6183_s16 + $0x54] sm:$0xff] }
  0x57   : > { %5453 = vmatmul.msk.bf16.gmra.mxu2 %vm561_vm1, %v928_v5  ;;  %v890_v5 = vrot.slane %v888_v63, 4  ;;  %v5967_v63 = vld [vmem:[%s6183_s16 + $0x48] sm:$0xff] }
  0x58   : > { %5430 = vmatmul.msk.bf16.gmra.mxu1 %vm561_vm1, %v5956_v44  ;;  %v449_v44 = vrot.slane %v447_v28, 4  ;;  %v929_v45 = vpack.c.b16 %v917_v42, %v916_v41  ;;  %v479_v28 = vrot.slane %v477_v23, 5  ;;  %v285_v41 = vld [vmem:[%s6183_s16 + $0x74] sm:$0x1]  ;;  %v806_v42 = vld [vmem:[%s6183_s16 + $0x6c] sm:$0xe] }
  0x59   : > { %v487_v48 = vrot.slane %v485_v35, 5 }
  0x5a   : > { %v450_v47 = vor.u32 %v449_v44, %v445_v43  ;;  %v5445_v43 = vrot.slane %v806_v42, 9  ;;  %v897_v44 = vrot.slane %v895_v37, 4 }
  0x5c   : > { %v451_v54 = vrot.slane %v450_v47, 4  ;;  %v484_v47 = vrot.slane %v482_v26, 4  ;;  %v896_v50 = vsel %vm6250_vm7, %v5445_v43, %v895_v37 }
  0x5e   : > { %v456_v3 = vsel %vm6212_vm4, %v451_v54, %v455_v55  ;;  %v497_v54 = vrot.slane %v495_v40, 4  ;;  %v920_v55 = vunpack.c.l.b16 %v896_v50  ;;  %v488_v59 = vor.u32 %v487_v48, %v484_v47  ;;  %v797_v50 = vld [vmem:[%s6183_s16] sm:$0xe] }
  0x5f   : > { %v544_v17 = vunpack.c.l.b16 %v456_v3  ;;  %v832_v47 = vrot.slane %v6193_v8, 5 }
  0x60   : > { %v498_v60 = vor.u32 %v497_v54, %v493_v53  ;;  %v489_v52 = vrot.slane %v488_v59, 4  ;;  %v835_v54 = vrot.slane %v6196_v9, 5 }
  0x61   : > { %v557_v24 = vpack.c.b16 %v544_v17, %v543_v15  ;;  %v508_v17 = vrot.slane %v506_v10, 4 }
  0x62   : > { %v499_v2 = vrot.slane %v498_v60, 4 }
  0x63   : > { %5380 = vmatmul.msk.bf16.gmra.mxu0 %vm561_vm1, %v555_v6  ;;  %v891_v6 = vrot.slane %v6364_v1, 5 }
  0x65   : > { %v892_v14 = vsel %vm6250_vm7, %v890_v5, %v891_v6  ;;  %v494_v6 = vsel %vm6212_vm4, %v489_v52, %v493_v53  ;;  %v5969_v53 = vld [vmem:[%s6183_s16 + $0x60] sm:$0xff] }
  0x66   : > { %5522 = vmatmul.msk.bf16.gmra.mxu3 %vm561_vm1, %v5964_v61  ;;  %v473_v61 = vrot.slane %v471_v62, 4  ;;  %v919_v19 = vunpack.c.l.b16 %v892_v14  ;;  %v501_v62 = vshll.u32 %v6364_v1, 16  ;;  %v509_v1 = vshll.u32 %v273_v4, 16 }
  0x67   : > { %5454 = vmatmul.msk.bf16.gmra.mxu2 %vm561_vm1, %v929_v45  ;;  %v898_v45 = vrot.slane %v285_v41, 5  ;;  %v547_v14 = vunpack.c.l.b16 %v494_v6  ;;  %v839_v4 = vrot.slane %v6205_v21, 5 }
  0x68   : > { %5431 = vmatmul.msk.bf16.gmra.mxu1 %vm561_vm1, %v5957_v18  ;;  %v918_v18 = vunpack.c.l.b16 %v889_v13  ;;  %v474_v12 = vor.u32 %v473_v61, %v469_v11  ;;  %v503_v3 = vrot.slane %v501_v62, 5  ;;  %v515_v11 = vshll.u32 %v274_v33, 16 }
  0x69   : > { %v519_v61 = vshrl.u32 %v274_v33, 16 }
  0x6a   : > { %v930_v22 = vpack.c.b16 %v919_v19, %v918_v18  ;;  %v475_v27 = vrot.slane %v474_v12, 4  ;;  %v504_v7 = vsel %vm6212_vm4, %v499_v2, %v503_v3  ;;  %v511_v18 = vrot.slane %v509_v1, 5  ;;  %v5970_v1 = vld [vmem:[%s6183_s16 + $0x6c] sm:$0xff] }
  0x6b   : > { %v548_v15 = vunpack.c.l.b16 %v504_v7  ;;  %v517_v19 = vrot.slane %v515_v11, 5  ;;  %v521_v20 = vrot.slane %v519_v61, 4  ;;  %v798_v7 = vld [vmem:[%s6183_s16 + $0xc] sm:$0xe]  ;;  %v841_v61 = vrot.slane %v839_v4, 4 }
  0x6c   : > { %v480_v34 = vsel %vm6212_vm4, %v475_v27, %v479_v28  ;;  %v525_v27 = vshll.u32 %v285_v41, 16  ;;  %v5437_v11 = vrot.slane %v798_v7, 9 }
  0x6d   : > { %v546_v46 = vunpack.c.l.b16 %v480_v34  ;;  %v559_v12 = vpack.c.b16 %v548_v15, %v547_v14  ;;  %v522_v25 = vor.u32 %v521_v20, %v517_v19  ;;  %v842_v14 = vrot.slane %v6217_v36, 5  ;;  %v5676_v20 = vld [vmem:[%s6183_s16 + $0x1c] sm:$0xf] }
  0x6e   : > { %v527_v26 = vrot.slane %v525_v27, 5  ;;  %v840_v21 = vsel %vm6250_vm7, %v5437_v11, %v839_v4  ;;  %v5624_v27 = vld [vmem:[%s7926_s1 + $0xc] sm:$0x3]  ;;  %v5677_v4 = vld [vmem:[%s6183_s16 + $0x20] sm:$0x1] }
  0x6f   : > { %v523_v34 = vrot.slane %v522_v25, 4  ;;  %v904_v36 = vunpack.c.l.b16 %v840_v21  ;;  %v5705_v25 = vld [vmem:[%s7926_s1 + $0xe] sm:$0x3] }
  0x70   : > { %v5530_v21 = vld [vmem:[%s6183_s16 + $0xc] sm:$0xf] }
  0x71   : > { %v528_v41 = vsel %vm6212_vm4, %v523_v34, %v527_v26  ;;  %v2007_v34 = vsel %vm592_vm0, %v5624_v27, 0  ;;  %v2128_v26 = vshll.u32 %v5676_v20, 16  ;;  %v2138_v27 = vshll.u32 %v5677_v4, 16 }
  0x72   : > { %2016 = vmatpush.bf16.msrb.mxu2 %v2007_v34 }
  0x73   : > { %5381 = vmatmul.msk.bf16.gmra.mxu0 %vm561_vm1, %v556_v38  ;;  %v545_v38 = vunpack.c.l.b16 %v470_v32  ;;  %v5560_v32 = vld [vmem:[%s7926_s1 + $0x8] sm:$0x3] }
  0x74   : > { %v1565_v35 = vsel %vm592_vm0, %v5560_v32, 0 }
  0x75   : > { %v558_v58 = vpack.c.b16 %v546_v46, %v545_v38  ;;  %1574 = vmatpush.bf16.msra.mxu0 %v1565_v35  ;;  %v2132_v35 = vshrl.u32 %v5676_v20, 16 }
  0x76   : > { %5523 = vmatmul.msk.bf16.gmra.mxu3 %vm561_vm1, %v5965_v51  ;;  %v899_v51 = vsel %vm6250_vm7, %v897_v44, %v898_v45  ;;  %v550_v44 = vunpack.c.l.b16 %v528_v41  ;;  %v5571_v41 = vld [vmem:[%s6183_s16 + $0xc] sm:$0xe] }
  0x77   : > { %5455 = vmatmul.msk.bf16.gmra.mxu2 %vm561_vm1, %v930_v22 }
  0x78   : > { %5432 = vmatmul.msk.bf16.gmra.mxu1 %vm561_vm1, %v5958_v56  ;;  %v921_v56 = vunpack.c.l.b16 %v899_v51 }
  0x7a   : > { %v931_v57 = vpack.c.b16 %v921_v56, %v920_v55  ;;  %v5436_v55 = vrot.slane %v797_v50, 9  ;;  %v834_v56 = vrot.slane %v832_v47, 4 }
  0x7c   : > { %v833_v59 = vsel %vm6250_vm7, %v5436_v55, %v832_v47  ;;  %v836_v60 = vsel %vm6250_vm7, %v834_v56, %v835_v54  ;;  %v5972_v54 = vld [vmem:[%s6183_s16 + $0x18] sm:$0xff] }
  0x7d   : > { %v902_v9 = vunpack.c.l.b16 %v833_v59  ;;  %v5591_v59 = vld [vmem:[%s7926_s1 + $0xa] sm:$0x3] }
  0x83   : > { %5382 = vmatmul.msk.bf16.gmra.mxu0 %vm561_vm1, %v557_v24  ;;  %v512_v24 = vor.u32 %v511_v18, %v508_v17  ;;  %v843_v18 = vsel %vm6250_vm7, %v841_v61, %v842_v14 }
  0x85   : > { %v513_v33 = vrot.slane %v512_v24, 4  ;;  %v905_v24 = vunpack.c.l.b16 %v843_v18 }
  0x86   : > { %5524 = vmatmul.msk.bf16.gmra.mxu3 %vm561_vm1, %v5966_v30 }
  0x87   : > { %5456 = vmatmul.msk.bf16.gmra.mxu2 %vm561_vm1, %v931_v57  ;;  %v518_v40 = vsel %vm6212_vm4, %v513_v33, %v517_v19  ;;  %v5675_v19 = vld [vmem:[%s6183_s16 + $0x18] sm:$0xf]  ;;  %v2421_v33 = vsel %vm592_vm0, %v5705_v25, 0  ;;  %v923_v50 = vpack.c.b16 %v905_v24, %v904_v36 }
  0x88   : > { %v549_v43 = vunpack.c.l.b16 %v518_v40  ;;  %v2122_v32 = vshll.u32 %v5675_v19, 16  ;;  %2430 = vmatpush.bf16.msra.mxu3 %v2421_v33  ;;  %v6485_v40 = vld [vmem:[%s6183_s16 + $0x14] sm:$0x1] }
  0x89   : > { %v1691_v47 = vrot.slane %v6485_v40, 5 }
  0x8a   : > { %v560_v38 = vpack.c.b16 %v550_v44, %v549_v43  ;;  %v846_v44 = vrot.slane %v6231_v49, 5  ;;  %v2124_v56 = vrot.slane %v2122_v32, 5  ;;  %v2134_v49 = vrot.slane %v2132_v35, 4 }
  0x8b   : > { %v1263_v32 = vshrl.u32 %v5530_v21, 16 }
  0x8c   : > { %v848_v14 = vrot.slane %v846_v44, 4 }
  0x93   : > { %5383 = vmatmul.msk.bf16.gmra.mxu0 %vm561_vm1, %v558_v58 }
  0x95   : > { %v747_v5 = vpop.f32.mrf.mxu1 }
  0x96   : > { %5525 = vmatmul.msk.bf16.gmra.mxu3 %vm561_vm1, %v5967_v63  ;;  %v903_v63 = vunpack.c.l.b16 %v836_v60  ;;  %v6498_v60 = vrot.slane %v2128_v26, 5 }
  0x97   : > { %5665 = vmatmul.msk.bf16.vlgmr.msrb.gmra.mxu2 %vm561_vm1, %v5972_v54  ;;  %v5678_v54 = vld [vmem:[%s6183_s16 + $0x24] sm:$0xf] }
  0x98   : > { %v922_v2 = vpack.c.b16 %v903_v63, %v902_v9  ;;  %v2135_v25 = vor.u32 %v2134_v49, %v6498_v60  ;;  %v2146_v4 = vshll.u32 %v5678_v54, 16 }
  0x99   : > { %v6402_v13 = vpop.f32.mrf.mxu3 }
  0x9d   : > { %v6404_v22 = vpop.f32.mrf.mxu1 }
  0xa0   : > { %v605_v23 = vpop.f32.mrf.mxu0 }
  0xa1   : > { %v6406_v28 = vadd.f32 %v747_v5, %v605_v23  ;;  %v6408_v30 = vpop.f32.mrf.mxu3 }
  0xa3   : > { %5384 = vmatmul.msk.bf16.gmra.mxu0 %vm561_vm1, %v559_v12 }
  0xa5   : > { %v752_v37 = vpop.f32.mrf.mxu1 }
  0xa6   : > { %5526 = vmatmul.msk.bf16.gmra.mxu3 %vm561_vm1, %v5968_v31  ;;  %v2119_v31 = vshrl.u32 %v5675_v19, 16 }
  0xa8   : > { %v6417_v39 = vpop.f32.mrf.mxu0  ;;  %v2121_v55 = vrot.slane %v2119_v31, 4 }
  0xa9   : > { %v6423_v42 = vpop.f32.mrf.mxu3 }
  0xaa   : > { %v6436_v58 = vpop.f32.mrf.mxu2  ;;  %v2125_v20 = vor.u32 %v2124_v56, %v2121_v55  ;;  %v1265_v56 = vrot.slane %v1263_v32, 4  ;;  %v5973_v32 = vld [vmem:[%s6183_s16 + $0x24] sm:$0xff] }
  0xab   : > { %5666 = vmatmul.msk.bf16.gmra.mxu2 %vm561_vm1, %v5973_v32 }
  0xad   : > { %v6425_v45 = vpop.f32.mrf.mxu1 }
  0xb0   : > { %v610_v46 = vpop.f32.mrf.mxu0 }
  0xb1   : > { %v6428_v48 = vadd.f32 %v752_v37, %v610_v46  ;;  %v6431_v51 = vpop.f32.mrf.mxu3  ;;  %v6482_v37 = vld [vmem:[%s6183_s16 + $0x10] sm:$0xf] }
  0xb2   : > { %v6450_v5 = vpop.f32.mrf.mxu2  ;;  %v1688_v46 = vrot.slane %v6482_v37, 5 }
  0xb3   : > { %5385 = vmatmul.msk.bf16.gmra.mxu0 %vm561_vm1, %v560_v38  ;;  %v5581_v38 = vrot.slane %v5571_v41, 9  ;;  %v1272_v41 = vshll.u32 %v6482_v37, 16 }
  0xb4   : > { %v1690_v63 = vrot.slane %v1688_v46, 4 }
  0xb5   : > { %v757_v57 = vpop.f32.mrf.mxu1  ;;  %v1689_v9 = vsel %vm6250_vm7, %v5581_v38, %v1688_v46  ;;  %v1276_v38 = vshrl.u32 %v6482_v37, 16  ;;  %v2126_v46 = vrot.slane %v2125_v20, 4  ;;  %v6537_v37 = vrot.slane %v1272_v41, 5 }
  0xb6   : > { %5527 = vmatmul.msk.bf16.gmra.mxu3 %vm561_vm1, %v5969_v53  ;;  %v799_v53 = vld [vmem:[%s6183_s16 + $0x18] sm:$0xe]  ;;  %v1758_v7 = vunpack.c.l.b16 %v1689_v9  ;;  %v1692_v18 = vsel %vm6250_vm7, %v1690_v63, %v1691_v47 }
  0xb7   : > { %v5438_v61 = vrot.slane %v799_v53, 9  ;;  %v1759_v36 = vunpack.c.l.b16 %v1692_v18  ;;  %v2140_v53 = vrot.slane %v2138_v27, 5  ;;  %v1278_v9 = vrot.slane %v1276_v38, 4 }
  0xb8   : > { %v6439_v8 = vpop.f32.mrf.mxu0  ;;  %v2131_v63 = vsel %vm6212_vm4, %v2126_v46, %v6498_v60  ;;  %v1282_v60 = vshll.u32 %v6485_v40, 16 }
  0xb9   : > { %v6445_v62 = vpop.f32.mrf.mxu3  ;;  %v1778_v33 = vpack.c.b16 %v1759_v36, %v1758_v7  ;;  %v847_v26 = vsel %vm6250_vm7, %v5438_v61, %v846_v44  ;;  %v2360_v27 = vunpack.c.l.b16 %v2131_v63 }
  0xba   : > { %v6471_v23 = vpop.f32.mrf.mxu2  ;;  %v906_v55 = vunpack.c.l.b16 %v847_v26  ;;  %v2148_v26 = vrot.slane %v2146_v4, 5 }
  0xbd   : > { %v6447_v52 = vpop.f32.mrf.mxu1 }
  0xc0   : > { %v615_v3 = vpop.f32.mrf.mxu0 }
  0xc1   : > { %v6452_v6 = vadd.f32 %v757_v57, %v615_v3  ;;  %v6455_v10 = vpop.f32.mrf.mxu3  ;;  %v1819_v3 = vsel %vm592_vm0, %v5591_v59, 0  ;;  %v5679_v59 = vld [vmem:[%s6183_s16 + $0x28] sm:$0xf] }
  0xc2   : > { %1828 = vmatpush.bf16.msrb.mxu1 %v1819_v3  ;;  %v6519_v24 = vpop.f32.mrf.mxu2  ;;  %v2143_v3 = vshrl.u32 %v5678_v54, 16  ;;  %v2156_v61 = vshrl.u32 %v5679_v59, 16  ;;  %v5533_v54 = vld [vmem:[%s6183_s16 + $0x18] sm:$0xf] }
  0xc3   : > { %5447 = vmatmul.msk.bf16.vlgmr.msrb.gmra.mxu0 %vm561_vm1, %v922_v2 }
  0xc4   : > { %v2158_v46 = vrot.slane %v2156_v61, 4 }
  0xc5   : > { %v762_v15 = vpop.f32.mrf.mxu1  ;;  %5592 = vmatmul.msk.bf16.vlgmr.msrb.gmra.mxu1 %vm561_vm1, %v1778_v33  ;;  %v2145_v33 = vrot.slane %v2143_v3, 4 }
  0xc6   : > { %5528 = vmatmul.msk.bf16.gmra.mxu3 %vm561_vm1, %v5970_v1  ;;  %v849_v1 = vrot.slane %v6261_v16, 5  ;;  %v5736_v16 = vld [vmem:[%s7926_s1 + $0x10] sm:$0x3] }
  0xc7   : > { %v2675_v31 = vsel %vm592_vm0, %v5736_v16, 0  ;;  %v1279_v16 = vor.u32 %v1278_v9, %v6537_v37  ;;  %vm7260_vm0 = vmand %vm3031_vm12, %vm3024_vm9 }
  0xc8   : > { %v6461_v17 = vpop.f32.mrf.mxu0  ;;  %2684 = vmatpush.bf16.msrb.mxu0 %v2675_v31  ;;  %v850_v35 = vsel %vm6250_vm7, %v848_v14, %v849_v1  ;;  %v2152_v1 = vshll.u32 %v5679_v59, 16 }
  0xc9   : > { %v6469_v12 = vpop.f32.mrf.mxu3  ;;  %v907_v44 = vunpack.c.l.b16 %v850_v35  ;;  %v1280_v59 = vrot.slane %v1279_v16, 4 }
  0xca   : > { %v6546_v20 = vpop.f32.mrf.mxu2  ;;  %v2154_v38 = vrot.slane %v2152_v1, 5  ;;  %v1287_v1 = vshrl.u32 %v5533_v54, 16 }
  0xcc   : > { %v2159_v61 = vor.u32 %v2158_v46, %v2154_v38 }
  0xcd   : > { %v6488_v43 = vpop.f32.mrf.mxu1 }
  0xd0   : > { %v620_v57 = vpop.f32.mrf.mxu0 }
  0xd1   : > { %v763_v2 = vadd.f32 %v762_v15, %v620_v57  ;;  %v6506_v11 = vpop.f32.mrf.mxu3  ;;  %v5971_v15 = vld [vmem:[%s6183_s16 + $0x78] sm:$0xff] }
  0xd3   : > { %v6512_v19 = vadd.f32 %v6436_v58, %v763_v2  ;;  %5448 = vmatmul.msk.bf16.gmra.mxu0 %vm561_vm1, %v923_v50  ;;  %v1266_v58 = vshll.u32 %v5530_v21, 16  ;;  %v2136_v50 = vrot.slane %v2135_v25, 4  ;;  %v5534_v2 = vld [vmem:[%s6183_s16 + $0x1c] sm:$0xf]  ;;  %v924_v21 = vpack.c.b16 %v907_v44, %v906_v55  ;;  %v5680_v55 = vld [vmem:[%s6183_s16 + $0x2c] sm:$0x1] }
  0xd4   : > { %v1695_v14 = vrot.slane %v5534_v2, 5 }
  0xd5   : > { %v767_v34 = vpop.f32.mrf.mxu1  ;;  %v1268_v57 = vrot.slane %v1266_v58, 5  ;;  %v2141_v7 = vsel %vm6212_vm4, %v2136_v50, %v2140_v53  ;;  %v6552_v58 = vld [vmem:[%s6183_s16 + $0x20] sm:$0x1] }
  0xd6   : > { %5529 = vmatmul.msk.bf16.gmra.mxu3 %vm561_vm1, %v5971_v15  ;;  %v5572_v15 = vld [vmem:[%s6183_s16 + $0x18] sm:$0xe]  ;;  %v1697_v25 = vrot.slane %v1695_v14, 4  ;;  %v2361_v31 = vunpack.c.l.b16 %v2141_v7  ;;  %v1698_v40 = vrot.slane %v6552_v58, 5  ;;  %v1284_v7 = vrot.slane %v1282_v60, 5 }
  0xd7   : > { %v1269_v18 = vor.u32 %v1268_v57, %v1265_v56  ;;  %v5582_v36 = vrot.slane %v5572_v15, 9  ;;  %v1290_v15 = vshll.u32 %v5533_v54, 16 }
  0xd8   : > { %v6531_v47 = vpop.f32.mrf.mxu0  ;;  %v1699_v9 = vsel %vm6250_vm7, %v1697_v25, %v1698_v40  ;;  %v2380_v3 = vpack.c.b16 %v2361_v31, %v2360_v27  ;;  %v1285_v60 = vsel %vm6212_vm4, %v1280_v59, %v1284_v7  ;;  %v6580_v27 = vpop.f32.mrf.mxu2  ;;  %v6590_v59 = vld [vmem:[%s6183_s16 + $0x28] sm:$0xf] }
  0xd9   : > { %v6535_v49 = vpop.f32.mrf.mxu3  ;;  %v1696_v50 = vsel %vm6250_vm7, %v5582_v36, %v1695_v14  ;;  %v1270_v57 = vrot.slane %v1269_v18, 4  ;;  %v1761_v4 = vunpack.c.l.b16 %v1699_v9  ;;  %v2162_v14 = vshll.u32 %v5680_v55, 16 }
  0xda   : > { %v1760_v44 = vunpack.c.l.b16 %v1696_v50  ;;  %v1296_v36 = vshll.u32 %v5534_v2, 16  ;;  %v1300_v18 = vshrl.u32 %v5534_v2, 16  ;;  %v2160_v2 = vrot.slane %v2159_v61, 4  ;;  %v5682_v50 = vld [vmem:[%s6183_s16 + $0x34] sm:$0xf] }
  0xdb   : > { %v2164_v31 = vrot.slane %v2162_v14, 5  ;;  %v1306_v61 = vshll.u32 %v6552_v58, 16  ;;  %v5573_v14 = vld [vmem:[%s6183_s16 + $0x24] sm:$0xe] }
  0xdc   : > { %v1779_v16 = vpack.c.b16 %v1761_v4, %v1760_v44  ;;  %v1302_v46 = vrot.slane %v1300_v18, 4  ;;  %v1505_v44 = vunpack.c.l.b16 %v1285_v60  ;;  %v1702_v4 = vrot.slane %v6590_v59, 5  ;;  %v6600_v60 = vld [vmem:[%s6183_s16 + $0x2c] sm:$0x1] }
  0xdd   : > { %v6554_v41 = vpop.f32.mrf.mxu1  ;;  %v2165_v9 = vsel %vm6212_vm4, %v2160_v2, %v2164_v31 }
  0xde   : > { %5593 = vmatmul.msk.bf16.gmra.mxu1 %vm561_vm1, %v1779_v16  ;;  %v1704_v18 = vrot.slane %v1702_v4, 4 }
  0xe0   : > { %v625_v35 = vpop.f32.mrf.mxu0 }
  0xe1   : > { %v768_v53 = vadd.f32 %v767_v34, %v625_v35  ;;  %v6562_v56 = vpop.f32.mrf.mxu3  ;;  %v2149_v34 = vor.u32 %v2148_v26, %v2145_v33  ;;  %v1289_v33 = vrot.slane %v1287_v1, 4  ;;  %v1292_v26 = vrot.slane %v1290_v15, 5 }
  0xe2   : > { %v6582_v35 = vrot.slane %v1296_v36, 5 }
  0xe3   : > { %v6567_v63 = vadd.f32 %v6471_v23, %v768_v53  ;;  %5449 = vmatmul.msk.bf16.gmra.mxu0 %vm561_vm1, %v924_v21  ;;  %v2150_v25 = vrot.slane %v2149_v34, 4  ;;  %v5681_v23 = vld [vmem:[%s6183_s16 + $0x30] sm:$0xf]  ;;  %v1275_v21 = vsel %vm6212_vm4, %v1270_v57, %v6537_v37  ;;  %v2180_v34 = vshrl.u32 %v5682_v50, 16 }
  0xe4   : > { %v2167_v54 = vshrl.u32 %v5681_v23, 16  ;;  %v2170_v37 = vshll.u32 %v5681_v23, 16  ;;  %v1504_v55 = vunpack.c.l.b16 %v1275_v21  ;;  %v1293_v7 = vor.u32 %v1292_v26, %v1289_v33  ;;  %v5974_v21 = vld [vmem:[%s6183_s16 + $0x30] sm:$0xff] }
  0xe5   : > { %v772_v53 = vpop.f32.mrf.mxu1  ;;  %v2155_v57 = vsel %vm6212_vm4, %v2150_v25, %v2154_v38  ;;  %v1303_v1 = vor.u32 %v1302_v46, %v6582_v35  ;;  %v5583_v38 = vrot.slane %v5573_v14, 9  ;;  %v2363_v23 = vunpack.c.l.b16 %v2165_v9  ;;  %5667 = vmatmul.msk.bf16.gmra.mxu2 %vm561_vm1, %v5974_v21 }
  0xe6   : > { %5706 = vmatmul.msk.bf16.vlgmr.msra.gmra.mxu3 %vm561_vm1, %v2380_v3  ;;  %v2176_v3 = vshll.u32 %v5682_v50, 16  ;;  %v2169_v15 = vrot.slane %v2167_v54, 4  ;;  %v2172_v36 = vrot.slane %v2170_v37, 5  ;;  %v1524_v16 = vpack.c.b16 %v1505_v44, %v1504_v55  ;;  %v5683_v54 = vld [vmem:[%s6183_s16 + $0x38] sm:$0x1]  ;;  %v6611_v44 = vpop.f32.mrf.mxu2 }
  0xe7   : > { %v2362_v25 = vunpack.c.l.b16 %v2155_v57  ;;  %v2182_v33 = vrot.slane %v2180_v34, 4  ;;  %v1703_v58 = vsel %vm6250_vm7, %v5583_v38, %v1702_v4  ;;  %v1705_v26 = vrot.slane %v6600_v60, 5 }
  0xe8   : > { %v6573_v32 = vpop.f32.mrf.mxu0  ;;  %v6602_v31 = vrot.slane %v2176_v3, 5  ;;  %v1294_v50 = vrot.slane %v1293_v7, 4  ;;  %v1762_v37 = vunpack.c.l.b16 %v1703_v58  ;;  %v1304_v57 = vrot.slane %v1303_v1, 4  ;;  %v5536_v3 = vld [vmem:[%s6183_s16 + $0x24] sm:$0xf] }
  0xe9   : > { %v6585_v40 = vpop.f32.mrf.mxu3  ;;  %v1308_v9 = vrot.slane %v1306_v61, 5  ;;  %v2173_v14 = vor.u32 %v2172_v36, %v2169_v15  ;;  %v1706_v34 = vsel %vm6250_vm7, %v1704_v18, %v1705_v26  ;;  %v1311_v61 = vshrl.u32 %v5536_v3, 16 }
  0xea   : > { %v1763_v7 = vunpack.c.l.b16 %v1706_v34  ;;  %v2183_v21 = vor.u32 %v2182_v33, %v6602_v31  ;;  %v1299_v1 = vsel %vm6212_vm4, %v1294_v50, %v6582_v35  ;;  %v1314_v15 = vshll.u32 %v5536_v3, 16  ;;  %v5684_v35 = vld [vmem:[%s6183_s16 + $0x3c] sm:$0xf] }
  0xeb   : > { %v1320_v18 = vshll.u32 %v6590_v59, 16  ;;  %v1506_v33 = vunpack.c.l.b16 %v1299_v1  ;;  %v5540_v1 = vld [vmem:[%s6183_s16 + $0x34] sm:$0xf] }
  0xec   : > { %v1780_v36 = vpack.c.b16 %v1763_v7, %v1762_v37  ;;  %v2184_v58 = vrot.slane %v2183_v21, 4  ;;  %v1313_v37 = vrot.slane %v1311_v61, 4  ;;  %v2194_v7 = vshll.u32 %v5684_v35, 16 }
  0xed   : > { %v774_v38 = vpop.f32.mrf.mxu1 }
  0xee   : > { %5594 = vmatmul.msk.bf16.gmra.mxu1 %vm561_vm1, %v1780_v36 }
  0xf0   : > { %v630_v2 = vpop.f32.mrf.mxu0 }
  0xf1   : > { %v773_v46 = vadd.f32 %v772_v53, %v630_v2  ;;  %v6609_v55 = vpop.f32.mrf.mxu3  ;;  %v2381_v53 = vpack.c.b16 %v2363_v23, %v2362_v25  ;;  %v2186_v2 = vshll.u32 %v5683_v54, 16  ;;  %v2174_v25 = vrot.slane %v2173_v14, 4 }
  0xf2   : > { %7938 = vst [vmem:[#allocation3_spill] sm:$0xff] %v6609_v55 }
  0xf3   : > { %v6617_v4 = vadd.f32 %v6546_v20, %v773_v46  ;;  %5561 = vmatmul.msk.bf16.vlgmr.msra.gmra.mxu0 %vm561_vm1, %v1524_v16  ;;  %v1309_v20 = vsel %vm6212_vm4, %v1304_v57, %v1308_v9  ;;  %v1324_v16 = vshrl.u32 %v6590_v59, 16  ;;  %v2188_v26 = vrot.slane %v2186_v2, 5  ;;  %v5685_v46 = vld [vmem:[%s6183_s16 + $0x40] sm:$0xf] }
  0xf4   : > { %v1507_v54 = vunpack.c.l.b16 %v1309_v20  ;;  %v1316_v57 = vrot.slane %v1314_v15, 5  ;;  %v6634_v59 = vrot.slane %v1320_v18, 5  ;;  %v2179_v14 = vsel %vm6212_vm4, %v2174_v25, %v6602_v31  ;;  %v5574_v20 = vld [vmem:[%s6183_s16 + $0x30] sm:$0xe] }
  0xf5   : > { %v1326_v3 = vrot.slane %v1324_v16, 4  ;;  %v2200_v21 = vshll.u32 %v5685_v46, 16  ;;  %v2189_v2 = vsel %vm6212_vm4, %v2184_v58, %v2188_v26  ;;  %v2204_v61 = vshrl.u32 %v5685_v46, 16  ;;  %v777_v18 = vpop.f32.mrf.mxu1  ;;  %v5975_v58 = vld [vmem:[%s6183_s16 + $0x3c] sm:$0xff]  ;;  %v6654_v26 = vld [vmem:[%s6183_s16 + $0x38] sm:$0x1] }
  0xf6   : > { %5707 = vmatmul.msk.bf16.gmra.mxu3 %vm561_vm1, %v2381_v53  ;;  %v2191_v53 = vshrl.u32 %v5684_v35, 16  ;;  %v765_v15 = vadd.f32 %v6488_v43, %v6531_v47  ;;  %v1525_v36 = vpack.c.b16 %v1507_v54, %v1506_v33  ;;  %v1317_v31 = vor.u32 %v1316_v57, %v1313_v37  ;;  %5668 = vmatmul.msk.bf16.gmra.mxu2 %vm561_vm1, %v5975_v58 }
  0xf7   : > { %v1327_v16 = vor.u32 %v1326_v3, %v6634_v59  ;;  %v1330_v25 = vshll.u32 %v6600_v60, 16  ;;  %v5584_v35 = vrot.slane %v5574_v20, 9  ;;  %v6656_v43 = vrot.slane %v2200_v21, 5 }
  0xf8   : > { %v632_v23 = vpop.f32.mrf.mxu0  ;;  %v2193_v46 = vrot.slane %v2191_v53, 4  ;;  %v2206_v33 = vrot.slane %v2204_v61, 4  ;;  %v1712_v60 = vrot.slane %v6654_v26, 5  ;;  %v1031_v57 = vadd.f32 %v6450_v5, %v765_v15 }
  0xf9   : > { %v6632_v50 = vadd.f32 %v774_v38, %v632_v23  ;;  %v1177_v9 = vpop.f32.mrf.mxu3  ;;  %v6642_v38 = vpop.f32.mrf.mxu2  ;;  %v2364_v23 = vunpack.c.l.b16 %v2179_v14  ;;  %v5539_v14 = vld [vmem:[%s6183_s16 + $0x30] sm:$0xf]  ;;  %v1328_v21 = vrot.slane %v1327_v16, 4  ;;  %v1332_v55 = vrot.slane %v1330_v25, 5 }
  0xfa   : > { %v6640_v34 = vadd.f32 %v1177_v9, %v6512_v19  ;;  %v1709_v19 = vrot.slane %v5540_v1, 5  ;;  %v2365_v9 = vunpack.c.l.b16 %v2189_v2  ;;  %v5686_v2 = vld [vmem:[%s6183_s16 + $0x44] sm:$0x1]  ;;  %v1338_v16 = vshll.u32 %v5539_v14, 16 }
  0xfb   : > { %v1344_v25 = vshll.u32 %v5540_v1, 16 }
  0xfc   : > { %7939 = vst [vmem:[#allocation4_spill] sm:$0xff] %v6640_v34  ;;  %v2196_v34 = vrot.slane %v2194_v7, 5  ;;  %v1710_v54 = vsel %vm6250_vm7, %v5584_v35, %v1709_v19  ;;  %v1711_v37 = vrot.slane %v1709_v19, 4  ;;  %v1318_v7 = vrot.slane %v1317_v31, 4 }
  0xfd   : > { %v1764_v20 = vunpack.c.l.b16 %v1710_v54  ;;  %v2382_v5 = vpack.c.b16 %v2365_v9, %v2364_v23  ;;  %v2210_v31 = vshll.u32 %v5686_v2, 16  ;;  %v1348_v54 = vshrl.u32 %v5540_v1, 16 }
  0xfe   : > { %v1713_v61 = vsel %vm6250_vm7, %v1711_v37, %v1712_v60  ;;  %v2197_v58 = vor.u32 %v2196_v34, %v2193_v46  ;;  %v1333_v34 = vsel %vm6212_vm4, %v1328_v21, %v1332_v55 }
  0xff   : > { %v1765_v15 = vunpack.c.l.b16 %v1713_v61  ;;  %v2212_v1 = vrot.slane %v2210_v31, 5 }
 0x100   : > { %v635_v47 = vpop.f32.mrf.mxu0  ;;  %v2198_v9 = vrot.slane %v2197_v58, 4 }
 0x101   : > { %v778_v3 = vadd.f32 %v777_v18, %v635_v47  ;;  %v1179_v53 = vpop.f32.mrf.mxu3  ;;  %v1335_v18 = vshrl.u32 %v5539_v14, 16  ;;  %v2207_v47 = vor.u32 %v2206_v33, %v6656_v43  ;;  %v1781_v37 = vpack.c.b16 %v1765_v15, %v1764_v20  ;;  %v1009_v60 = vpop.f32.mrf.mxu2  ;;  %v5688_v33 = vld [vmem:[%s6183_s16 + $0x4c] sm:$0xf] }
 0x102   : > { %v6670_v19 = vadd.f32 %v1179_v53, %v1031_v57  ;;  %v6685_v14 = vrot.slane %v1344_v25, 5  ;;  %v2224_v55 = vshll.u32 %v5688_v33, 16  ;;  %v2203_v21 = vsel %vm6212_vm4, %v2198_v9, %v6656_v43 }
 0x103   : > { %v6668_v35 = vadd.f32 %v6611_v44, %v778_v3  ;;  %5562 = vmatmul.msk.bf16.gmra.mxu0 %vm561_vm1, %v1525_v36  ;;  %v1323_v44 = vsel %vm6212_vm4, %v1318_v7, %v6634_v59  ;;  %5595 = vmatmul.msk.bf16.gmra.mxu1 %vm561_vm1, %v1781_v37  ;;  %v5687_v36 = vld [vmem:[%s6183_s16 + $0x48] sm:$0xf]  ;;  %v2208_v46 = vrot.slane %v2207_v47, 4  ;;  %v1337_v57 = vrot.slane %v1335_v18, 4  ;;  %v6696_v18 = vld [vmem:[%s6183_s16 + $0x40] sm:$0xf] }
 0x104   : > { %v1340_v3 = vrot.slane %v1338_v16, 5  ;;  %v1350_v59 = vrot.slane %v1348_v54, 4  ;;  %v2215_v20 = vshrl.u32 %v5687_v36, 16  ;;  %v2218_v53 = vshll.u32 %v5687_v36, 16  ;;  %v5575_v16 = vld [vmem:[%s6183_s16 + $0x3c] sm:$0xe] }
 0x105   : > { %v1508_v61 = vunpack.c.l.b16 %v1323_v44  ;;  %v2213_v15 = vsel %vm6212_vm4, %v2208_v46, %v2212_v1  ;;  %v2228_v58 = vshrl.u32 %v5688_v33, 16  ;;  %v770_v47 = vadd.f32 %v6554_v41, %v6573_v32  ;;  %v5976_v46 = vld [vmem:[%s6183_s16 + $0x48] sm:$0xff]  ;;  %v6706_v1 = vld [vmem:[%s6183_s16 + $0x44] sm:$0x1] }
 0x106   : > { %5708 = vmatmul.msk.bf16.gmra.mxu3 %vm561_vm1, %v2382_v5  ;;  %v1509_v5 = vunpack.c.l.b16 %v1333_v34  ;;  %v1351_v31 = vor.u32 %v1350_v59, %v6685_v14  ;;  %v1716_v25 = vrot.slane %v6696_v18, 5  ;;  %v1354_v54 = vshll.u32 %v6654_v26, 16  ;;  %5669 = vmatmul.msk.bf16.gmra.mxu2 %vm561_vm1, %v5976_v46 }
 0x107   : > { %v2217_v43 = vrot.slane %v2215_v20, 4  ;;  %v2220_v37 = vrot.slane %v2218_v53, 5  ;;  %v5585_v44 = vrot.slane %v5575_v16, 9  ;;  %v2366_v34 = vunpack.c.l.b16 %v2203_v21 }
 0x108   : > { %v6680_v23 = vpop.f32.mrf.mxu0  ;;  %v1526_v36 = vpack.c.b16 %v1509_v5, %v1508_v61  ;;  %v2367_v9 = vunpack.c.l.b16 %v2213_v15  ;;  %v6708_v33 = vrot.slane %v2224_v55, 5  ;;  %v1719_v59 = vrot.slane %v6706_v1, 5  ;;  %v6719_v61 = vld [vmem:[%s6183_s16 + $0x50] sm:$0x1] }
 0x109   : > { %v1182_v2 = vpop.f32.mrf.mxu3  ;;  %v6710_v32 = vpop.f32.mrf.mxu2  ;;  %v1717_v26 = vsel %vm6250_vm7, %v5585_v44, %v1716_v25  ;;  %v1352_v21 = vrot.slane %v1351_v31, 4  ;;  %v1356_v15 = vrot.slane %v1354_v54, 5  ;;  %v2221_v16 = vor.u32 %v2220_v37, %v2217_v43 }
 0x10a   : > { %v6688_v7 = vadd.f32 %v1182_v2, %v6567_v63  ;;  %v1341_v63 = vor.u32 %v1340_v3, %v1337_v57  ;;  %v2230_v57 = vrot.slane %v2228_v58, 4  ;;  %v1718_v3 = vrot.slane %v1716_v25, 4  ;;  %v5542_v58 = vld [vmem:[%s6183_s16 + $0x3c] sm:$0xf] }
 0x10b   : > { %v1033_v2 = vadd.f32 %v6519_v24, %v770_v47  ;;  %v1766_v5 = vunpack.c.l.b16 %v1717_v26  ;;  %v1359_v54 = vshrl.u32 %v5542_v58, 16  ;;  %v1362_v43 = vshll.u32 %v5542_v58, 16  ;;  %v6744_v26 = vld [vmem:[%s6183_s16 + $0x58] sm:$0xf] }
 0x10c   : > { %7940 = vst [vmem:[#allocation5_spill] sm:$0xff] %v6688_v7  ;;  %v1342_v53 = vrot.slane %v1341_v63, 4  ;;  %v1720_v25 = vsel %vm6250_vm7, %v1718_v3, %v1719_v59  ;;  %v2231_v47 = vor.u32 %v2230_v57, %v6708_v33  ;;  %v2234_v63 = vshll.u32 %v6719_v61, 16 }
 0x10d   : > { %v1767_v24 = vunpack.c.l.b16 %v1720_v25  ;;  %v1357_v37 = vsel %vm6212_vm4, %v1352_v21, %v1356_v15  ;;  %7941 = vst [vmem:[#allocation6_spill] sm:$0xff] %v6744_v26  ;;  %v2248_v25 = vshll.u32 %v6744_v26, 16 }
 0x10e   : > { %v1347_v31 = vsel %vm6212_vm4, %v1342_v53, %v6685_v14  ;;  %v2236_v57 = vrot.slane %v2234_v63, 5  ;;  %v5690_v14 = vld [vmem:[%s6183_s16 + $0x54] sm:$0xf]  ;;  %v1511_v59 = vunpack.c.l.b16 %v1357_v37 }
 0x10f   : > { %v1510_v3 = vunpack.c.l.b16 %v1347_v31  ;;  %v2239_v58 = vshrl.u32 %v5690_v14, 16 }
 0x110   : > { %v640_v41 = vpop.f32.mrf.mxu0 }
 0x111   : > { %v783_v20 = vadd.f32 %v6402_v13, %v640_v41  ;;  %v1184_v55 = vpop.f32.mrf.mxu3  ;;  %v2383_v13 = vpack.c.b16 %v2367_v9, %v2366_v34  ;;  %v1372_v34 = vshrl.u32 %v6696_v18, 16  ;;  %v2222_v9 = vrot.slane %v2221_v16, 4 }
 0x112   : > { %v6726_v7 = vadd.f32 %v1184_v55, %v1033_v2  ;;  %v2232_v41 = vrot.slane %v2231_v47, 4  ;;  %v1361_v2 = vrot.slane %v1359_v54, 4  ;;  %v2242_v16 = vshll.u32 %v5690_v14, 16  ;;  %v5576_v54 = vld [vmem:[%s6183_s16 + $0x48] sm:$0xe] }
 0x113   : > { %v6724_v44 = vadd.f32 %v1009_v60, %v783_v20  ;;  %5563 = vmatmul.msk.bf16.gmra.mxu0 %vm561_vm1, %v1526_v36  ;;  %v1782_v60 = vpack.c.b16 %v1767_v24, %v1766_v5  ;;  %v1368_v36 = vshll.u32 %v6696_v18, 16  ;;  %v1364_v20 = vrot.slane %v1362_v43, 5  ;;  %v1014_v18 = vpop.f32.mrf.mxu2  ;;  %v5546_v24 = vld [vmem:[%s6183_s16 + $0x4c] sm:$0xf] }
 0x114   : > { %v1374_v55 = vrot.slane %v1372_v34, 4  ;;  %v2227_v21 = vsel %vm6212_vm4, %v2222_v9, %v6708_v33  ;;  %v2252_v47 = vshrl.u32 %v6744_v26, 16  ;;  %v1527_v63 = vpack.c.b16 %v1511_v59, %v1510_v3  ;;  %v5977_v34 = vld [vmem:[%s6183_s16 + $0x54] sm:$0xff]  ;;  %v6764_v9 = vld [vmem:[%s6183_s16 + $0x50] sm:$0x1] }
 0x115   : > { %5596 = vmatmul.msk.bf16.gmra.mxu1 %vm561_vm1, %v1782_v60  ;;  %v6746_v5 = vrot.slane %v1368_v36, 5  ;;  %v1365_v31 = vor.u32 %v1364_v20, %v1361_v2  ;;  %v1723_v43 = vrot.slane %v5546_v24, 5  ;;  %v2368_v60 = vunpack.c.l.b16 %v2227_v21  ;;  %v5545_v21 = vld [vmem:[%s6183_s16 + $0x48] sm:$0xf] }
 0x116   : > { %5709 = vmatmul.msk.bf16.gmra.mxu3 %vm561_vm1, %v2383_v13  ;;  %v2237_v13 = vsel %vm6212_vm4, %v2232_v41, %v2236_v57  ;;  %v5586_v37 = vrot.slane %v5576_v54, 9  ;;  %v2241_v41 = vrot.slane %v2239_v58, 4  ;;  %v2244_v57 = vrot.slane %v2242_v16, 5  ;;  %5670 = vmatmul.msk.bf16.gmra.mxu2 %vm561_vm1, %v5977_v34  ;;  %v6777_v58 = vld [vmem:[%s6183_s16 + $0x5c] sm:$0x1] }
 0x117   : > { %v1375_v33 = vor.u32 %v1374_v55, %v6746_v5  ;;  %v2369_v36 = vunpack.c.l.b16 %v2237_v13  ;;  %v6766_v14 = vrot.slane %v2248_v25, 5  ;;  %v2254_v59 = vrot.slane %v2252_v47, 4  ;;  %7942 = vst [vmem:[#allocation7_spill] sm:$0xff] %v6777_v58 }
 0x118   : > { %v6740_v46 = vpop.f32.mrf.mxu0  ;;  %v1724_v2 = vsel %vm6250_vm7, %v5586_v37, %v1723_v43  ;;  %v1725_v20 = vrot.slane %v1723_v43, 4  ;;  %v1366_v13 = vrot.slane %v1365_v31, 4  ;;  %v1383_v34 = vshrl.u32 %v5545_v21, 16 }
 0x119   : > { %v1187_v53 = vpop.f32.mrf.mxu3  ;;  %v1768_v16 = vunpack.c.l.b16 %v1724_v2  ;;  %v1376_v47 = vrot.slane %v1375_v33, 4  ;;  %v2255_v2 = vor.u32 %v2254_v59, %v6766_v14  ;;  %v2258_v31 = vshll.u32 %v6777_v58, 16 }
 0x11a   : > { %v6752_v15 = vadd.f32 %v1187_v53, %v6617_v4  ;;  %v1378_v4 = vshll.u32 %v6706_v1, 16  ;;  %v1726_v1 = vrot.slane %v6764_v9, 5  ;;  %v1035_v53 = vadd.f32 %v6580_v27, %v6632_v50 }
 0x11b   : > { %v1016_v50 = vpop.f32.mrf.mxu2  ;;  %v1386_v33 = vshll.u32 %v5545_v21, 16  ;;  %v2256_v59 = vrot.slane %v2255_v2, 4 }
 0x11c   : > { %v1380_v54 = vrot.slane %v1378_v4, 5  ;;  %v1727_v43 = vsel %vm6250_vm7, %v1725_v20, %v1726_v1  ;;  %v1392_v4 = vshll.u32 %v5546_v24, 16  ;;  %v1396_v20 = vshrl.u32 %v5546_v24, 16 }
 0x11d   : > { %v1769_v27 = vunpack.c.l.b16 %v1727_v43  ;;  %v1371_v1 = vsel %vm6212_vm4, %v1366_v13, %v6746_v5  ;;  %v1388_v21 = vrot.slane %v1386_v33, 5 }
 0x11e   : > { %v6800_v5 = vrot.slane %v1392_v4, 5 }
 0x120   : > { %v645_v3 = vpop.f32.mrf.mxu0 }
 0x121   : > { %v788_v55 = vadd.f32 %v6423_v42, %v645_v3  ;;  %v1189_v25 = vpop.f32.mrf.mxu3  ;;  %v2384_v42 = vpack.c.b16 %v2369_v36, %v2368_v60  ;;  %v2245_v3 = vor.u32 %v2244_v57, %v2241_v41  ;;  %v5693_v60 = vld [vmem:[%s6183_s16 + $0x60] sm:$0xf]  ;;  %v1385_v41 = vrot.slane %v1383_v34, 4 }
 0x122   : > { %v6783_v26 = vadd.f32 %v1189_v25, %v1035_v53  ;;  %v2260_v53 = vrot.slane %v2258_v31, 5  ;;  %v779_v25 = vpop.f32.mrf.mxu1  ;;  %v2266_v43 = vshll.u32 %v5693_v60, 16  ;;  %v6814_v31 = vld [vmem:[%s6183_s16 + $0x58] sm:$0xf] }
 0x123   : > { %v6781_v37 = vadd.f32 %v1014_v18, %v788_v55  ;;  %5564 = vmatmul.msk.bf16.gmra.mxu0 %vm561_vm1, %v1527_v63  ;;  %v1783_v18 = vpack.c.b16 %v1769_v27, %v1768_v16  ;;  %v1381_v63 = vsel %vm6212_vm4, %v1376_v47, %v1380_v54  ;;  %v2246_v57 = vrot.slane %v2245_v3, 4  ;;  %v6797_v55 = vld [vmem:[%s6183_s16 + $0x64] sm:$0xf] }
 0x124   : > { %7943 = vst [vmem:[#allocation8_spill] sm:$0xff] %v6797_v55  ;;  %v1398_v16 = vrot.slane %v1396_v20, 4  ;;  %v1512_v47 = vunpack.c.l.b16 %v1371_v1  ;;  %v2263_v54 = vshrl.u32 %v5693_v60, 16  ;;  %v1513_v34 = vunpack.c.l.b16 %v1381_v63  ;;  %v5577_v20 = vld [vmem:[%s6183_s16 + $0x54] sm:$0xe]  ;;  %v1019_v1 = vpop.f32.mrf.mxu2 }
 0x125   : > { %5597 = vmatmul.msk.bf16.gmra.mxu1 %vm561_vm1, %v1783_v18  ;;  %v2272_v3 = vshll.u32 %v6797_v55, 16  ;;  %v2261_v2 = vsel %vm6212_vm4, %v2256_v59, %v2260_v53  ;;  %v780_v33 = vadd.f32 %v779_v25, %v6680_v23  ;;  %v1730_v18 = vrot.slane %v6814_v31, 5 }
 0x126   : > { %5710 = vmatmul.msk.bf16.gmra.mxu3 %vm561_vm1, %v2384_v42  ;;  %v1399_v4 = vor.u32 %v1398_v16, %v6800_v5  ;;  %v2265_v63 = vrot.slane %v2263_v54, 4  ;;  %v2268_v60 = vrot.slane %v2266_v43, 5  ;;  %v2371_v53 = vunpack.c.l.b16 %v2261_v2 }
 0x127   : > { %v6826_v23 = vrot.slane %v2272_v3, 5  ;;  %v1732_v25 = vrot.slane %v1730_v18, 4  ;;  %v1037_v54 = vadd.f32 %v6642_v38, %v780_v33 }
 0x128   : > { %v647_v36 = vpop.f32.mrf.mxu0  ;;  %v1400_v2 = vrot.slane %v1399_v4, 4 }
 0x129   : > { %v790_v24 = vadd.f32 %v6431_v51, %v647_v36  ;;  %v1192_v13 = vpop.f32.mrf.mxu3  ;;  %v2251_v51 = vsel %vm6212_vm4, %v2246_v57, %v6766_v14  ;;  %v1402_v14 = vshll.u32 %v6764_v9, 16  ;;  %v5587_v36 = vrot.slane %v5577_v20, 9 }
 0x12a   : > { %v6805_v27 = vadd.f32 %v1192_v13, %v6668_v35  ;;  %v1389_v35 = vor.u32 %v1388_v21, %v1385_v41  ;;  %v1528_v57 = vpack.c.b16 %v1513_v34, %v1512_v47  ;;  %v2370_v59 = vunpack.c.l.b16 %v2251_v51  ;;  %v6824_v13 = vld [vmem:[%s6183_s16 + $0x5c] sm:$0x1]  ;;  %v6835_v34 = vld [vmem:[%s6183_s16 + $0x68] sm:$0x1] }
 0x12b   : > { %v6802_v42 = vadd.f32 %v1016_v50, %v790_v24  ;;  %v2276_v50 = vshrl.u32 %v6797_v55, 16  ;;  %v5978_v24 = vld [vmem:[%s6183_s16 + $0x60] sm:$0xff]  ;;  %v1731_v16 = vsel %vm6250_vm7, %v5587_v36, %v1730_v18  ;;  %v1733_v9 = vrot.slane %v6824_v13, 5 }
 0x12c   : > { %v1390_v43 = vrot.slane %v1389_v35, 4  ;;  %5671 = vmatmul.msk.bf16.gmra.mxu2 %vm561_vm1, %v5978_v24  ;;  %v1770_v51 = vunpack.c.l.b16 %v1731_v16  ;;  %v1404_v20 = vrot.slane %v1402_v14, 5  ;;  %v2269_v55 = vor.u32 %v2268_v60, %v2265_v63 }
 0x12d   : > { %v2278_v21 = vrot.slane %v2276_v50, 4  ;;  %v5548_v50 = vld [vmem:[%s6183_s16 + $0x54] sm:$0xf]  ;;  %v1734_v18 = vsel %vm6250_vm7, %v1732_v25, %v1733_v9  ;;  %v2282_v35 = vshll.u32 %v6835_v34, 16  ;;  %v1416_v24 = vshll.u32 %v6814_v31, 16 }
 0x12e   : > { %v1771_v38 = vunpack.c.l.b16 %v1734_v18  ;;  %v1395_v4 = vsel %vm6212_vm4, %v1390_v43, %v6800_v5  ;;  %v1407_v14 = vshrl.u32 %v5548_v50, 16  ;;  %v1410_v63 = vshll.u32 %v5548_v50, 16  ;;  %v6858_v9 = vld [vmem:[%s6183_s16 + $0x70] sm:$0xf] }
 0x12f   : > { %v2279_v33 = vor.u32 %v2278_v21, %v6826_v23  ;;  %v1405_v60 = vsel %vm6212_vm4, %v1400_v2, %v1404_v20  ;;  %v1021_v21 = vpop.f32.mrf.mxu2  ;;  %v1514_v5 = vunpack.c.l.b16 %v1395_v4  ;;  %v2284_v25 = vrot.slane %v2282_v35, 5 }
 0x130   : > { %v650_v41 = vpop.f32.mrf.mxu0  ;;  %v1409_v43 = vrot.slane %v1407_v14, 4  ;;  %v2300_v35 = vshrl.u32 %v6858_v9, 16 }
 0x131   : > { %v793_v47 = vadd.f32 %v6445_v62, %v650_v41  ;;  %v1194_v3 = vpop.f32.mrf.mxu3  ;;  %v2385_v62 = vpack.c.b16 %v2371_v53, %v2370_v59  ;;  %v2270_v59 = vrot.slane %v2269_v55, 4  ;;  %v5696_v53 = vld [vmem:[%s6183_s16 + $0x6c] sm:$0xf]  ;;  %v2280_v16 = vrot.slane %v2279_v33, 4  ;;  %v6873_v33 = vld [vmem:[%s6183_s16 + $0x64] sm:$0xf] }
 0x132   : > { %v6842_v58 = vadd.f32 %v1194_v3, %v1037_v54  ;;  %v2287_v20 = vshrl.u32 %v5696_v53, 16 }
 0x133   : > { %v6840_v36 = vadd.f32 %v1019_v1, %v793_v47  ;;  %5565 = vmatmul.msk.bf16.gmra.mxu0 %vm561_vm1, %v1528_v57  ;;  %v1784_v1 = vpack.c.b16 %v1771_v38, %v1770_v51  ;;  %v1420_v57 = vshrl.u32 %v6814_v31, 16  ;;  %v1515_v47 = vunpack.c.l.b16 %v1405_v60 }
 0x134   : > { %v1412_v51 = vrot.slane %v1410_v63, 5  ;;  %v1418_v31 = vrot.slane %v1416_v24, 5  ;;  %v2275_v2 = vsel %vm6212_vm4, %v2270_v59, %v6826_v23  ;;  %v2285_v38 = vsel %vm6212_vm4, %v2280_v16, %v2284_v25  ;;  %v5578_v63 = vld [vmem:[%s6183_s16 + $0x60] sm:$0xe] }
 0x135   : > { %5598 = vmatmul.msk.bf16.gmra.mxu1 %vm561_vm1, %v1784_v1  ;;  %v1422_v3 = vrot.slane %v1420_v57, 4  ;;  %v785_v23 = vadd.f32 %v6408_v30, %v6740_v46  ;;  %v1529_v4 = vpack.c.b16 %v1515_v47, %v1514_v5  ;;  %v1426_v60 = vshll.u32 %v6824_v13, 16 }
 0x136   : > { %5711 = vmatmul.msk.bf16.gmra.mxu3 %vm561_vm1, %v2385_v62  ;;  %v2290_v62 = vshll.u32 %v5696_v53, 16  ;;  %v1413_v14 = vor.u32 %v1412_v51, %v1409_v43  ;;  %v2372_v24 = vunpack.c.l.b16 %v2275_v2  ;;  %v5588_v57 = vrot.slane %v5578_v63, 9  ;;  %v5979_v53 = vld [vmem:[%s6183_s16 + $0x6c] sm:$0xff] }
 0x137   : > { %v1423_v1 = vor.u32 %v1422_v3, %v1418_v31  ;;  %v2373_v59 = vunpack.c.l.b16 %v2285_v38  ;;  %v2302_v46 = vrot.slane %v2300_v35, 4  ;;  %v1039_v47 = vadd.f32 %v6710_v32, %v785_v23 }
 0x138   : > { %v652_v41 = vpop.f32.mrf.mxu0  ;;  %v2292_v16 = vrot.slane %v2290_v62, 5  ;;  %v1414_v51 = vrot.slane %v1413_v14, 4  ;;  %v1428_v62 = vrot.slane %v1426_v60, 5 }
 0x139   : > { %v795_v54 = vadd.f32 %v6455_v10, %v652_v41  ;;  %v1197_v55 = vpop.f32.mrf.mxu3  ;;  %v2296_v10 = vshll.u32 %v6858_v9, 16  ;;  %v6883_v41 = vld [vmem:[%s6183_s16 + $0x68] sm:$0x1]  ;;  %v2386_v32 = vpack.c.b16 %v2373_v59, %v2372_v24  ;;  %v1444_v24 = vshrl.u32 %v6873_v33, 16 }
 0x13a   : > { %v6867_v18 = vadd.f32 %v1197_v55, %v6724_v44  ;;  %v1737_v44 = vrot.slane %v6873_v33, 5  ;;  %v1740_v13 = vrot.slane %v6883_v41, 5  ;;  %v6896_v55 = vld [vmem:[%s6183_s16 + $0x74] sm:$0x1]  ;;  %v750_v59 = vadd.f32 %v6404_v22, %v6417_v39 }
 0x13b   : > { %v6864_v50 = vadd.f32 %v1021_v21, %v795_v54  ;;  %v2289_v21 = vrot.slane %v2287_v20, 4  ;;  %v6885_v25 = vrot.slane %v2296_v10, 5  ;;  %v1424_v20 = vrot.slane %v1423_v1, 4  ;;  %v5551_v10 = vld [vmem:[%s6183_s16 + $0x60] sm:$0xf] }
 0x13c   : > { %v1738_v5 = vsel %vm6250_vm7, %v5588_v57, %v1737_v44  ;;  %v1739_v54 = vrot.slane %v1737_v44, 4  ;;  %5672 = vmatmul.msk.bf16.gmra.mxu2 %vm561_vm1, %v5979_v53  ;;  %v2306_v63 = vshll.u32 %v6896_v55, 16  ;;  %v1419_v44 = vsel %vm6212_vm4, %v1414_v51, %v1418_v31 }
 0x13d   : > { %v1772_v3 = vunpack.c.l.b16 %v1738_v5  ;;  %v2303_v14 = vor.u32 %v2302_v46, %v6885_v25  ;;  %v1431_v1 = vshrl.u32 %v5551_v10, 16  ;;  %v1434_v60 = vshll.u32 %v5551_v10, 16  ;;  %v5699_v5 = vld [vmem:[%s6183_s16 + $0x78] sm:$0xf] }
 0x13e   : > { %v1741_v38 = vsel %vm6250_vm7, %v1739_v54, %v1740_v13  ;;  %v1429_v53 = vsel %vm6212_vm4, %v1424_v20, %v1428_v62  ;;  %v2308_v46 = vrot.slane %v2306_v63, 5  ;;  %v6931_v62 = vld [vmem:[%s6183_s16 + $0x70] sm:$0xf]  ;;  %v2311_v10 = vshrl.u32 %v5699_v5, 16 }
 0x13f   : > { %v1773_v23 = vunpack.c.l.b16 %v1741_v38  ;;  %v1517_v13 = vunpack.c.l.b16 %v1429_v53  ;;  %v1436_v51 = vrot.slane %v1434_v60, 5  ;;  %v2314_v38 = vshll.u32 %v5699_v5, 16 }
 0x140   : > { %v974_v30 = vpop.f32.mrf.mxu0 }
 0x141   : > { %v6892_v43 = vadd.f32 %v974_v30, %v6406_v28  ;;  %v1199_v2 = vpop.f32.mrf.mxu3  ;;  %v2293_v28 = vor.u32 %v2292_v16, %v2289_v21  ;;  %v1785_v57 = vpack.c.b16 %v1773_v23, %v1772_v3  ;;  %v1516_v16 = vunpack.c.l.b16 %v1419_v44  ;;  %v5579_v44 = vld [vmem:[%s6183_s16 + $0x6c] sm:$0xe] }
 0x142   : > { %v6901_v35 = vadd.f32 %v1199_v2, %v1039_v47  ;;  %v2304_v30 = vrot.slane %v2303_v14, 4  ;;  %v1433_v47 = vrot.slane %v1431_v1, 4  ;;  %v1446_v3 = vrot.slane %v1444_v24, 4  ;;  %v5980_v24 = vld [vmem:[%s6183_s16 + $0x78] sm:$0xff] }
 0x143   : > { %5566 = vmatmul.msk.bf16.gmra.mxu0 %vm561_vm1, %v1529_v4  ;;  %v1440_v4 = vshll.u32 %v6873_v33, 16  ;;  %v2294_v21 = vrot.slane %v2293_v28, 4  ;;  %v6920_v33 = vld [vmem:[%s6183_s16 + $0x7c] sm:$0xf]  ;;  %v1530_v14 = vpack.c.b16 %v1517_v13, %v1516_v16  ;;  %v1450_v1 = vshll.u32 %v6883_v41, 16 }
 0x144   : > { %v2320_v28 = vshll.u32 %v6920_v33, 16  ;;  %v2324_v23 = vshrl.u32 %v6920_v33, 16  ;;  %v1437_v63 = vor.u32 %v1436_v51, %v1433_v47  ;;  %v5589_v60 = vrot.slane %v5579_v44, 9  ;;  %v6953_v47 = vld [vmem:[%s6183_s16 + $0x80] sm:$0x1] }
 0x145   : > { %5599 = vmatmul.msk.bf16.gmra.mxu1 %vm561_vm1, %v1785_v57  ;;  %v6922_v39 = vrot.slane %v1440_v4, 5  ;;  %v2299_v20 = vsel %vm6212_vm4, %v2294_v21, %v6885_v25  ;;  %v2313_v21 = vrot.slane %v2311_v10, 4  ;;  %v5554_v10 = vld [vmem:[%s6183_s16 + $0x6c] sm:$0xf] }
 0x146   : > { %5712 = vmatmul.msk.bf16.gmra.mxu3 %vm561_vm1, %v2386_v32  ;;  %v2309_v32 = vsel %vm6212_vm4, %v2304_v30, %v2308_v46  ;;  %v2374_v53 = vunpack.c.l.b16 %v2299_v20  ;;  %v2322_v46 = vrot.slane %v2320_v28, 5  ;;  %v2326_v16 = vrot.slane %v2324_v23, 4 }
 0x147   : > { %v1447_v25 = vor.u32 %v1446_v3, %v6922_v39  ;;  %v2375_v4 = vunpack.c.l.b16 %v2309_v32  ;;  %v1438_v3 = vrot.slane %v1437_v63, 4  ;;  %v1452_v28 = vrot.slane %v1450_v1, 5 }
 0x148   : > { %v976_v31 = vpop.f32.mrf.mxu0  ;;  %v2327_v44 = vor.u32 %v2326_v16, %v2322_v46  ;;  %v1458_v63 = vshll.u32 %v5554_v10, 16  ;;  %v5702_v16 = vld [vmem:[%s6183_s16 + $0x84] sm:$0xf] }
 0x149   : > { %v6917_v54 = vadd.f32 %v976_v31, %v750_v59  ;;  %v1202_v22 = vpop.f32.mrf.mxu3  ;;  %v6943_v59 = vld [vmem:[%s6183_s16 + $0x74] sm:$0x1]  ;;  %v2316_v31 = vrot.slane %v2314_v38, 5  ;;  %v1448_v20 = vrot.slane %v1447_v25, 4 }
 0x14a   : > { %v6925_v2 = vadd.f32 %v1202_v22, %v6781_v37  ;;  %v1744_v37 = vrot.slane %v6931_v62, 5  ;;  %v1747_v13 = vrot.slane %v6943_v59, 5 }
 0x14b   : > { %v1453_v1 = vsel %vm6212_vm4, %v1448_v20, %v1452_v28 }
 0x14c   : > { %v1746_v57 = vrot.slane %v1744_v37, 4  ;;  %v1745_v5 = vsel %vm6250_vm7, %v5589_v60, %v1744_v37  ;;  %5673 = vmatmul.msk.bf16.gmra.mxu2 %vm561_vm1, %v5980_v24  ;;  %v2317_v37 = vor.u32 %v2316_v31, %v2313_v21  ;;  %v2330_v60 = vshll.u32 %v6953_v47, 16 }
 0x14d   : > { %v1774_v51 = vunpack.c.l.b16 %v1745_v5  ;;  %v1455_v24 = vshrl.u32 %v5554_v10, 16  ;;  %v2328_v21 = vrot.slane %v2327_v44, 4  ;;  %v6978_v5 = vld [vmem:[%s6183_s16 + $0x88] sm:$0xf]  ;;  %v2335_v10 = vshrl.u32 %v5702_v16, 16 }
 0x14e   : > { %v1748_v38 = vsel %vm6250_vm7, %v1746_v57, %v1747_v13  ;;  %v1468_v57 = vshrl.u32 %v6931_v62, 16  ;;  %v2332_v31 = vrot.slane %v2330_v60, 5  ;;  %v5558_v44 = vld [vmem:[%s6183_s16 + $0x7c] sm:$0xf]  ;;  %v2348_v60 = vshrl.u32 %v6978_v5, 16 }
 0x14f   : > { %v1775_v23 = vunpack.c.l.b16 %v1748_v38  ;;  %v2338_v38 = vshll.u32 %v5702_v16, 16 }
 0x150   : > { %v979_v30 = vpop.f32.mrf.mxu0 }
 0x151   : > { %v6949_v41 = vadd.f32 %v979_v30, %v6428_v48  ;;  %v1204_v22 = vpop.f32.mrf.mxu3  ;;  %v2387_v48 = vpack.c.b16 %v2375_v4, %v2374_v53  ;;  %v1786_v25 = vpack.c.b16 %v1775_v23, %v1774_v51  ;;  %v1464_v30 = vshll.u32 %v6931_v62, 16 }
 0x152   : > { %v6959_v32 = vadd.f32 %v1204_v22, %v6802_v42  ;;  %v755_v42 = vadd.f32 %v6425_v45, %v6439_v8  ;;  %v2318_v4 = vrot.slane %v2317_v37, 4  ;;  %v1457_v45 = vrot.slane %v1455_v24, 4 }
 0x153   : > { %5567 = vmatmul.msk.bf16.gmra.mxu0 %vm561_vm1, %v1530_v14  ;;  %v1443_v14 = vsel %vm6212_vm4, %v1438_v3, %v6922_v39  ;;  %v1460_v8 = vrot.slane %v1458_v63, 5  ;;  %v1519_v51 = vunpack.c.l.b16 %v1453_v1  ;;  %v1466_v22 = vrot.slane %v1464_v30, 5 }
 0x154   : > { %v1518_v13 = vunpack.c.l.b16 %v1443_v14  ;;  %v1470_v3 = vrot.slane %v1468_v57, 4  ;;  %v2323_v28 = vsel %vm6212_vm4, %v2318_v4, %v2322_v46  ;;  %v2344_v23 = vshll.u32 %v6978_v5, 16  ;;  %v5580_v14 = vld [vmem:[%s6183_s16 + $0x78] sm:$0xe] }
 0x155   : > { %5600 = vmatmul.msk.bf16.gmra.mxu1 %vm561_vm1, %v1786_v25  ;;  %v1461_v37 = vor.u32 %v1460_v8, %v1457_v45  ;;  %v1751_v25 = vrot.slane %v5558_v44, 5  ;;  %v2376_v30 = vunpack.c.l.b16 %v2323_v28  ;;  %v2337_v46 = vrot.slane %v2335_v10, 4  ;;  %v5981_v8 = vld [vmem:[%s6183_s16 + $0x84] sm:$0xff] }
 0x156   : > { %5713 = vmatmul.msk.bf16.gmra.mxu3 %vm561_vm1, %v2387_v48  ;;  %v2333_v48 = vsel %vm6212_vm4, %v2328_v21, %v2332_v31  ;;  %v1531_v24 = vpack.c.b16 %v1519_v51, %v1518_v13  ;;  %v1471_v63 = vor.u32 %v1470_v3, %v1466_v22  ;;  %v2350_v4 = vrot.slane %v2348_v60, 4 }
 0x157   : > { %v2377_v57 = vunpack.c.l.b16 %v2333_v48  ;;  %v5590_v21 = vrot.slane %v5580_v14, 9  ;;  %v1753_v31 = vrot.slane %v1751_v25, 4  ;;  %v1462_v45 = vrot.slane %v1461_v37, 4 }
 0x158   : > { %v981_v53 = vpop.f32.mrf.mxu0  ;;  %v1472_v51 = vrot.slane %v1471_v63, 4 }
 0x159   : > { %v6975_v62 = vadd.f32 %v981_v53, %v755_v42  ;;  %v1207_v39 = vpop.f32.mrf.mxu3  ;;  %v2340_v42 = vrot.slane %v2338_v38, 5  ;;  %v2346_v53 = vrot.slane %v2344_v23, 5  ;;  %v1752_v10 = vsel %vm6250_vm7, %v5590_v21, %v1751_v25  ;;  %v5557_v23 = vld [vmem:[%s6183_s16 + $0x78] sm:$0xf] }
 0x15a   : > { %v6981_v20 = vadd.f32 %v1207_v39, %v6840_v36  ;;  %v1474_v36 = vshll.u32 %v6943_v59, 16  ;;  %v5559_v39 = vld [vmem:[%s6183_s16 + $0x80] sm:$0x1]  ;;  %v6998_v59 = vld [vmem:[%s6183_s16 + $0x8c] sm:$0x1]  ;;  %v2388_v48 = vpack.c.b16 %v2377_v57, %v2376_v30  ;;  %v760_v25 = vadd.f32 %v6447_v52, %v6461_v17 }
 0x15b   : > { %v1754_v38 = vrot.slane %v5559_v39, 5  ;;  %v2341_v37 = vor.u32 %v2340_v42, %v2337_v46  ;;  %v2351_v60 = vor.u32 %v2350_v4, %v2346_v53  ;;  %v2354_v14 = vshll.u32 %v6998_v59, 16 }
 0x15c   : > { %v1476_v3 = vrot.slane %v1474_v36, 5  ;;  %5674 = vmatmul.msk.bf16.gmra.mxu2 %vm561_vm1, %v5981_v8  ;;  %v1479_v30 = vshrl.u32 %v5557_v23, 16  ;;  %v1482_v57 = vshll.u32 %v5557_v23, 16  ;;  %v1488_v46 = vshll.u32 %v5558_v44, 16 }
 0x15d   : > { %v1755_v63 = vsel %vm6250_vm7, %v1753_v31, %v1754_v38  ;;  %v1492_v4 = vshrl.u32 %v5558_v44, 16  ;;  %v2342_v21 = vrot.slane %v2341_v37, 4  ;;  %v2352_v31 = vrot.slane %v2351_v60, 4 }
 0x15e   : > { %v1777_v36 = vunpack.c.l.b16 %v1755_v63  ;;  %v2356_v8 = vrot.slane %v2354_v14, 5  ;;  %v1212_v44 = vadd.f32 %v6469_v12, %v6892_v43  ;;  %v1498_v63 = vshll.u32 %v5559_v39, 16 }
 0x15f   : > { %v1213_v12 = vadd.f32 %v6506_v11, %v6917_v54  ;;  %v6052_v11 = vld [vmem:[%s6183_s16 + $0x1c] sm:$0xf] }
 0x160   : > { %v984_v1 = vpop.f32.mrf.mxu0  ;;  %v2357_v38 = vsel %vm6212_vm4, %v2352_v31, %v2356_v8  ;;  %v2544_v54 = vrot.slane %v6052_v11, 5  ;;  %v5716_v8 = vld [vmem:[%s6183_s16 + $0x18] sm:$0xe] }
 0x161   : > { %v6993_v16 = vadd.f32 %v984_v1, %v6452_v6  ;;  %v1209_v13 = vpop.f32.mrf.mxu3  ;;  %v1776_v6 = vunpack.c.l.b16 %v1752_v10  ;;  %v2347_v10 = vsel %vm6212_vm4, %v2342_v21, %v2346_v53  ;;  %v2379_v23 = vunpack.c.l.b16 %v2357_v38 }
 0x162   : > { %v7003_v28 = vadd.f32 %v1209_v13, %v6864_v50  ;;  %v1467_v50 = vsel %vm6212_vm4, %v1462_v45, %v1466_v22  ;;  %v1481_v22 = vrot.slane %v1479_v30, 4  ;;  %v1484_v45 = vrot.slane %v1482_v57, 5 }
 0x163   : > { %5568 = vmatmul.msk.bf16.gmra.mxu0 %vm561_vm1, %v1531_v24  ;;  %v1477_v24 = vsel %vm6212_vm4, %v1472_v51, %v1476_v3  ;;  %v1787_v42 = vpack.c.b16 %v1777_v36, %v1776_v6  ;;  %v1520_v52 = vunpack.c.l.b16 %v1467_v50  ;;  %v1490_v51 = vrot.slane %v1488_v46, 5 }
 0x164   : > { %v1521_v17 = vunpack.c.l.b16 %v1477_v24  ;;  %v1494_v3 = vrot.slane %v1492_v4, 4  ;;  %v2378_v6 = vunpack.c.l.b16 %v2347_v10  ;;  %v1485_v60 = vor.u32 %v1484_v45, %v1481_v22  ;;  %v6053_v22 = vld [vmem:[%s6183_s16 + $0x20] sm:$0x1] }
 0x165   : > { %5601 = vmatmul.msk.bf16.gmra.mxu1 %vm561_vm1, %v1787_v42  ;;  %v1500_v24 = vrot.slane %v1498_v63, 5  ;;  %v2547_v45 = vrot.slane %v6053_v22, 5 }
 0x166   : > { %5714 = vmatmul.msk.bf16.gmra.mxu3 %vm561_vm1, %v2388_v48  ;;  %v1532_v48 = vpack.c.b16 %v1521_v17, %v1520_v52  ;;  %v1495_v14 = vor.u32 %v1494_v3, %v1490_v51  ;;  %v1486_v53 = vrot.slane %v1485_v60, 4  ;;  %v5726_v52 = vrot.slane %v5716_v8, 9 }
 0x167   : > { %v2546_v17 = vrot.slane %v2544_v54, 4 }
 0x168   : > { %v986_v1 = vpop.f32.mrf.mxu0  ;;  %v1496_v50 = vrot.slane %v1495_v14, 4  ;;  %v1491_v39 = vsel %vm6212_vm4, %v1486_v53, %v1490_v51  ;;  %v1215_v51 = vadd.f32 %v6562_v56, %v6975_v62  ;;  %v5717_v62 = vld [vmem:[%s6183_s16 + $0x24] sm:$0xe] }
 0x169   : > { %v7018_v13 = vadd.f32 %v986_v1, %v760_v25  ;;  %v2389_v25 = vpack.c.b16 %v2379_v23, %v2378_v6  ;;  %v1522_v46 = vunpack.c.l.b16 %v1491_v39  ;;  %v1214_v1 = vadd.f32 %v6535_v49, %v6949_v41 }
 0x16a   : > { %v1501_v30 = vsel %vm6212_vm4, %v1496_v50, %v1500_v24  ;;  %v2545_v49 = vsel %vm6250_vm7, %v5726_v52, %v2544_v54  ;;  %v2548_v41 = vsel %vm6250_vm7, %v2546_v17, %v2547_v45  ;;  %v5727_v14 = vrot.slane %v5717_v62, 9  ;;  %v7944_v50 = vld [vmem:[#allocation3_spill] sm:$0xff] }
 0x16b   : > { %v1523_v42 = vunpack.c.l.b16 %v1501_v30  ;;  %v2614_v38 = vunpack.c.l.b16 %v2545_v49  ;;  %v1217_v24 = vadd.f32 %v7944_v50, %v7018_v13  ;;  %v5718_v13 = vld [vmem:[%s6183_s16 + $0x30] sm:$0xe]  ;;  %v6057_v52 = vld [vmem:[%s6183_s16 + $0x38] sm:$0x1] }
 0x16c   : > { %v5728_v54 = vrot.slane %v5718_v13, 9  ;;  %v2561_v17 = vrot.slane %v6057_v52, 5  ;;  %v2575_v13 = vrot.slane %v6719_v61, 5  ;;  %v5721_v61 = vld [vmem:[%s6183_s16 + $0x54] sm:$0xe] }
 0x16d   : > { %v1533_v4 = vpack.c.b16 %v1523_v42, %v1522_v46 }
 0x170   : > { %v1576_v37 = vpop.f32.mrf.mxu0 }
 0x171   : > { %v7027_v36 = vadd.f32 %v1576_v37, %v1212_v44  ;;  %v2615_v44 = vunpack.c.l.b16 %v2548_v41  ;;  %v6054_v37 = vld [vmem:[%s6183_s16 + $0x28] sm:$0xf] }
 0x172   : > { %v2551_v60 = vrot.slane %v6054_v37, 5 }
 0x173   : > { %5569 = vmatmul.msk.bf16.gmra.mxu0 %vm561_vm1, %v1532_v48  ;;  %v1216_v48 = vadd.f32 %v6585_v40, %v6993_v16  ;;  %v2634_v6 = vpack.c.b16 %v2615_v44, %v2614_v38 }
 0x174   : > { %v2553_v63 = vrot.slane %v2551_v60, 4  ;;  %v2552_v16 = vsel %vm6250_vm7, %v5727_v14, %v2551_v60  ;;  %v5719_v60 = vld [vmem:[%s6183_s16 + $0x3c] sm:$0xe] }
 0x175   : > { %v2616_v39 = vunpack.c.l.b16 %v2552_v16  ;;  %v5729_v62 = vrot.slane %v5719_v60, 9 }
 0x176   : > { %5715 = vmatmul.msk.bf16.gmra.mxu3 %vm561_vm1, %v2389_v25  ;;  %v6055_v25 = vld [vmem:[%s6183_s16 + $0x2c] sm:$0x1] }
 0x177   : > { %v2554_v53 = vrot.slane %v6055_v25, 5 }
 0x178   : > { %v1578_v43 = vpop.f32.mrf.mxu0 }
 0x179   : > { %v7037_v57 = vadd.f32 %v1578_v43, %v1213_v12  ;;  %v2555_v12 = vsel %vm6250_vm7, %v2553_v63, %v2554_v53  ;;  %v6059_v63 = vld [vmem:[%s6183_s16 + $0x44] sm:$0x1] }
 0x17a   : > { %v2617_v30 = vunpack.c.l.b16 %v2555_v12  ;;  %v2568_v25 = vrot.slane %v6059_v63, 5  ;;  %v1830_v63 = vpop.f32.mrf.mxu1 }
 0x17c   : > { %v2635_v46 = vpack.c.b16 %v2617_v30, %v2616_v39  ;;  %v6060_v30 = vld [vmem:[%s6183_s16 + $0x4c] sm:$0xf] }
 0x180   : > { %v1581_v21 = vpop.f32.mrf.mxu0 }
 0x181   : > { %v7042_v31 = vadd.f32 %v1581_v21, %v1214_v1  ;;  %v6056_v1 = vld [vmem:[%s6183_s16 + $0x34] sm:$0xf]  ;;  %v7945_v21 = vld [vmem:[#allocation4_spill] sm:$0xff] }
 0x183   : > { %5570 = vmatmul.msk.bf16.gmra.mxu0 %vm561_vm1, %v1533_v4  ;;  %v2558_v4 = vrot.slane %v6056_v1, 5  ;;  %v5720_v1 = vld [vmem:[%s6183_s16 + $0x48] sm:$0xe] }
 0x185   : > { %v2560_v8 = vrot.slane %v2558_v4, 4  ;;  %v2559_v45 = vsel %vm6250_vm7, %v5728_v54, %v2558_v4  ;;  %v5730_v4 = vrot.slane %v5720_v1, 9  ;;  %v1832_v1 = vpop.f32.mrf.mxu1 }
 0x186   : > { %v2618_v49 = vunpack.c.l.b16 %v2559_v45 }
 0x188   : > { %v1583_v3 = vpop.f32.mrf.mxu0 }
 0x189   : > { %v7053_v10 = vadd.f32 %v1583_v3, %v1215_v51  ;;  %v2562_v51 = vsel %vm6250_vm7, %v2560_v8, %v2561_v17 }
 0x18a   : > { %v2619_v41 = vunpack.c.l.b16 %v2562_v51  ;;  %v7947_v51 = vld [vmem:[#allocation6_spill] sm:$0xff] }
 0x18c   : > { %v2636_v38 = vpack.c.b16 %v2619_v41, %v2618_v49  ;;  %v2579_v49 = vrot.slane %v7947_v51, 5  ;;  %v5723_v51 = vld [vmem:[%s6183_s16 + $0x6c] sm:$0xe] }
 0x190   : > { %v1586_v23 = vpop.f32.mrf.mxu0 }
 0x191   : > { %v7058_v56 = vadd.f32 %v1586_v23, %v1216_v48  ;;  %v6058_v48 = vld [vmem:[%s6183_s16 + $0x40] sm:$0xf]  ;;  %v7946_v23 = vld [vmem:[#allocation5_spill] sm:$0xff] }
 0x193   : > { %5737 = vmatmul.msk.bf16.vlgmr.msrb.gmra.mxu0 %vm561_vm1, %v2634_v6  ;;  %v2565_v6 = vrot.slane %v6058_v48, 5  ;;  %v7948_v48 = vld [vmem:[#allocation7_spill] sm:$0xff] }
 0x195   : > { %v2567_v14 = vrot.slane %v2565_v6, 4  ;;  %v2566_v53 = vsel %vm6250_vm7, %v5729_v62, %v2565_v6  ;;  %v2582_v6 = vrot.slane %v7948_v48, 5 }
 0x197   : > { %v2569_v50 = vsel %vm6250_vm7, %v2567_v14, %v2568_v25 }
 0x198   : > { %v1588_v40 = vpop.f32.mrf.mxu0  ;;  %v2621_v16 = vunpack.c.l.b16 %v2569_v50 }
 0x199   : > { %v7069_v43 = vadd.f32 %v1588_v40, %v1217_v24  ;;  %v2620_v40 = vunpack.c.l.b16 %v2566_v53  ;;  %v7949_v53 = vld [vmem:[#allocation8_spill] sm:$0xff] }
 0x19a   : > { %v2586_v50 = vrot.slane %v7949_v53, 5 }
 0x19b   : > { %v2637_v12 = vpack.c.b16 %v2621_v16, %v2620_v40  ;;  %v5722_v16 = vld [vmem:[%s6183_s16 + $0x60] sm:$0xe] }
 0x1a0   : > { %v1591_v42 = vpop.f32.mrf.mxu0 }
 0x1a1   : > { %v7073_v11 = vadd.f32 %v1591_v42, %v7945_v21 }
 0x1a3   : > { %5738 = vmatmul.msk.bf16.gmra.mxu0 %vm561_vm1, %v2635_v46  ;;  %v2572_v46 = vrot.slane %v6060_v30, 5  ;;  %v2588_v30 = vrot.slane %v2586_v50, 4 }
 0x1a5   : > { %v2574_v21 = vrot.slane %v2572_v46, 4 }
 0x1a7   : > { %v2576_v8 = vsel %vm6250_vm7, %v2574_v21, %v2575_v13 }
 0x1a8   : > { %v1593_v22 = vpop.f32.mrf.mxu0  ;;  %v2623_v17 = vunpack.c.l.b16 %v2576_v8 }
 0x1a9   : > { %v7083_v3 = vadd.f32 %v1593_v22, %v6670_v19 }
 0x1b0   : > { %v1596_v44 = vpop.f32.mrf.mxu0 }
 0x1b1   : > { %v7087_v37 = vadd.f32 %v1596_v44, %v7946_v23  ;;  %v2581_v44 = vrot.slane %v2579_v49, 4 }
 0x1b3   : > { %5739 = vmatmul.msk.bf16.gmra.mxu0 %vm561_vm1, %v2636_v38  ;;  %v5731_v38 = vrot.slane %v5721_v61, 9  ;;  %v2583_v60 = vsel %vm6250_vm7, %v2581_v44, %v2582_v6  ;;  %v5733_v61 = vrot.slane %v5723_v51, 9 }
 0x1b4   : > { %v2625_v14 = vunpack.c.l.b16 %v2583_v60 }
 0x1b8   : > { %v1598_v19 = vpop.f32.mrf.mxu0 }
 0x1b9   : > { %v7097_v24 = vadd.f32 %v1598_v19, %v6726_v7  ;;  %v2573_v7 = vsel %vm6250_vm7, %v5730_v4, %v2572_v46  ;;  %v2432_v46 = vpop.f32.mrf.mxu3 }
 0x1c0   : > { %v1601_v39 = vpop.f32.mrf.mxu0 }
 0x1c1   : > { %v7101_v42 = vadd.f32 %v1601_v39, %v6752_v15  ;;  %v2622_v15 = vunpack.c.l.b16 %v2573_v7  ;;  %v5732_v39 = vrot.slane %v5722_v16, 9 }
 0x1c3   : > { %5740 = vmatmul.msk.bf16.gmra.mxu0 %vm561_vm1, %v2637_v12  ;;  %v2638_v22 = vpack.c.b16 %v2623_v17, %v2622_v15  ;;  %v2018_v12 = vpop.f32.mrf.mxu2  ;;  %v2587_v21 = vsel %vm6250_vm7, %v5732_v39, %v2586_v50  ;;  %v2434_v17 = vpop.f32.mrf.mxu3  ;;  %v5724_v50 = vld [vmem:[%s6183_s16 + $0x78] sm:$0xe] }
 0x1c8   : > { %v1603_v54 = vpop.f32.mrf.mxu0 }
 0x1c9   : > { %v7111_v52 = vadd.f32 %v1603_v54, %v6783_v26  ;;  %v2580_v26 = vsel %vm6250_vm7, %v5731_v38, %v2579_v49  ;;  %v2626_v54 = vunpack.c.l.b16 %v2587_v21  ;;  %v1835_v49 = vpop.f32.mrf.mxu1 }
 0x1cb   : > { %v2020_v8 = vpop.f32.mrf.mxu2 }
 0x1d0   : > { %v1606_v45 = vpop.f32.mrf.mxu0 }
 0x1d1   : > { %v7115_v41 = vadd.f32 %v1606_v45, %v6805_v27  ;;  %v2624_v27 = vunpack.c.l.b16 %v2580_v26 }
 0x1d3   : > { %5741 = vmatmul.msk.bf16.gmra.mxu0 %vm561_vm1, %v2638_v22  ;;  %v2639_v25 = vpack.c.b16 %v2625_v14, %v2624_v27  ;;  %v2023_v44 = vpop.f32.mrf.mxu2  ;;  %v1837_v27 = vpop.f32.mrf.mxu1 }
 0x1d8   : > { %v1608_v23 = vpop.f32.mrf.mxu0 }
 0x1d9   : > { %v7125_v62 = vadd.f32 %v1608_v23, %v6842_v58  ;;  %v2589_v58 = vrot.slane %v6835_v34, 5  ;;  %v2593_v34 = vrot.slane %v6858_v9, 5  ;;  %v7155_v23 = vpop.f32.mrf.mxu3 }
 0x1db   : > { %v2590_v13 = vsel %vm6250_vm7, %v2588_v30, %v2589_v58  ;;  %v2595_v38 = vrot.slane %v2593_v34, 4  ;;  %v2594_v6 = vsel %vm6250_vm7, %v5733_v61, %v2593_v34  ;;  %v2603_v30 = vrot.slane %v6953_v47, 5  ;;  %v7168_v58 = vpop.f32.mrf.mxu1 }
 0x1dc   : > { %v2627_v7 = vunpack.c.l.b16 %v2590_v13  ;;  %v2628_v26 = vunpack.c.l.b16 %v2594_v6  ;;  %v2607_v61 = vrot.slane %v6978_v5, 5 }
 0x1de   : > { %v2640_v15 = vpack.c.b16 %v2627_v7, %v2626_v54 }
 0x1e0   : > { %v1611_v19 = vpop.f32.mrf.mxu0 }
 0x1e1   : > { %v7129_v40 = vadd.f32 %v1611_v19, %v6867_v18  ;;  %v2600_v19 = vrot.slane %v6920_v33, 5  ;;  %v7165_v16 = vpop.f32.mrf.mxu3 }
 0x1e3   : > { %5742 = vmatmul.msk.bf16.gmra.mxu0 %vm561_vm1, %v2639_v25  ;;  %v7157_v25 = vpop.f32.mrf.mxu2  ;;  %v2602_v39 = vrot.slane %v2600_v19, 4 }
 0x1e8   : > { %v1613_v4 = vpop.f32.mrf.mxu0 }
 0x1e9   : > { %v7139_v18 = vadd.f32 %v1613_v4, %v6901_v35  ;;  %v2596_v35 = vrot.slane %v6896_v55, 5  ;;  %v1880_v4 = vadd.f32 %v1830_v63, %v7027_v36  ;;  %v1881_v36 = vadd.f32 %v1832_v1, %v7037_v57  ;;  %v7186_v63 = vld [vmem:[%s7927_s2] ss:$0 sm:$0xff] }
 0x1ea   : > { %v2610_v57 = vrot.slane %v6998_v59, 5 }
 0x1eb   : > { %v2597_v9 = vsel %vm6250_vm7, %v2595_v38, %v2596_v35  ;;  %v7178_v54 = vpop.f32.mrf.mxu2  ;;  %v2068_v7 = vadd.f32 %v2018_v12, %v1880_v4  ;;  %v5725_v12 = vld [vmem:[%s6183_s16 + $0x84] sm:$0xe] }
 0x1ec   : > { %v2629_v60 = vunpack.c.l.b16 %v2597_v9  ;;  %v5735_v9 = vrot.slane %v5725_v12, 9 }
 0x1ed   : > { %v2482_v34 = vadd.f32 %v2432_v46, %v2068_v7  ;;  %v2609_v46 = vrot.slane %v2607_v61, 4 }
 0x1ee   : > { %v2641_v14 = vpack.c.b16 %v2629_v60, %v2628_v26  ;;  %v1882_v60 = vadd.f32 %v1835_v49, %v7042_v31 }
 0x1f0   : > { %v1616_v22 = vpop.f32.mrf.mxu0 }
 0x1f1   : > { %v7143_v45 = vadd.f32 %v1616_v22, %v6925_v2  ;;  %v7180_v22 = vpop.f32.mrf.mxu3 }
 0x1f3   : > { %5743 = vmatmul.msk.bf16.gmra.mxu0 %vm561_vm1, %v2640_v15  ;;  %v7195_v1 = vpop.f32.mrf.mxu2 }
 0x1f8   : > { %v1618_v48 = vpop.f32.mrf.mxu0 }
 0x1f9   : > { %v7153_v2 = vadd.f32 %v1618_v48, %v6959_v32  ;;  %v5734_v32 = vrot.slane %v5724_v50, 9  ;;  %v2069_v48 = vadd.f32 %v2020_v8, %v1881_v36  ;;  %v2608_v50 = vsel %vm6250_vm7, %v5735_v9, %v2607_v61 }
 0x1fb   : > { %v2601_v33 = vsel %vm6250_vm7, %v5734_v32, %v2600_v19  ;;  %v2483_v5 = vadd.f32 %v2434_v17, %v2069_v48  ;;  %v7200_v19 = vpop.f32.mrf.mxu3 }
 0x1fc   : > { %v2630_v15 = vunpack.c.l.b16 %v2601_v33 }
 0x200   : > { %v1621_v55 = vpop.f32.mrf.mxu0 }
 0x201   : > { %v7161_v53 = vadd.f32 %v1621_v55, %v6981_v20  ;;  %v2604_v20 = vsel %vm6250_vm7, %v2602_v39, %v2603_v30  ;;  %v2611_v55 = vsel %vm6250_vm7, %v2609_v46, %v2610_v57  ;;  %v2070_v39 = vadd.f32 %v2023_v44, %v1882_v60  ;;  %v7214_v44 = vpop.f32.mrf.mxu2 }
 0x202   : > { %v2631_v47 = vunpack.c.l.b16 %v2604_v20  ;;  %v2633_v4 = vunpack.c.l.b16 %v2611_v55  ;;  %v3026_v20 = vld [vmem:[#allocation2] sm:$0xf] }
 0x203   : > { %5744 = vmatmul.msk.bf16.gmra.mxu0 %vm561_vm1, %v2641_v14 }
 0x204   : > { %v2642_v51 = vpack.c.b16 %v2631_v47, %v2630_v15  ;;  %v1883_v47 = vadd.f32 %v1837_v27, %v7053_v10 }
 0x206   : > { %v2071_v48 = vadd.f32 %v7157_v25, %v1883_v47  ;;  %v3033_v25 = vld [vmem:[#allocation2 + $0x8] sm:$0x1] }
 0x208   : > { %v1623_v21 = vpop.f32.mrf.mxu0  ;;  %v2485_v55 = vadd.f32 %v7165_v16, %v2071_v48 }
 0x209   : > { %v7176_v13 = vadd.f32 %v1623_v21, %v7003_v28  ;;  %v7189_v28 = vpop.f32.mrf.mxu1  ;;  %v2632_v21 = vunpack.c.l.b16 %v2608_v50 }
 0x20b   : > { %v2643_v61 = vpack.c.b16 %v2633_v4, %v2632_v21  ;;  %v7244_v4 = vpop.f32.mrf.mxu2 }
 0x210   : > { %v2686_v38 = vpop.f32.mrf.mxu0 }
 0x211   : > { %v2736_v35 = vadd.f32 %v2686_v38, %v2482_v34  ;;  %v7204_v30 = vpop.f32.mrf.mxu1  ;;  %v2484_v34 = vadd.f32 %v7155_v23, %v2070_v39 }
 0x213   : > { %v2760_v6 = vadd.f32 %v7186_v63, %v2736_v35  ;;  %5745 = vmatmul.msk.bf16.gmra.mxu0 %vm561_vm1, %v2642_v51 }
 0x215   : > { %v2780_v26 = vmax.f32 %v2760_v6, 0.0  ;;  %v7220_v6 = vpop.f32.mrf.mxu3 }
 0x217   : > { %v2800_v14 = vpack.c.bf16 %v2780_v26, %v2780_v26 }
 0x218   : > { %v2688_v8 = vpop.f32.mrf.mxu0 }
 0x219   : > { %v2824_v32 = vshrl.u32 %v2800_v14, 16  ;;  %v2737_v59 = vadd.f32 %v2688_v8, %v2483_v5  ;;  %v2827_v17 = vshll.u32 %v2800_v14, 16  ;;  %v7230_v57 = vpop.f32.mrf.mxu1  ;;  %v1884_v8 = vadd.f32 %v7168_v58, %v7058_v56 }
 0x21b   : > { %v2826_v31 = vrot.slane %v2824_v32, 7  ;;  %v2761_v49 = vadd.f32 %v7186_v63, %v2737_v59  ;;  %v2072_v56 = vadd.f32 %v7178_v54, %v1884_v8 }
 0x21d   : > { %v2829_v7 = vor.u32 %v2827_v17, %v2826_v31  ;;  %v2781_v15 = vmax.f32 %v2761_v49, 0.0  ;;  %v2830_v26 = vrot.slane %v2826_v31, 4 }
 0x21f   : > { %v3027_v36 = vsel %vm7209_vm10, %v2829_v7, %v3026_v20  ;;  %v2801_v51 = vpack.c.bf16 %v2781_v15, %v2781_v15  ;;  %v7251_v7 = vpop.f32.mrf.mxu3  ;;  %v3036_v15 = vld [vmem:[#allocation2 + $0xc] sm:$0xf] }
 0x220   : > { %3028 = vst [vmem:[#allocation2] sm:$0xf] %v3027_v36  ;;  %v2691_v38 = vpop.f32.mrf.mxu0  ;;  %v1885_v36 = vadd.f32 %v7189_v28, %v7069_v43  ;;  %v7267_v28 = vpop.f32.mrf.mxu2 }
 0x221   : > { %v2832_v35 = vshrl.u32 %v2801_v51, 16  ;;  %v2738_v12 = vadd.f32 %v2691_v38, %v2484_v34  ;;  %v2835_v27 = vshll.u32 %v2801_v51, 16  ;;  %v7255_v51 = vpop.f32.mrf.mxu1 }
 0x222   : > { %v2073_v43 = vadd.f32 %v7195_v1, %v1885_v36  ;;  %v1886_v1 = vadd.f32 %v7204_v30, %v7073_v11 }
 0x223   : > { %v2834_v23 = vrot.slane %v2832_v35, 7  ;;  %v2762_v46 = vadd.f32 %v7186_v63, %v2738_v12  ;;  %5746 = vmatmul.msk.bf16.gmra.mxu0 %vm561_vm1, %v2643_v61  ;;  %v2486_v61 = vadd.f32 %v7180_v22, %v2072_v56 }
 0x224   : > { %v2074_v11 = vadd.f32 %v7214_v44, %v1886_v1 }
 0x225   : > { %v2837_v60 = vor.u32 %v2835_v27, %v2834_v23  ;;  %v2839_v5 = vrot.slane %v2834_v23, 4  ;;  %v2782_v14 = vmax.f32 %v2762_v46, 0.0 }
 0x227   : > { %v3099_v50 = vld [vmem:[#allocation2] sm:$0x1]  ;;  %v2838_v32 = vsel %vm7233_vm15, %v2830_v26, %v2837_v60  ;;  %v3034_v59 = vsel %vm7224_vm14, %v2839_v5, %v3033_v25  ;;  %v2802_v39 = vpack.c.bf16 %v2782_v14, %v2782_v14  ;;  %v3040_v60 = vld [vmem:[#allocation2 + $0x14] sm:$0x1] }
 0x228   : > { %v3100_v31 = vsel %vm7224_vm14, 0, %v3099_v50  ;;  %3030 = vst.msk [vmem:[#allocation2 + $0x4] sm:$0xf] %vm3023_vm8, %v2838_v32  ;;  %v2693_v17 = vpop.f32.mrf.mxu0  ;;  %v2487_v50 = vadd.f32 %v7200_v19, %v2073_v43  ;;  %v7273_v32 = vpop.f32.mrf.mxu3 }
 0x229   : > { %3101 = vst [vmem:[#allocation2] sm:$0x1] %v3100_v31  ;;  %v2841_v16 = vshrl.u32 %v2802_v39, 16  ;;  %v2739_v49 = vadd.f32 %v2693_v17, %v2485_v55  ;;  %v2844_v21 = vshll.u32 %v2802_v39, 16 }
 0x22a   : > { %3035 = vst [vmem:[#allocation2 + $0x8] sm:$0x1] %v3034_v59 }
 0x22b   : > { %v2843_v58 = vrot.slane %v2841_v16, 7  ;;  %v2763_v20 = vadd.f32 %v7186_v63, %v2739_v49  ;;  %v1852_v16 = vpop.f32.mrf.mxu1 }
 0x22d   : > { %v2846_v47 = vor.u32 %v2844_v21, %v2843_v58  ;;  %v2783_v34 = vmax.f32 %v2763_v20, 0.0  ;;  %v2847_v5 = vrot.slane %v2843_v58, 4 }
 0x22f   : > { %v3037_v38 = vsel %vm7209_vm10, %v2846_v47, %v3036_v15  ;;  %v2803_v35 = vpack.c.bf16 %v2783_v34, %v2783_v34  ;;  %v2040_v15 = vpop.f32.mrf.mxu2  ;;  %v3043_v47 = vld [vmem:[#allocation2 + $0x18] sm:$0xf] }
 0x230   : > { %3038 = vst [vmem:[#allocation2 + $0xc] sm:$0xf] %v3037_v38  ;;  %v2696_v12 = vpop.f32.mrf.mxu0  ;;  %v2488_v38 = vadd.f32 %v7220_v6, %v2074_v11 }
 0x231   : > { %v3130_v48 = vld [vmem:[#allocation2 + $0x8] sm:$0x1]  ;;  %v2849_v23 = vshrl.u32 %v2803_v35, 16  ;;  %v2740_v27 = vadd.f32 %v2696_v12, %v2486_v61  ;;  %v2852_v25 = vshll.u32 %v2803_v35, 16  ;;  %v1887_v61 = vadd.f32 %v7230_v57, %v7083_v3 }
 0x232   : > { %v3131_v22 = vsel %vm7260_vm0, 0, %v3130_v48  ;;  %v7291_v48 = vpop.f32.mrf.mxu3 }
 0x233   : > { %3132 = vst [vmem:[#allocation2 + $0x8] sm:$0x1] %v3131_v22  ;;  %v2851_v46 = vrot.slane %v2849_v23, 7  ;;  %v2764_v26 = vadd.f32 %v7186_v63, %v2740_v27  ;;  %v2075_v22 = vadd.f32 %v7244_v4, %v1887_v61  ;;  %v1888_v4 = vadd.f32 %v7255_v51, %v7087_v37 }
 0x235   : > { %v2854_v14 = vor.u32 %v2852_v25, %v2851_v46  ;;  %v2856_v55 = vrot.slane %v2851_v46, 4  ;;  %v2784_v8 = vmax.f32 %v2764_v26, 0.0  ;;  %v1855_v46 = vpop.f32.mrf.mxu1  ;;  %v3047_v26 = vld [vmem:[#allocation2 + $0x20] sm:$0x1]  ;;  %v2076_v37 = vadd.f32 %v7267_v28, %v1888_v4 }
 0x237   : > { %v3102_v59 = vld [vmem:[#allocation2 + $0xc] sm:$0x1]  ;;  %v2855_v39 = vsel %vm7233_vm15, %v2847_v5, %v2854_v14  ;;  %v3041_v31 = vsel %vm7224_vm14, %v2856_v55, %v3040_v60  ;;  %v2804_v17 = vpack.c.bf16 %v2784_v8, %v2784_v8  ;;  %v2489_v8 = vadd.f32 %v7251_v7, %v2075_v22 }
 0x238   : > { %v3103_v49 = vsel %vm7224_vm14, 0, %v3102_v59  ;;  %3039 = vst.msk [vmem:[#allocation2 + $0x10] sm:$0xf] %vm3023_vm8, %v2855_v39  ;;  %v2698_v19 = vpop.f32.mrf.mxu0 }
 0x239   : > { %3104 = vst [vmem:[#allocation2 + $0xc] sm:$0x1] %v3103_v49  ;;  %v2858_v56 = vshrl.u32 %v2804_v17, 16  ;;  %v2741_v58 = vadd.f32 %v2698_v19, %v2487_v50  ;;  %v2861_v21 = vshll.u32 %v2804_v17, 16  ;;  %v2043_v50 = vpop.f32.mrf.mxu2 }
 0x23a   : > { %3042 = vst [vmem:[#allocation2 + $0x14] sm:$0x1] %v3041_v31 }
 0x23b   : > { %v2860_v30 = vrot.slane %v2858_v56, 7  ;;  %v2765_v20 = vadd.f32 %v7186_v63, %v2741_v58  ;;  %v2457_v56 = vpop.f32.mrf.mxu3 }
 0x23d   : > { %v2863_v34 = vor.u32 %v2861_v21, %v2860_v30  ;;  %v2785_v36 = vmax.f32 %v2765_v20, 0.0  ;;  %v2864_v60 = vrot.slane %v2860_v30, 4  ;;  %v1857_v30 = vpop.f32.mrf.mxu1  ;;  %v3050_v21 = vld [vmem:[#allocation2 + $0x24] sm:$0xf] }
 0x23f   : > { %v3044_v35 = vsel %vm7209_vm10, %v2863_v34, %v3043_v47  ;;  %v2805_v12 = vpack.c.bf16 %v2785_v36, %v2785_v36  ;;  %v1889_v34 = vadd.f32 %v1852_v16, %v7097_v24  ;;  %v2490_v36 = vadd.f32 %v7273_v32, %v2076_v37  ;;  %v3054_v16 = vld [vmem:[#allocation2 + $0x2c] sm:$0x1] }
 0x240   : > { %3045 = vst [vmem:[#allocation2 + $0x18] sm:$0xf] %v3044_v35  ;;  %v2701_v44 = vpop.f32.mrf.mxu0 }
 0x241   : > { %v3133_v23 = vld [vmem:[#allocation2 + $0x14] sm:$0x1]  ;;  %v2866_v27 = vshrl.u32 %v2805_v12, 16  ;;  %v2742_v43 = vadd.f32 %v2701_v44, %v2488_v38  ;;  %v2869_v6 = vshll.u32 %v2805_v12, 16  ;;  %v2045_v35 = vpop.f32.mrf.mxu2 }
 0x242   : > { %v3134_v25 = vsel %vm7260_vm0, 0, %v3133_v23 }
 0x243   : > { %3135 = vst [vmem:[#allocation2 + $0x14] sm:$0x1] %v3134_v25  ;;  %v2868_v3 = vrot.slane %v2866_v27, 7  ;;  %v2766_v57 = vadd.f32 %v7186_v63, %v2742_v43  ;;  %v2077_v27 = vadd.f32 %v2040_v15, %v1889_v34  ;;  %v2459_v32 = vpop.f32.mrf.mxu3 }
 0x245   : > { %v2871_v5 = vor.u32 %v2869_v6, %v2868_v3  ;;  %v2873_v14 = vrot.slane %v2868_v3, 4  ;;  %v2786_v55 = vmax.f32 %v2766_v57, 0.0 }
 0x247   : > { %v3105_v1 = vld [vmem:[#allocation2 + $0x18] sm:$0x1]  ;;  %v2872_v59 = vsel %vm7233_vm15, %v2864_v60, %v2871_v5  ;;  %v3048_v39 = vsel %vm7224_vm14, %v2873_v14, %v3047_v26  ;;  %v2806_v31 = vpack.c.bf16 %v2786_v55, %v2786_v55  ;;  %v2491_v60 = vadd.f32 %v7291_v48, %v2077_v27  ;;  %v1860_v5 = vpop.f32.mrf.mxu1 }
 0x248   : > { %v3106_v17 = vsel %vm7224_vm14, 0, %v3105_v1  ;;  %3046 = vst.msk [vmem:[#allocation2 + $0x1c] sm:$0xf] %vm3023_vm8, %v2872_v59  ;;  %v2703_v49 = vpop.f32.mrf.mxu0  ;;  %v1890_v14 = vadd.f32 %v1855_v46, %v7101_v42 }
 0x249   : > { %3107 = vst [vmem:[#allocation2 + $0x18] sm:$0x1] %v3106_v17  ;;  %v2875_v7 = vshrl.u32 %v2806_v31, 16  ;;  %v2743_v19 = vadd.f32 %v2703_v49, %v2489_v8  ;;  %v2878_v58 = vshll.u32 %v2806_v31, 16  ;;  %v2048_v31 = vpop.f32.mrf.mxu2 }
 0x24a   : > { %3049 = vst [vmem:[#allocation2 + $0x20] sm:$0x1] %v3048_v39  ;;  %v2078_v42 = vadd.f32 %v2043_v50, %v1890_v14 }
 0x24b   : > { %v2877_v51 = vrot.slane %v2875_v7, 7  ;;  %v2767_v11 = vadd.f32 %v7186_v63, %v2743_v19  ;;  %v3057_v7 = vld [vmem:[#allocation2 + $0x30] sm:$0xf] }
 0x24d   : > { %v2880_v20 = vor.u32 %v2878_v58, %v2877_v51  ;;  %v2787_v47 = vmax.f32 %v2767_v11, 0.0  ;;  %v2881_v3 = vrot.slane %v2877_v51, 4  ;;  %v1891_v51 = vadd.f32 %v1857_v30, %v7111_v52  ;;  %v2462_v58 = vpop.f32.mrf.mxu3  ;;  %v3061_v30 = vld [vmem:[#allocation2 + $0x38] sm:$0x1] }
 0x24e   : > { %v2492_v11 = vadd.f32 %v2457_v56, %v2078_v42 }
 0x24f   : > { %v3051_v61 = vsel %vm7209_vm10, %v2880_v20, %v3050_v21  ;;  %v2807_v38 = vpack.c.bf16 %v2787_v47, %v2787_v47  ;;  %v1862_v47 = vpop.f32.mrf.mxu1 }
 0x250   : > { %3052 = vst [vmem:[#allocation2 + $0x24] sm:$0xf] %v3051_v61  ;;  %v2706_v12 = vpop.f32.mrf.mxu0 }
 0x251   : > { %v3136_v28 = vld [vmem:[#allocation2 + $0x20] sm:$0x1]  ;;  %v2883_v44 = vshrl.u32 %v2807_v38, 16  ;;  %v2744_v23 = vadd.f32 %v2706_v12, %v2490_v36  ;;  %v2886_v25 = vshll.u32 %v2807_v38, 16  ;;  %v2079_v38 = vadd.f32 %v2045_v35, %v1891_v51  ;;  %v2050_v56 = vpop.f32.mrf.mxu2 }
 0x252   : > { %v3137_v43 = vsel %vm7260_vm0, 0, %v3136_v28 }
 0x253   : > { %3138 = vst [vmem:[#allocation2 + $0x20] sm:$0x1] %v3137_v43  ;;  %v2885_v22 = vrot.slane %v2883_v44, 7  ;;  %v2768_v24 = vadd.f32 %v7186_v63, %v2744_v23 }
 0x255   : > { %v2888_v6 = vor.u32 %v2886_v25, %v2885_v22  ;;  %v2890_v57 = vrot.slane %v2885_v22, 4  ;;  %v2788_v26 = vmax.f32 %v2768_v24, 0.0  ;;  %v2493_v25 = vadd.f32 %v2459_v32, %v2079_v38 }
 0x256   : > { %v1892_v24 = vadd.f32 %v1860_v5, %v7115_v41 }
 0x257   : > { %v3108_v15 = vld [vmem:[#allocation2 + $0x24] sm:$0x1]  ;;  %v2889_v55 = vsel %vm7233_vm15, %v2881_v3, %v2888_v6  ;;  %v3055_v8 = vsel %vm7224_vm14, %v2890_v57, %v3054_v16  ;;  %v2808_v4 = vpack.c.bf16 %v2788_v26, %v2788_v26  ;;  %v2464_v57 = vpop.f32.mrf.mxu3 }
 0x258   : > { %v3109_v1 = vsel %vm7224_vm14, 0, %v3108_v15  ;;  %3053 = vst.msk [vmem:[#allocation2 + $0x28] sm:$0xf] %vm3023_vm8, %v2889_v55  ;;  %v2708_v59 = vpop.f32.mrf.mxu0  ;;  %v1865_v15 = vpop.f32.mrf.mxu1  ;;  %v2080_v41 = vadd.f32 %v2048_v31, %v1892_v24 }
 0x259   : > { %3110 = vst [vmem:[#allocation2 + $0x24] sm:$0x1] %v3109_v1  ;;  %v2892_v39 = vshrl.u32 %v2808_v4, 16  ;;  %v2745_v48 = vadd.f32 %v2708_v59, %v2491_v60  ;;  %v2895_v17 = vshll.u32 %v2808_v4, 16  ;;  %v3064_v4 = vld [vmem:[#allocation2 + $0x3c] sm:$0xf] }
 0x25a   : > { %3056 = vst [vmem:[#allocation2 + $0x2c] sm:$0x1] %v3055_v8  ;;  %v2494_v42 = vadd.f32 %v2462_v58, %v2080_v41 }
 0x25b   : > { %v2894_v46 = vrot.slane %v2892_v39, 7  ;;  %v2769_v49 = vadd.f32 %v7186_v63, %v2745_v48  ;;  %v1893_v39 = vadd.f32 %v1862_v47, %v7125_v62  ;;  %v2053_v48 = vpop.f32.mrf.mxu2  ;;  %v3068_v47 = vld [vmem:[#allocation2 + $0x44] sm:$0x1] }
 0x25d   : > { %v2897_v19 = vor.u32 %v2895_v17, %v2894_v46  ;;  %v2789_v37 = vmax.f32 %v2769_v49, 0.0  ;;  %v2898_v23 = vrot.slane %v2894_v46, 4 }
 0x25f   : > { %v3058_v21 = vsel %vm7209_vm10, %v2897_v19, %v3057_v7  ;;  %v2809_v20 = vpack.c.bf16 %v2789_v37, %v2789_v37  ;;  %v2081_v37 = vadd.f32 %v2050_v56, %v1893_v39  ;;  %v2467_v51 = vpop.f32.mrf.mxu3 }
 0x260   : > { %3059 = vst [vmem:[#allocation2 + $0x30] sm:$0xf] %v3058_v21  ;;  %v2711_v34 = vpop.f32.mrf.mxu0  ;;  %v1867_v58 = vpop.f32.mrf.mxu1 }
 0x261   : > { %v3139_v36 = vld [vmem:[#allocation2 + $0x2c] sm:$0x1]  ;;  %v2900_v50 = vshrl.u32 %v2809_v20, 16  ;;  %v2746_v61 = vadd.f32 %v2711_v34, %v2492_v11  ;;  %v2903_v44 = vshll.u32 %v2809_v20, 16  ;;  %v2495_v38 = vadd.f32 %v2464_v57, %v2081_v37 }
 0x262   : > { %v3140_v12 = vsel %vm7260_vm0, 0, %v3139_v36 }
 0x263   : > { %3141 = vst [vmem:[#allocation2 + $0x2c] sm:$0x1] %v3140_v12  ;;  %v2902_v28 = vrot.slane %v2900_v50, 7  ;;  %v2770_v52 = vadd.f32 %v7186_v63, %v2746_v61  ;;  %v1894_v12 = vadd.f32 %v1865_v15, %v7129_v40 }
 0x265   : > { %v2905_v27 = vor.u32 %v2903_v44, %v2902_v28  ;;  %v2907_v43 = vrot.slane %v2902_v28, 4  ;;  %v2790_v22 = vmax.f32 %v2770_v52, 0.0  ;;  %v2082_v40 = vadd.f32 %v2053_v48, %v1894_v12 }
 0x267   : > { %v3111_v16 = vld [vmem:[#allocation2 + $0x30] sm:$0x1]  ;;  %v2906_v35 = vsel %vm7233_vm15, %v2898_v23, %v2905_v27  ;;  %v3062_v3 = vsel %vm7224_vm14, %v2907_v43, %v3061_v30  ;;  %v2810_v6 = vpack.c.bf16 %v2790_v22, %v2790_v22  ;;  %v2055_v30 = vpop.f32.mrf.mxu2 }
 0x268   : > { %v3112_v26 = vsel %vm7224_vm14, 0, %v3111_v16  ;;  %3060 = vst.msk [vmem:[#allocation2 + $0x34] sm:$0xf] %vm3023_vm8, %v2906_v35  ;;  %v2713_v60 = vpop.f32.mrf.mxu0  ;;  %v2469_v35 = vpop.f32.mrf.mxu3 }
 0x269   : > { %3113 = vst [vmem:[#allocation2 + $0x30] sm:$0x1] %v3112_v26  ;;  %v2909_v14 = vshrl.u32 %v2810_v6, 16  ;;  %v2747_v32 = vadd.f32 %v2713_v60, %v2493_v25  ;;  %v2912_v55 = vshll.u32 %v2810_v6, 16  ;;  %v1895_v26 = vadd.f32 %v1867_v58, %v7139_v18  ;;  %v1870_v60 = vpop.f32.mrf.mxu1 }
 0x26a   : > { %3063 = vst [vmem:[#allocation2 + $0x38] sm:$0x1] %v3062_v3  ;;  %v3071_v3 = vld [vmem:[#allocation2 + $0x48] sm:$0xf]  ;;  %v1896_v37 = vadd.f32 %v1870_v60, %v7143_v45 }
 0x26b   : > { %v2911_v5 = vrot.slane %v2909_v14, 7  ;;  %v2771_v8 = vadd.f32 %v7186_v63, %v2747_v32  ;;  %v2496_v14 = vadd.f32 %v2467_v51, %v2082_v40 }
 0x26d   : > { %v2914_v1 = vor.u32 %v2912_v55, %v2911_v5  ;;  %v2791_v59 = vmax.f32 %v2771_v8, 0.0  ;;  %v2915_v34 = vrot.slane %v2911_v5, 4 }
 0x26f   : > { %v3065_v46 = vsel %vm7209_vm10, %v2914_v1, %v3064_v4  ;;  %v2811_v17 = vpack.c.bf16 %v2791_v59, %v2791_v59  ;;  %v2083_v4 = vadd.f32 %v2055_v30, %v1895_v26  ;;  %v2058_v1 = vpop.f32.mrf.mxu2  ;;  %v3082_v26 = vld [vmem:[#allocation2 + $0x5c] sm:$0x1] }
 0x270   : > { %3066 = vst [vmem:[#allocation2 + $0x3c] sm:$0xf] %v3065_v46  ;;  %v2716_v49 = vpop.f32.mrf.mxu0  ;;  %v2084_v45 = vadd.f32 %v2058_v1, %v1896_v37 }
 0x271   : > { %v3142_v7 = vld [vmem:[#allocation2 + $0x38] sm:$0x1]  ;;  %v2917_v19 = vshrl.u32 %v2811_v17, 16  ;;  %v2748_v31 = vadd.f32 %v2716_v49, %v2494_v42  ;;  %v2920_v20 = vshll.u32 %v2811_v17, 16  ;;  %v3075_v42 = vld [vmem:[#allocation2 + $0x50] sm:$0x1] }
 0x272   : > { %v3143_v11 = vsel %vm7260_vm0, 0, %v3142_v7 }
 0x273   : > { %3144 = vst [vmem:[#allocation2 + $0x38] sm:$0x1] %v3143_v11  ;;  %v2919_v21 = vrot.slane %v2917_v19, 7  ;;  %v2772_v62 = vadd.f32 %v7186_v63, %v2748_v31  ;;  %v2497_v19 = vadd.f32 %v2469_v35, %v2083_v4  ;;  %v2472_v31 = vpop.f32.mrf.mxu3 }
 0x274   : > { %v2498_v30 = vadd.f32 %v2472_v31, %v2084_v45  ;;  %v3085_v31 = vld [vmem:[#allocation2 + $0x60] sm:$0xf] }
 0x275   : > { %v2922_v36 = vor.u32 %v2920_v20, %v2919_v21  ;;  %v2924_v50 = vrot.slane %v2919_v21, 4  ;;  %v2792_v61 = vmax.f32 %v2772_v62, 0.0  ;;  %v1872_v62 = vpop.f32.mrf.mxu1 }
 0x277   : > { %v3114_v28 = vld [vmem:[#allocation2 + $0x3c] sm:$0x1]  ;;  %v2923_v44 = vsel %vm7233_vm15, %v2915_v34, %v2922_v36  ;;  %v3069_v52 = vsel %vm7224_vm14, %v2924_v50, %v3068_v47  ;;  %v2812_v56 = vpack.c.bf16 %v2792_v61, %v2792_v61  ;;  %v2060_v12 = vpop.f32.mrf.mxu2 }
 0x278   : > { %v3115_v23 = vsel %vm7224_vm14, 0, %v3114_v28  ;;  %3067 = vst.msk [vmem:[#allocation2 + $0x40] sm:$0xf] %vm3023_vm8, %v2923_v44  ;;  %v2718_v27 = vpop.f32.mrf.mxu0  ;;  %v3078_v28 = vld [vmem:[#allocation2 + $0x54] sm:$0xf] }
 0x279   : > { %3116 = vst [vmem:[#allocation2 + $0x3c] sm:$0x1] %v3115_v23  ;;  %v2926_v43 = vshrl.u32 %v2812_v56, 16  ;;  %v2749_v22 = vadd.f32 %v2718_v27, %v2495_v38  ;;  %v2929_v24 = vshll.u32 %v2812_v56, 16  ;;  %v1897_v56 = vadd.f32 %v1872_v62, %v7153_v2 }
 0x27a   : > { %3070 = vst [vmem:[#allocation2 + $0x44] sm:$0x1] %v3069_v52 }
 0x27b   : > { %v2928_v25 = vrot.slane %v2926_v43, 7  ;;  %v2773_v16 = vadd.f32 %v7186_v63, %v2749_v22  ;;  %v2474_v43 = vpop.f32.mrf.mxu3 }
 0x27d   : > { %v2931_v6 = vor.u32 %v2929_v24, %v2928_v25  ;;  %v2793_v57 = vmax.f32 %v2773_v16, 0.0  ;;  %v2932_v46 = vrot.slane %v2928_v25, 4  ;;  %v2085_v16 = vadd.f32 %v2060_v12, %v1897_v56  ;;  %v1875_v35 = vpop.f32.mrf.mxu1 }
 0x27f   : > { %v3072_v32 = vsel %vm7209_vm10, %v2931_v6, %v3071_v3  ;;  %v2813_v15 = vpack.c.bf16 %v2793_v57, %v2793_v57 }
 0x280   : > { %3073 = vst [vmem:[#allocation2 + $0x48] sm:$0xf] %v3072_v32  ;;  %v2721_v41 = vpop.f32.mrf.mxu0 }
 0x281   : > { %v3145_v5 = vld [vmem:[#allocation2 + $0x44] sm:$0x1]  ;;  %v2934_v55 = vshrl.u32 %v2813_v15, 16  ;;  %v2750_v8 = vadd.f32 %v2721_v41, %v2496_v14  ;;  %v2937_v48 = vshll.u32 %v2813_v15, 16  ;;  %v2499_v41 = vadd.f32 %v2474_v43, %v2085_v16 }
 0x282   : > { %v3146_v59 = vsel %vm7260_vm0, 0, %v3145_v5  ;;  %v2063_v5 = vpop.f32.mrf.mxu2 }
 0x283   : > { %3147 = vst [vmem:[#allocation2 + $0x44] sm:$0x1] %v3146_v59  ;;  %v2936_v39 = vrot.slane %v2934_v55, 7  ;;  %v2774_v18 = vadd.f32 %v7186_v63, %v2750_v8  ;;  %v1898_v55 = vadd.f32 %v1875_v35, %v7161_v53 }
 0x285   : > { %v2939_v17 = vor.u32 %v2937_v48, %v2936_v39  ;;  %v2941_v49 = vrot.slane %v2936_v39, 4  ;;  %v2794_v7 = vmax.f32 %v2774_v18, 0.0  ;;  %v2086_v53 = vadd.f32 %v2063_v5, %v1898_v55 }
 0x287   : > { %v3117_v51 = vld [vmem:[#allocation2 + $0x48] sm:$0x1]  ;;  %v2940_v11 = vsel %vm7233_vm15, %v2932_v46, %v2939_v17  ;;  %v3076_v21 = vsel %vm7224_vm14, %v2941_v49, %v3075_v42  ;;  %v2814_v20 = vpack.c.bf16 %v2794_v7, %v2794_v7  ;;  %v2477_v46 = vpop.f32.mrf.mxu3 }
 0x288   : > { %v3118_v58 = vsel %vm7224_vm14, 0, %v3117_v51  ;;  %3074 = vst.msk [vmem:[#allocation2 + $0x4c] sm:$0xf] %vm3023_vm8, %v2940_v11  ;;  %v2723_v47 = vpop.f32.mrf.mxu0  ;;  %v2500_v11 = vadd.f32 %v2477_v46, %v2086_v53 }
 0x289   : > { %3119 = vst [vmem:[#allocation2 + $0x48] sm:$0x1] %v3118_v58  ;;  %v2943_v34 = vshrl.u32 %v2814_v20, 16  ;;  %v2751_v36 = vadd.f32 %v2723_v47, %v2497_v19  ;;  %v2946_v61 = vshll.u32 %v2814_v20, 16  ;;  %v1877_v19 = vpop.f32.mrf.mxu1 }
 0x28a   : > { %3077 = vst [vmem:[#allocation2 + $0x50] sm:$0x1] %v3076_v21  ;;  %v1899_v21 = vadd.f32 %v1877_v19, %v7176_v13  ;;  %v2065_v58 = vpop.f32.mrf.mxu2 }
 0x28b   : > { %v2945_v50 = vrot.slane %v2943_v34, 7  ;;  %v2775_v38 = vadd.f32 %v7186_v63, %v2751_v36 }
 0x28d   : > { %v2948_v44 = vor.u32 %v2946_v61, %v2945_v50  ;;  %v2795_v52 = vmax.f32 %v2775_v38, 0.0  ;;  %v2949_v60 = vrot.slane %v2945_v50, 4  ;;  %v2087_v61 = vadd.f32 %v2065_v58, %v1899_v21 }
 0x28f   : > { %v3079_v23 = vsel %vm7209_vm10, %v2948_v44, %v3078_v28  ;;  %v2815_v27 = vpack.c.bf16 %v2795_v52, %v2795_v52  ;;  %v2479_v13 = vpop.f32.mrf.mxu3  ;;  %v3089_v44 = vld [vmem:[#allocation2 + $0x68] sm:$0x1] }
 0x290   : > { %3080 = vst [vmem:[#allocation2 + $0x54] sm:$0xf] %v3079_v23  ;;  %v2726_v22 = vpop.f32.mrf.mxu0 }
 0x291   : > { %v3148_v40 = vld [vmem:[#allocation2 + $0x50] sm:$0x1]  ;;  %v2951_v25 = vshrl.u32 %v2815_v27, 16  ;;  %v2752_v24 = vadd.f32 %v2726_v22, %v2498_v30  ;;  %v2954_v57 = vshll.u32 %v2815_v27, 16  ;;  %v2501_v27 = vadd.f32 %v2479_v13, %v2087_v61 }
 0x292   : > { %v3149_v3 = vsel %vm7260_vm0, 0, %v3148_v40 }
 0x293   : > { %3150 = vst [vmem:[#allocation2 + $0x50] sm:$0x1] %v3149_v3  ;;  %v2953_v6 = vrot.slane %v2951_v25, 7  ;;  %v2776_v2 = vadd.f32 %v7186_v63, %v2752_v24 }
 0x295   : > { %v2956_v14 = vor.u32 %v2954_v57, %v2953_v6  ;;  %v2958_v32 = vrot.slane %v2953_v6, 4  ;;  %v2796_v15 = vmax.f32 %v2776_v2, 0.0 }
 0x297   : > { %v3120_v8 = vld [vmem:[#allocation2 + $0x54] sm:$0x1]  ;;  %v2957_v4 = vsel %vm7233_vm15, %v2949_v60, %v2956_v14  ;;  %v3083_v1 = vsel %vm7224_vm14, %v2958_v32, %v3082_v26  ;;  %v2816_v59 = vpack.c.bf16 %v2796_v15, %v2796_v15  ;;  %v3092_v26 = vld [vmem:[#allocation2 + $0x6c] sm:$0xf] }
 0x298   : > { %v3121_v39 = vsel %vm7224_vm14, 0, %v3120_v8  ;;  %3081 = vst.msk [vmem:[#allocation2 + $0x58] sm:$0xf] %vm3023_vm8, %v2957_v4  ;;  %v2728_v48 = vpop.f32.mrf.mxu0 }
 0x299   : > { %3122 = vst [vmem:[#allocation2 + $0x54] sm:$0x1] %v3121_v39  ;;  %v2960_v18 = vshrl.u32 %v2816_v59, 16  ;;  %v2753_v42 = vadd.f32 %v2728_v48, %v2499_v41  ;;  %v2963_v49 = vshll.u32 %v2816_v59, 16 }
 0x29a   : > { %3084 = vst [vmem:[#allocation2 + $0x5c] sm:$0x1] %v3083_v1  ;;  %v3096_v1 = vld [vmem:[#allocation2 + $0x74] sm:$0x1] }
 0x29b   : > { %v2962_v17 = vrot.slane %v2960_v18, 7  ;;  %v2777_v7 = vadd.f32 %v7186_v63, %v2753_v42 }
 0x29d   : > { %v2965_v37 = vor.u32 %v2963_v49, %v2962_v17  ;;  %v2797_v51 = vmax.f32 %v2777_v7, 0.0  ;;  %v2966_v52 = vrot.slane %v2962_v17, 4 }
 0x29f   : > { %v3086_v20 = vsel %vm7209_vm10, %v2965_v37, %v3085_v31  ;;  %v2817_v62 = vpack.c.bf16 %v2797_v51, %v2797_v51 }
 0x2a0   : > { %3087 = vst [vmem:[#allocation2 + $0x60] sm:$0xf] %v3086_v20  ;;  %v2731_v47 = vpop.f32.mrf.mxu0 }
 0x2a1   : > { %v3151_v34 = vld [vmem:[#allocation2 + $0x5c] sm:$0x1]  ;;  %v2968_v36 = vshrl.u32 %v2817_v62, 16  ;;  %v2754_v45 = vadd.f32 %v2731_v47, %v2500_v11  ;;  %v2971_v12 = vshll.u32 %v2817_v62, 16 }
 0x2a2   : > { %v3152_v50 = vsel %vm7260_vm0, 0, %v3151_v34 }
 0x2a3   : > { %3153 = vst [vmem:[#allocation2 + $0x5c] sm:$0x1] %v3152_v50  ;;  %v2970_v38 = vrot.slane %v2968_v36, 7  ;;  %v2778_v28 = vadd.f32 %v7186_v63, %v2754_v45 }
 0x2a5   : > { %v2973_v56 = vor.u32 %v2971_v12, %v2970_v38  ;;  %v2975_v30 = vrot.slane %v2970_v38, 4  ;;  %v2798_v23 = vmax.f32 %v2778_v28, 0.0 }
 0x2a7   : > { %v3123_v43 = vld [vmem:[#allocation2 + $0x60] sm:$0x1]  ;;  %v2974_v22 = vsel %vm7233_vm15, %v2966_v52, %v2973_v56  ;;  %v3090_v40 = vsel %vm7224_vm14, %v2975_v30, %v3089_v44  ;;  %v2818_v25 = vpack.c.bf16 %v2798_v23, %v2798_v23 }
 0x2a8   : > { %v3124_v24 = vsel %vm7224_vm14, 0, %v3123_v43  ;;  %3088 = vst.msk [vmem:[#allocation2 + $0x64] sm:$0xf] %vm3023_vm8, %v2974_v22  ;;  %v2733_v16 = vpop.f32.mrf.mxu0 }
 0x2a9   : > { %3125 = vst [vmem:[#allocation2 + $0x60] sm:$0x1] %v3124_v24  ;;  %v2977_v35 = vshrl.u32 %v2818_v25, 16  ;;  %v2755_v3 = vadd.f32 %v2733_v16, %v2501_v27  ;;  %v2980_v57 = vshll.u32 %v2818_v25, 16 }
 0x2aa   : > { %3091 = vst [vmem:[#allocation2 + $0x68] sm:$0x1] %v3090_v40 }
 0x2ab   : > { %v2979_v6 = vrot.slane %v2977_v35, 7  ;;  %v2779_v2 = vadd.f32 %v7186_v63, %v2755_v3 }
 0x2ad   : > { %v2982_v60 = vor.u32 %v2980_v57, %v2979_v6  ;;  %v2799_v14 = vmax.f32 %v2779_v2, 0.0  ;;  %v2983_v59 = vrot.slane %v2979_v6, 4 }
 0x2af   : > { %v3093_v32 = vsel %vm7209_vm10, %v2982_v60, %v3092_v26  ;;  %v2819_v15 = vpack.c.bf16 %v2799_v14, %v2799_v14 }
 0x2b0   : > { %3094 = vst [vmem:[#allocation2 + $0x6c] sm:$0xf] %v3093_v32 }
 0x2b1   : > { %v3154_v41 = vld [vmem:[#allocation2 + $0x68] sm:$0x1]  ;;  %v2985_v5 = vshrl.u32 %v2819_v15, 16  ;;  %v2988_v4 = vshll.u32 %v2819_v15, 16 }
 0x2b2   : > { %v3155_v55 = vsel %vm7260_vm0, 0, %v3154_v41 }
 0x2b3   : > { %3156 = vst [vmem:[#allocation2 + $0x68] sm:$0x1] %v3155_v55  ;;  %v2987_v8 = vrot.slane %v2985_v5, 7 }
 0x2b5   : > { %v2990_v39 = vor.u32 %v2988_v4, %v2987_v8  ;;  %v2992_v63 = vrot.slane %v2987_v8, 4 }
 0x2b7   : > { %v3126_v48 = vld [vmem:[#allocation2 + $0x6c] sm:$0x1]  ;;  %v2991_v18 = vsel %vm7233_vm15, %v2983_v59, %v2990_v39  ;;  %v3097_v33 = vsel %vm7224_vm14, %v2992_v63, %v3096_v1 }
 0x2b8   : > { %v3127_v42 = vsel %vm7224_vm14, 0, %v3126_v48  ;;  %3095 = vst.msk [vmem:[#allocation2 + $0x70] sm:$0xf] %vm3023_vm8, %v2991_v18 }
 0x2b9   : > { %3128 = vst [vmem:[#allocation2 + $0x6c] sm:$0x1] %v3127_v42 }
 0x2ba   : > { %3098 = vst [vmem:[#allocation2 + $0x74] sm:$0x1] %v3097_v33 }
 0x2bf   : > { %3163 = sbr.rel (%p5747_p7) target bundleno = 712 (0x2c8), region = 44 }
 0x2c1   : > { %v3157_v46 = vld [vmem:[#allocation2 + $0x74] sm:$0x1] }
 0x2c2   : > { %v3158_v53 = vsel %vm7260_vm0, 0, %v3157_v46 }
 0x2c3   : > { %3159 = vst [vmem:[#allocation2 + $0x74] sm:$0x1] %v3158_v53 }
 0x2c4   : > { %v6102_v9 = vmov 0  }
 0x2c5   : > { %3164 = vst.msk [vmem:[#allocation2] sm:$0xf] %vm3023_vm8, %v6102_v9 }
 0x2c6   : > { %3165 = vst.msk [vmem:[#allocation2 + $0x4] sm:$0xf] %vm3023_vm8, %v6102_v9 }
 0x2c7   : > { %3167 = vst.msk [vmem:[#allocation2 + $0x8] sm:$0x1] %vm3031_vm12, %v6102_v9 }
 0x2c8 PF: > { %p5748_p8 = scmp.ne.s32.totalorder %s6084_s18, 1 }
 0x2ca   : > { %3171 = sbr.rel (%p5748_p8) target bundleno = 723 (0x2d3), region = 48 }
 0x2cf   : > { %v6103_v10 = vmov 0  }
 0x2d0   : > { %3173 = vst.msk [vmem:[#allocation2 + $0x6c] sm:$0xf] %vm3023_vm8, %v6103_v10 }
 0x2d1   : > { %3174 = vst.msk [vmem:[#allocation2 + $0x70] sm:$0xf] %vm3023_vm8, %v6103_v10 }
 0x2d2   : > { %3176 = vst.msk [vmem:[#allocation2 + $0x74] sm:$0x1] %vm3031_vm12, %v6103_v10 }
 0x2d3 PF: > { %v3193_v54 = vld [vmem:[%s7928_s3] sm:$0xf]  ;;  %vm3445_vm1 = vcmask 1043456   ;;  %vm3420_vm2 = vcmask 64512   ;;  %v5806_v7 = vld [vmem:[%s7928_s3 + $0x8] sm:$0xf] }
 0x2d4   : > { %v5982_v17 = vld [vmem:[#allocation2] sm:$0xff]  ;;  %v3563_v49 = vsel %vm3445_vm1, %v3193_v54, 0  ;;  %v3745_v31 = vsel %vm3445_vm1, %v5806_v7, 0  ;;  %v3194_v37 = vld [vmem:[#allocation2 + $0x8] sm:$0x1] }
 0x2d5   : > { %v3178_v19 = vld [vmem:[#allocation2 + $0x4] sm:$0xf]  ;;  %3572 = vmatpush.bf16.msra.mxu2 %v3563_v49  ;;  %v3614_v51 = vld [vmem:[#allocation2] sm:$0xe]  ;;  %3754 = vmatpush.bf16.msrb.mxu3 %v3745_v31  ;;  %v3643_v20 = vrot.slane %v3194_v37, 5  ;;  %v3222_v30 = vshll.u32 %v3194_v37, 16 }
 0x2d6   : > { %v3640_v11 = vrot.slane %v3178_v19, 5  ;;  %v5798_v21 = vrot.slane %v3614_v51, 9  ;;  %v5856_v62 = vld [vmem:[%s7928_s3 + $0x10] sm:$0xf]  ;;  %v5749_v58 = vld [vmem:[%s7928_s3 + $0x4] sm:$0xf] }
 0x2d7   : > { %v4230_v34 = vsel %vm3445_vm1, %v5856_v62, 0  ;;  %v3447_v36 = vsel %vm3445_vm1, %v5749_v58, 0  ;;  %v3177_v45 = vld [vmem:[#allocation2] sm:$0xf]  ;;  %v3212_v50 = vshll.u32 %v3178_v19, 16  ;;  %v3216_v28 = vshrl.u32 %v3178_v19, 16 }
 0x2d8   : > { %v3642_v47 = vrot.slane %v3640_v11, 4  ;;  %5790 = vmatmul.msk.bf16.vlgmr.msra.gmra.mxu2 %vm3420_vm2, %v5982_v17  ;;  %v3641_v61 = vsel %vm6250_vm7, %v5798_v21, %v3640_v11  ;;  %3456 = vmatpush.bf16.msra.mxu1 %v3447_v36  ;;  %v3203_v38 = vshrl.u32 %v3177_v45, 16  ;;  %v3206_v12 = vshll.u32 %v3177_v45, 16  ;;  %v5815_v13 = vld [vmem:[%s7928_s3 + $0xc] sm:$0xf] }
 0x2d9   : > { %v3696_v52 = vunpack.c.l.b16 %v3641_v61  ;;  %4239 = vmatpush.bf16.msrb.mxu2 %v4230_v34  ;;  %v3214_v56 = vrot.slane %v3212_v50, 5  ;;  %v3180_v23 = vld [vmem:[#allocation2 + $0x10] sm:$0xf]  ;;  %v3195_v27 = vld [vmem:[#allocation2 + $0x14] sm:$0x1]  ;;  %v3218_v25 = vrot.slane %v3216_v28, 4 }
 0x2da   : > { %v3644_v44 = vsel %vm6250_vm7, %v3642_v47, %v3643_v20  ;;  %v3205_v22 = vrot.slane %v3203_v38, 4  ;;  %v3208_v40 = vrot.slane %v3206_v12, 5  ;;  %v3615_v24 = vld [vmem:[#allocation2 + $0xc] sm:$0xe]  ;;  %v3896_v16 = vsel %vm3445_vm1, %v5815_v13, 0 }
 0x2db   : > { %v3697_v43 = vunpack.c.l.b16 %v3644_v44  ;;  %v3647_v35 = vrot.slane %v3180_v23, 5  ;;  %v3179_v3 = vld [vmem:[#allocation2 + $0xc] sm:$0xf]  ;;  %v3219_v2 = vor.u32 %v3218_v25, %v3214_v56  ;;  %v3224_v26 = vrot.slane %v3222_v30, 5  ;;  %v3181_v11 = vld [vmem:[#allocation2 + $0x18] sm:$0xf] }
 0x2dc   : > { %v3209_v57 = vor.u32 %v3208_v40, %v3205_v22  ;;  %3905 = vmatpush.bf16.msrb.mxu1 %v3896_v16  ;;  %v5799_v60 = vrot.slane %v3615_v24, 9  ;;  %v3650_v14 = vrot.slane %v3195_v27, 5  ;;  %v3227_v32 = vshrl.u32 %v3179_v3, 16  ;;  %v5983_v49 = vld [vmem:[#allocation2 + $0xc] sm:$0xff]  ;;  %v3182_v21 = vld [vmem:[#allocation2 + $0x1c] sm:$0xf] }
 0x2dd   : > { %v3712_v6 = vpack.c.b16 %v3697_v43, %v3696_v52  ;;  %v3230_v15 = vshll.u32 %v3179_v3, 16  ;;  %v3220_v5 = vrot.slane %v3219_v2, 4  ;;  %v3649_v55 = vrot.slane %v3647_v35, 4  ;;  %v3616_v34 = vld [vmem:[#allocation2 + $0x18] sm:$0xe] }
 0x2de   : > { %v3210_v41 = vrot.slane %v3209_v57, 4  ;;  %v3236_v8 = vshll.u32 %v3180_v23, 16  ;;  %v3229_v4 = vrot.slane %v3227_v32, 4  ;;  %v3240_v59 = vshrl.u32 %v3180_v23, 16  ;;  %v3196_v38 = vld [vmem:[#allocation2 + $0x20] sm:$0x1] }
 0x2df   : > { %5807 = vmatmul.msk.bf16.vlgmr.msrb.gmra.mxu3 %vm3420_vm2, %v3712_v6  ;;  %v3232_v1 = vrot.slane %v3230_v15, 5  ;;  %v3225_v63 = vsel %vm6212_vm4, %v3220_v5, %v3224_v26  ;;  %v3648_v53 = vsel %vm6250_vm7, %v5799_v60, %v3647_v35  ;;  %v3651_v9 = vsel %vm6250_vm7, %v3649_v55, %v3650_v14  ;;  %v5984_v35 = vld [vmem:[#allocation2 + $0x18] sm:$0xff]  ;;  %v3184_v6 = vld [vmem:[#allocation2 + $0x28] sm:$0xf]  ;;  %v3183_v57 = vld [vmem:[#allocation2 + $0x24] sm:$0xf] }
 0x2e0   : > { %v3215_v39 = vsel %vm6212_vm4, %v3210_v41, %v3214_v56  ;;  %v3238_v48 = vrot.slane %v3236_v8, 5  ;;  %v3397_v33 = vunpack.c.l.b16 %v3225_v63  ;;  %v3242_v46 = vrot.slane %v3240_v59, 4 }
 0x2e1   : > { %v3396_v18 = vunpack.c.l.b16 %v3215_v39  ;;  %v3233_v42 = vor.u32 %v3232_v1, %v3229_v4  ;;  %v3246_v10 = vshll.u32 %v3195_v27, 16  ;;  %v3698_v7 = vunpack.c.l.b16 %v3648_v53  ;;  %v3197_v1 = vld [vmem:[#allocation2 + $0x2c] sm:$0x1]  ;;  %v3617_v39 = vld [vmem:[#allocation2 + $0x24] sm:$0xe] }
 0x2e2   : > { %v3243_v17 = vor.u32 %v3242_v46, %v3238_v48  ;;  %v3699_v19 = vunpack.c.l.b16 %v3651_v9  ;;  %v3251_v58 = vshrl.u32 %v3181_v11, 16  ;;  %v3254_v36 = vshll.u32 %v3181_v11, 16 }
 0x2e3   : > { %v3412_v54 = vpack.c.b16 %v3397_v33, %v3396_v18  ;;  %v3234_v31 = vrot.slane %v3233_v42, 4  ;;  %v3248_v51 = vrot.slane %v3246_v10, 5  ;;  %v3260_v45 = vshll.u32 %v3182_v21, 16 }
 0x2e4   : > { %v3244_v37 = vrot.slane %v3243_v17, 4  ;;  %v3713_v20 = vpack.c.b16 %v3699_v19, %v3698_v7  ;;  %v3264_v50 = vshrl.u32 %v3182_v21, 16  ;;  %v3654_v61 = vrot.slane %v3182_v21, 5 }
 0x2e5   : > { %5750 = vmatmul.msk.bf16.vlgmr.msra.gmra.mxu1 %vm3420_vm2, %v3412_v54  ;;  %v3239_v62 = vsel %vm6212_vm4, %v3234_v31, %v3238_v48  ;;  %v5800_v13 = vrot.slane %v3616_v34, 9  ;;  %v3253_v44 = vrot.slane %v3251_v58, 4  ;;  %v3256_v52 = vrot.slane %v3254_v36, 5  ;;  %v3186_v58 = vld [vmem:[#allocation2 + $0x34] sm:$0xf] }
 0x2e6   : > { %v3249_v47 = vsel %vm6212_vm4, %v3244_v37, %v3248_v51  ;;  %v3398_v12 = vunpack.c.l.b16 %v3239_v62  ;;  %v3262_v56 = vrot.slane %v3260_v45, 5  ;;  %v3266_v30 = vrot.slane %v3264_v50, 4  ;;  %v5985_v37 = vld [vmem:[#allocation2 + $0x24] sm:$0xff]  ;;  %v3618_v45 = vld [vmem:[#allocation2 + $0x30] sm:$0xe] }
 0x2e7   : > { %v3399_v28 = vunpack.c.l.b16 %v3249_v47  ;;  %v3656_v23 = vrot.slane %v3654_v61, 4  ;;  %v3657_v27 = vrot.slane %v3196_v38, 5  ;;  %v3655_v22 = vsel %vm6250_vm7, %v5800_v13, %v3654_v61  ;;  %v3185_v47 = vld [vmem:[#allocation2 + $0x30] sm:$0xf] }
 0x2e8   : > { %5791 = vmatmul.msk.bf16.gmra.mxu2 %vm3420_vm2, %v5983_v49  ;;  %v3257_v40 = vor.u32 %v3256_v52, %v3253_v44  ;;  %v3267_v25 = vor.u32 %v3266_v30, %v3262_v56  ;;  %v3270_v24 = vshll.u32 %v3196_v38, 16  ;;  %v3700_v3 = vunpack.c.l.b16 %v3655_v22  ;;  %v3198_v44 = vld [vmem:[#allocation2 + $0x38] sm:$0x1] }
 0x2e9   : > { %v3413_v43 = vpack.c.b16 %v3399_v28, %v3398_v12  ;;  %v3658_v16 = vsel %vm6250_vm7, %v3656_v23, %v3657_v27  ;;  %v3275_v32 = vshrl.u32 %v3183_v57, 16  ;;  %v3278_v15 = vshll.u32 %v3183_v57, 16 }
 0x2ea   : > { %v3701_v2 = vunpack.c.l.b16 %v3658_v16  ;;  %v3258_v26 = vrot.slane %v3257_v40, 4  ;;  %v3268_v60 = vrot.slane %v3267_v25, 4  ;;  %v3272_v14 = vrot.slane %v3270_v24, 5 }
 0x2eb   : > { %v3284_v41 = vshll.u32 %v3184_v6, 16  ;;  %v3288_v5 = vshrl.u32 %v3184_v6, 16  ;;  %v3661_v59 = vrot.slane %v3184_v6, 5  ;;  %v3277_v63 = vrot.slane %v3275_v32, 4 }
 0x2ec   : > { %v3714_v55 = vpack.c.b16 %v3701_v2, %v3700_v3  ;;  %v3263_v8 = vsel %vm6212_vm4, %v3258_v26, %v3262_v56  ;;  %v3273_v4 = vsel %vm6212_vm4, %v3268_v60, %v3272_v14  ;;  %v3280_v48 = vrot.slane %v3278_v15, 5  ;;  %v5986_v2 = vld [vmem:[#allocation2 + $0x30] sm:$0xff] }
 0x2ed   : > { %v3286_v18 = vrot.slane %v3284_v41, 5  ;;  %v3290_v33 = vrot.slane %v3288_v5, 4  ;;  %v3400_v42 = vunpack.c.l.b16 %v3263_v8  ;;  %v3401_v46 = vunpack.c.l.b16 %v3273_v4  ;;  %v3188_v41 = vld [vmem:[#allocation2 + $0x40] sm:$0xf]  ;;  %v3187_v5 = vld [vmem:[#allocation2 + $0x3c] sm:$0xf] }
 0x2ee   : > { %v5801_v53 = vrot.slane %v3617_v39, 9  ;;  %v3663_v9 = vrot.slane %v3661_v59, 4  ;;  %v3664_v10 = vrot.slane %v3197_v1, 5  ;;  %v3281_v54 = vor.u32 %v3280_v48, %v3277_v63 }
 0x2ef   : > { %5808 = vmatmul.msk.bf16.gmra.mxu3 %vm3420_vm2, %v3713_v20  ;;  %v3291_v17 = vor.u32 %v3290_v33, %v3286_v18  ;;  %v3294_v49 = vshll.u32 %v3197_v1, 16  ;;  %v3414_v7 = vpack.c.b16 %v3401_v46, %v3400_v42  ;;  %v3299_v50 = vshrl.u32 %v3185_v47, 16  ;;  %v3619_v1 = vld [vmem:[#allocation2 + $0x3c] sm:$0xe]  ;;  %v3199_v33 = vld [vmem:[#allocation2 + $0x44] sm:$0x1] }
 0x2f0   : > { %v3662_v19 = vsel %vm6250_vm7, %v5801_v53, %v3661_v59  ;;  %v3665_v31 = vsel %vm6250_vm7, %v3663_v9, %v3664_v10  ;;  %v3282_v51 = vrot.slane %v3281_v54, 4  ;;  %v3302_v61 = vshll.u32 %v3185_v47, 16  ;;  %v3189_v47 = vld [vmem:[#allocation2 + $0x48] sm:$0xf] }
 0x2f1   : > { %v3292_v11 = vrot.slane %v3291_v17, 4  ;;  %v3296_v21 = vrot.slane %v3294_v49, 5  ;;  %v3702_v20 = vunpack.c.l.b16 %v3662_v19  ;;  %v3703_v62 = vunpack.c.l.b16 %v3665_v31 }
 0x2f2   : > { %v3287_v34 = vsel %vm6212_vm4, %v3282_v51, %v3286_v18  ;;  %v3308_v38 = vshll.u32 %v3186_v58, 16  ;;  %v3312_v12 = vshrl.u32 %v3186_v58, 16  ;;  %v3668_v13 = vrot.slane %v3186_v58, 5  ;;  %v3190_v58 = vld [vmem:[#allocation2 + $0x4c] sm:$0xf] }
 0x2f3   : > { %v3297_v36 = vsel %vm6212_vm4, %v3292_v11, %v3296_v21  ;;  %v3715_v28 = vpack.c.b16 %v3703_v62, %v3702_v20  ;;  %v3402_v52 = vunpack.c.l.b16 %v3287_v34  ;;  %v5802_v30 = vrot.slane %v3618_v45, 9  ;;  %v5987_v20 = vld [vmem:[#allocation2 + $0x3c] sm:$0xff] }
 0x2f4   : > { %v3403_v56 = vunpack.c.l.b16 %v3297_v36  ;;  %v3301_v23 = vrot.slane %v3299_v50, 4  ;;  %v3304_v27 = vrot.slane %v3302_v61, 5  ;;  %v3314_v22 = vrot.slane %v3312_v12, 4 }
 0x2f5   : > { %5751 = vmatmul.msk.bf16.gmra.mxu1 %vm3420_vm2, %v3413_v43  ;;  %v3310_v43 = vrot.slane %v3308_v38, 5  ;;  %v3670_v40 = vrot.slane %v3668_v13, 4  ;;  %v3671_v25 = vrot.slane %v3198_v44, 5  ;;  %v3669_v16 = vsel %vm6250_vm7, %v5802_v30, %v3668_v13 }
 0x2f6   : > { %v3415_v24 = vpack.c.b16 %v3403_v56, %v3402_v52  ;;  %v3318_v6 = vshll.u32 %v3198_v44, 16  ;;  %v3704_v26 = vunpack.c.l.b16 %v3669_v16  ;;  %v3323_v59 = vshrl.u32 %v3187_v5, 16  ;;  %v3200_v56 = vld [vmem:[#allocation2 + $0x50] sm:$0x1] }
 0x2f7   : > { %v3315_v3 = vor.u32 %v3314_v22, %v3310_v43  ;;  %v3672_v57 = vsel %vm6250_vm7, %v3670_v40, %v3671_v25  ;;  %v3326_v39 = vshll.u32 %v3187_v5, 16  ;;  %v3332_v63 = vshll.u32 %v3188_v41, 16 }
 0x2f8   : > { %5792 = vmatmul.msk.bf16.gmra.mxu2 %vm3420_vm2, %v5984_v35  ;;  %v3305_v35 = vor.u32 %v3304_v27, %v3301_v23  ;;  %v3705_v60 = vunpack.c.l.b16 %v3672_v57  ;;  %v3320_v15 = vrot.slane %v3318_v6, 5  ;;  %v3336_v48 = vshrl.u32 %v3188_v41, 16  ;;  %v3620_v23 = vld [vmem:[#allocation2 + $0x48] sm:$0xe] }
 0x2f9   : > { %v3316_v32 = vrot.slane %v3315_v3, 4  ;;  %v3675_v18 = vrot.slane %v3188_v41, 5  ;;  %v5803_v53 = vrot.slane %v3619_v1, 9  ;;  %v3325_v9 = vrot.slane %v3323_v59, 4  ;;  %v3192_v1 = vld [vmem:[#allocation2 + $0x58] sm:$0xf] }
 0x2fa   : > { %v3306_v14 = vrot.slane %v3305_v35, 4  ;;  %v3328_v10 = vrot.slane %v3326_v39, 5  ;;  %v3334_v54 = vrot.slane %v3332_v63, 5  ;;  %v3338_v17 = vrot.slane %v3336_v48, 4  ;;  %v3191_v59 = vld [vmem:[#allocation2 + $0x54] sm:$0xf] }
 0x2fb   : > { %v3321_v4 = vsel %vm6212_vm4, %v3316_v32, %v3320_v15  ;;  %v3677_v49 = vrot.slane %v3675_v18, 4  ;;  %v3676_v31 = vsel %vm6250_vm7, %v5803_v53, %v3675_v18  ;;  %v3342_v11 = vshll.u32 %v3199_v33, 16  ;;  %v5988_v32 = vld [vmem:[#allocation2 + $0x48] sm:$0xff] }
 0x2fc   : > { %v3311_v8 = vsel %vm6212_vm4, %v3306_v14, %v3310_v43  ;;  %v3405_v46 = vunpack.c.l.b16 %v3321_v4  ;;  %v3339_v51 = vor.u32 %v3338_v17, %v3334_v54  ;;  %v3706_v62 = vunpack.c.l.b16 %v3676_v31  ;;  %v3963_v18 = vld [vmem:[#allocation2 + $0xc] sm:$0xf]  ;;  %v5940_v31 = vld [vmem:[%s7928_s3 + $0x20] sm:$0xf] }
 0x2fd   : > { %v3404_v42 = vunpack.c.l.b16 %v3311_v8  ;;  %v3344_v50 = vrot.slane %v3342_v11, 5  ;;  %v3347_v61 = vshrl.u32 %v3189_v47, 16  ;;  %v3350_v38 = vshll.u32 %v3189_v47, 16 }
 0x2fe   : > { %v3340_v45 = vrot.slane %v3339_v51, 4  ;;  %v3356_v12 = vshll.u32 %v3190_v58, 16  ;;  %v3682_v30 = vrot.slane %v3190_v58, 5  ;;  %v5804_v16 = vrot.slane %v3620_v23, 9 }
 0x2ff   : > { %5809 = vmatmul.msk.bf16.gmra.mxu3 %vm3420_vm2, %v3714_v55  ;;  %v3716_v55 = vpack.c.b16 %v3705_v60, %v3704_v26  ;;  %v3416_v19 = vpack.c.b16 %v3405_v46, %v3404_v42  ;;  %v3349_v27 = vrot.slane %v3347_v61, 4  ;;  %v3352_v43 = vrot.slane %v3350_v38, 5 }
 0x300   : > { %v3345_v52 = vsel %vm6212_vm4, %v3340_v45, %v3344_v50  ;;  %v3358_v22 = vrot.slane %v3356_v12, 5  ;;  %v3684_v35 = vrot.slane %v3682_v30, 4  ;;  %v3685_v3 = vrot.slane %v3200_v56, 5 }
 0x301   : > { %v3353_v6 = vor.u32 %v3352_v43, %v3349_v27  ;;  %v3683_v60 = vsel %vm6250_vm7, %v5804_v16, %v3682_v30  ;;  %v3374_v42 = vshll.u32 %v3191_v59, 16  ;;  %v3380_v46 = vshll.u32 %v3192_v1, 16  ;;  %v3965_v30 = vld [vmem:[#allocation2 + $0x14] sm:$0x1] }
 0x302   : > { %v3686_v14 = vsel %vm6250_vm7, %v3684_v35, %v3685_v3  ;;  %v3708_v8 = vunpack.c.l.b16 %v3683_v60  ;;  %v3384_v53 = vshrl.u32 %v3192_v1, 16  ;;  %v3991_v51 = vshll.u32 %v3963_v18, 16  ;;  %v5989_v43 = vld [vmem:[#allocation2 + $0x54] sm:$0xff]  ;;  %v5923_v3 = vld [vmem:[%s7928_s3 + $0x1c] sm:$0xf] }
 0x303   : > { %v3354_v15 = vrot.slane %v3353_v6, 4  ;;  %v3709_v4 = vunpack.c.l.b16 %v3686_v14  ;;  %v3382_v47 = vrot.slane %v3380_v46, 5  ;;  %v5882_v6 = vld [vmem:[%s7928_s3 + $0x18] sm:$0xf] }
 0x304   : > { %v3993_v12 = vrot.slane %v3991_v51, 5  ;;  %v4587_v60 = vsel %vm3445_vm1, %v5882_v6, 0 }
 0x305   : > { %5752 = vmatmul.msk.bf16.gmra.mxu1 %vm3420_vm2, %v3414_v7  ;;  %v3678_v7 = vrot.slane %v3199_v33, 5  ;;  %v3359_v63 = vsel %vm6212_vm4, %v3354_v15, %v3358_v22  ;;  %v3371_v33 = vshrl.u32 %v3191_v59, 16  ;;  %4596 = vmatpush.bf16.msra.mxu0 %v4587_v60 }
 0x307   : > { %v3679_v21 = vsel %vm6250_vm7, %v3677_v49, %v3678_v7  ;;  %v3201_v49 = vld [vmem:[#allocation2 + $0x5c] sm:$0x1]  ;;  %v3689_v7 = vrot.slane %v3192_v1, 5 }
 0x308   : > { %5793 = vmatmul.msk.bf16.gmra.mxu2 %vm3420_vm2, %v5985_v37  ;;  %v3329_v37 = vor.u32 %v3328_v10, %v3325_v9  ;;  %v3707_v34 = vunpack.c.l.b16 %v3679_v21  ;;  %v7520_v9 = vld [vmem:[#allocation2 + $0x10] sm:$0xf]  ;;  %v3718_v10 = vpack.c.b16 %v3709_v4, %v3708_v8  ;;  %v3692_v50 = vrot.slane %v3201_v49, 5  ;;  %v3966_v4 = vld [vmem:[#allocation2 + $0x18] sm:$0xf] }
 0x309   : > { %v3997_v11 = vshll.u32 %v7520_v9, 16  ;;  %v4001_v21 = vshrl.u32 %v7520_v9, 16  ;;  %v3691_v45 = vrot.slane %v3689_v7, 4  ;;  %v3390_v61 = vshll.u32 %v3201_v49, 16  ;;  %v7547_v1 = vld [vmem:[#allocation2 + $0x1c] sm:$0xf] }
 0x30a   : > { %v3330_v36 = vrot.slane %v3329_v37, 4  ;;  %v3717_v13 = vpack.c.b16 %v3707_v34, %v3706_v62  ;;  %v3621_v37 = vld [vmem:[#allocation2 + $0x54] sm:$0xe]  ;;  %v3373_v62 = vrot.slane %v3371_v33, 4  ;;  %v3386_v34 = vrot.slane %v3384_v53, 4 }
 0x30b   : > { %v3693_v27 = vsel %vm6250_vm7, %v3691_v45, %v3692_v50  ;;  %v4331_v59 = vrot.slane %v7520_v9, 5  ;;  %v4297_v33 = vld [vmem:[#allocation2 + $0xc] sm:$0xe]  ;;  %v4015_v46 = vshll.u32 %v3966_v4, 16  ;;  %v4021_v53 = vshll.u32 %v7547_v1, 16 }
 0x30c   : > { %v3335_v44 = vsel %vm6212_vm4, %v3330_v36, %v3334_v54  ;;  %v3408_v54 = vunpack.c.l.b16 %v3359_v63  ;;  %v5805_v36 = vrot.slane %v3621_v37, 9  ;;  %v5865_v9 = vrot.slane %v4297_v33, 9 }
 0x30d   : > { %v3406_v25 = vunpack.c.l.b16 %v3335_v44  ;;  %v4017_v37 = vrot.slane %v4015_v46, 5  ;;  %v4023_v51 = vrot.slane %v4021_v53, 5 }
 0x30e   : > { %v3690_v23 = vsel %vm6250_vm7, %v5805_v36, %v3689_v7 }
 0x30f   : > { %5810 = vmatmul.msk.bf16.gmra.mxu3 %vm3420_vm2, %v3715_v28  ;;  %v3360_v28 = vshrl.u32 %v3190_v58, 16  ;;  %v3376_v58 = vrot.slane %v3374_v42, 5  ;;  %v4012_v42 = vshrl.u32 %v3966_v4, 16 }
 0x311   : > { %v3362_v40 = vrot.slane %v3360_v28, 4  ;;  %v3999_v28 = vrot.slane %v3997_v11, 5 }
 0x313   : > { %v3363_v57 = vor.u32 %v3362_v40, %v3358_v22  ;;  %v3392_v22 = vrot.slane %v3390_v61, 5  ;;  %v3969_v61 = vld [vmem:[#allocation2 + $0x24] sm:$0xf] }
 0x315   : > { %5753 = vmatmul.msk.bf16.gmra.mxu1 %vm3420_vm2, %v3415_v24  ;;  %v3407_v24 = vunpack.c.l.b16 %v3345_v52  ;;  %v3364_v41 = vrot.slane %v3363_v57, 4  ;;  %v3377_v52 = vor.u32 %v3376_v58, %v3373_v62  ;;  %v3710_v57 = vunpack.c.l.b16 %v3690_v23  ;;  %v4298_v23 = vld [vmem:[#allocation2 + $0x18] sm:$0xe] }
 0x317   : > { %v3417_v26 = vpack.c.b16 %v3407_v24, %v3406_v25  ;;  %v4007_v24 = vshll.u32 %v3965_v30, 16  ;;  %v3378_v16 = vrot.slane %v3377_v52, 4 }
 0x318   : > { %5794 = vmatmul.msk.bf16.gmra.mxu2 %vm3420_vm2, %v5986_v2  ;;  %v3366_v2 = vshll.u32 %v3200_v56, 16  ;;  %v3387_v56 = vor.u32 %v3386_v34, %v3382_v47 }
 0x319   : > { %v4009_v15 = vrot.slane %v4007_v24, 5 }
 0x31a   : > { %v3368_v5 = vrot.slane %v3366_v2, 5  ;;  %v3388_v35 = vrot.slane %v3387_v56, 4  ;;  %v3711_v2 = vunpack.c.l.b16 %v3693_v27  ;;  %v4338_v56 = vrot.slane %v7547_v1, 5 }
 0x31b   : > { %v4036_v27 = vshrl.u32 %v3969_v61, 16 }
 0x31c   : > { %v3369_v48 = vsel %vm6212_vm4, %v3364_v41, %v3368_v5  ;;  %v3383_v41 = vsel %vm6212_vm4, %v3378_v16, %v3382_v47  ;;  %v3393_v5 = vsel %vm6212_vm4, %v3388_v35, %v3392_v22  ;;  %v3719_v8 = vpack.c.b16 %v3711_v2, %v3710_v57 }
 0x31d   : > { %v3409_v17 = vunpack.c.l.b16 %v3369_v48  ;;  %v3411_v63 = vunpack.c.l.b16 %v3393_v5  ;;  %v5866_v16 = vrot.slane %v4298_v23, 9  ;;  %v4340_v35 = vrot.slane %v4338_v56, 4  ;;  %v3974_v23 = vld [vmem:[#allocation2 + $0x38] sm:$0x1] }
 0x31e   : > { %v4038_v6 = vrot.slane %v4036_v27, 4 }
 0x31f   : > { %5811 = vmatmul.msk.bf16.gmra.mxu3 %vm3420_vm2, %v3716_v55  ;;  %v5873_v55 = vld [vmem:[%s7928_s3 + $0x14] sm:$0xf]  ;;  %v3418_v44 = vpack.c.b16 %v3409_v17, %v3408_v54  ;;  %v4333_v54 = vrot.slane %v4331_v59, 4  ;;  %v4334_v17 = vrot.slane %v3965_v30, 5 }
 0x320   : > { %v4436_v39 = vsel %vm3445_vm1, %v5873_v55, 0  ;;  %v5998_v55 = vld [vmem:[#allocation2 + $0x18] sm:$0xff] }
 0x321   : > { %4445 = vmatpush.bf16.msra.mxu3 %v4436_v39  ;;  %5915 = vmatmul.msk.bf16.vlgmr.msra.gmra.mxu0 %vm3420_vm2, %v5998_v55  ;;  %v3410_v39 = vunpack.c.l.b16 %v3383_v41  ;;  %v4335_v62 = vsel %vm6250_vm7, %v4333_v54, %v4334_v17  ;;  %v5990_v41 = vld [vmem:[#allocation2 + $0xc] sm:$0xff]  ;;  %v4339_v55 = vsel %vm6250_vm7, %v5866_v16, %v4338_v56 }
 0x322   : > { %v4388_v50 = vunpack.c.l.b16 %v4335_v62  ;;  %v4389_v33 = vunpack.c.l.b16 %v4339_v55  ;;  %v6000_v54 = vld [vmem:[#allocation2 + $0x30] sm:$0xff] }
 0x323   : > { %v3419_v49 = vpack.c.b16 %v3411_v63, %v3410_v39  ;;  %v3972_v17 = vld [vmem:[#allocation2 + $0x30] sm:$0xf] }
 0x324   : > { %v4060_v62 = vshrl.u32 %v3972_v17, 16 }
 0x325   : > { %5754 = vmatmul.msk.bf16.gmra.mxu1 %vm3420_vm2, %v3416_v19  ;;  %v3988_v19 = vshrl.u32 %v3963_v18, 16 }
 0x327   : > { %v3990_v38 = vrot.slane %v3988_v19, 4 }
 0x328   : > { %5795 = vmatmul.msk.bf16.gmra.mxu2 %vm3420_vm2, %v5987_v20  ;;  %v5127_v20 = vsel %vm3445_vm1, %v5940_v31, 0  ;;  %v4014_v31 = vrot.slane %v4012_v42, 4 }
 0x329   : > { %5136 = vmatpush.bf16.msra.mxu2 %v5127_v20  ;;  %v3994_v40 = vor.u32 %v3993_v12, %v3990_v38  ;;  %v4332_v20 = vsel %vm6250_vm7, %v5865_v9, %v4331_v59  ;;  %v7564_v38 = vld [vmem:[#allocation2 + $0x28] sm:$0xf] }
 0x32a   : > { %v4018_v47 = vor.u32 %v4017_v37, %v4014_v31  ;;  %v4387_v45 = vunpack.c.l.b16 %v4332_v20  ;;  %v4045_v22 = vshll.u32 %v7564_v38, 16  ;;  %v4299_v20 = vld [vmem:[#allocation2 + $0x24] sm:$0xe] }
 0x32b   : > { %v3995_v14 = vrot.slane %v3994_v40, 4  ;;  %v4049_v40 = vshrl.u32 %v7564_v38, 16 }
 0x32c   : > { %v4019_v12 = vrot.slane %v4018_v47, 4  ;;  %v4403_v52 = vpack.c.b16 %v4388_v50, %v4387_v45  ;;  %v4047_v2 = vrot.slane %v4045_v22, 5 }
 0x32d   : > { %v4000_v48 = vsel %vm6212_vm4, %v3995_v14, %v3999_v28 }
 0x32e   : > { %v4181_v7 = vunpack.c.l.b16 %v4000_v48 }
 0x32f   : > { %5812 = vmatmul.msk.bf16.gmra.mxu3 %vm3420_vm2, %v3717_v13  ;;  %v4003_v13 = vrot.slane %v4001_v21, 4  ;;  %v3968_v21 = vld [vmem:[#allocation2 + $0x20] sm:$0x1] }
 0x330   : > { %v4031_v36 = vshll.u32 %v3968_v21, 16 }
 0x331   : > { %v4004_v25 = vor.u32 %v4003_v13, %v3999_v28 }
 0x332   : > { %v4033_v13 = vrot.slane %v4031_v36, 5 }
 0x335   : > { %5755 = vmatmul.msk.bf16.gmra.mxu1 %vm3420_vm2, %v3417_v26  ;;  %v4921_v26 = vsel %vm3445_vm1, %v5923_v3, 0  ;;  %v4341_v3 = vrot.slane %v3968_v21, 5  ;;  %v4345_v21 = vrot.slane %v7564_v38, 5 }
 0x336   : > { %4930 = vmatpush.bf16.msra.mxu1 %v4921_v26  ;;  %v4051_v26 = vrot.slane %v4049_v40, 4 }
 0x338   : > { %5796 = vmatmul.msk.bf16.gmra.mxu2 %vm3420_vm2, %v5988_v32  ;;  %v4005_v32 = vrot.slane %v4004_v25, 4  ;;  %v4024_v25 = vsel %vm6212_vm4, %v4019_v12, %v4023_v51  ;;  %v4052_v39 = vor.u32 %v4051_v26, %v4047_v2  ;;  %v4347_v12 = vrot.slane %v4345_v21, 4 }
 0x339   : > { %v4183_v60 = vunpack.c.l.b16 %v4024_v25 }
 0x33a   : > { %v4010_v18 = vsel %vm6212_vm4, %v4005_v32, %v4009_v15  ;;  %v3971_v32 = vld [vmem:[#allocation2 + $0x2c] sm:$0x1]  ;;  %v4053_v53 = vrot.slane %v4052_v39, 4 }
 0x33b   : > { %v4182_v19 = vunpack.c.l.b16 %v4010_v18  ;;  %v4055_v63 = vshll.u32 %v3971_v32, 16 }
 0x33d   : > { %v4197_v58 = vpack.c.b16 %v4182_v19, %v4181_v7 }
 0x33f   : > { %5813 = vmatmul.msk.bf16.gmra.mxu3 %vm3420_vm2, %v3718_v10  ;;  %v4025_v10 = vshrl.u32 %v7547_v1, 16 }
 0x341   : > { %v4027_v11 = vrot.slane %v4025_v10, 4  ;;  %v4057_v10 = vrot.slane %v4055_v63, 5 }
 0x343   : > { %v4028_v34 = vor.u32 %v4027_v11, %v4023_v51  ;;  %v4058_v11 = vsel %vm6212_vm4, %v4053_v53, %v4057_v10 }
 0x344   : > { %v4186_v50 = vunpack.c.l.b16 %v4058_v11 }
 0x345   : > { %5756 = vmatmul.msk.bf16.gmra.mxu1 %vm3420_vm2, %v3418_v44  ;;  %v4029_v28 = vrot.slane %v4028_v34, 4  ;;  %v5999_v44 = vld [vmem:[#allocation2 + $0x24] sm:$0xff] }
 0x346   : > { %5916 = vmatmul.msk.bf16.gmra.mxu0 %vm3420_vm2, %v5999_v44 }
 0x347   : > { %v4034_v24 = vsel %vm6212_vm4, %v4029_v28, %v4033_v13  ;;  %v4348_v28 = vrot.slane %v3971_v32, 5  ;;  %v4062_v13 = vrot.slane %v4060_v62, 4  ;;  %v3977_v62 = vld [vmem:[#allocation2 + $0x44] sm:$0x1] }
 0x348   : > { %5797 = vmatmul.msk.bf16.gmra.mxu2 %vm3420_vm2, %v5989_v43  ;;  %v4039_v43 = vshll.u32 %v3969_v61, 16  ;;  %v4184_v14 = vunpack.c.l.b16 %v4034_v24  ;;  %v5867_v61 = vrot.slane %v4299_v20, 9 }
 0x349   : > { %v4349_v25 = vsel %vm6250_vm7, %v4347_v12, %v4348_v28 }
 0x34a   : > { %v4041_v57 = vrot.slane %v4039_v43, 5  ;;  %v4198_v48 = vpack.c.b16 %v4184_v14, %v4183_v60  ;;  %v4346_v40 = vsel %vm6250_vm7, %v5867_v61, %v4345_v21 }
 0x34c   : > { %v4042_v59 = vor.u32 %v4041_v57, %v4038_v6  ;;  %v4391_v57 = vunpack.c.l.b16 %v4346_v40 }
 0x34e   : > { %v4043_v46 = vrot.slane %v4042_v59, 4 }
 0x34f   : > { %5814 = vmatmul.msk.bf16.gmra.mxu3 %vm3420_vm2, %v3719_v8  ;;  %v4342_v8 = vsel %vm6250_vm7, %v4340_v35, %v4341_v3  ;;  %v4079_v3 = vshll.u32 %v3974_v23, 16 }
 0x350   : > { %v4390_v42 = vunpack.c.l.b16 %v4342_v8  ;;  %v4048_v51 = vsel %vm6212_vm4, %v4043_v46, %v4047_v2  ;;  %v4392_v2 = vunpack.c.l.b16 %v4349_v25  ;;  %v7604_v8 = vld [vmem:[#allocation2 + $0x40] sm:$0xf] }
 0x351   : > { %v4185_v45 = vunpack.c.l.b16 %v4048_v51  ;;  %v4081_v14 = vrot.slane %v4079_v3, 5  ;;  %v4093_v53 = vshll.u32 %v7604_v8, 16  ;;  %v4097_v10 = vshrl.u32 %v7604_v8, 16 }
 0x352   : > { %v4404_v19 = vpack.c.b16 %v4390_v42, %v4389_v33  ;;  %v4405_v55 = vpack.c.b16 %v4392_v2, %v4391_v57  ;;  %v4301_v57 = vld [vmem:[#allocation2 + $0x3c] sm:$0xe] }
 0x353   : > { %v4199_v24 = vpack.c.b16 %v4186_v50, %v4185_v45  ;;  %v4095_v11 = vrot.slane %v4093_v53, 5  ;;  %v4099_v21 = vrot.slane %v4097_v10, 4 }
 0x355   : > { %5757 = vmatmul.msk.bf16.gmra.mxu1 %vm3420_vm2, %v3419_v49  ;;  %v7583_v49 = vld [vmem:[#allocation2 + $0x34] sm:$0xf]  ;;  %v4100_v28 = vor.u32 %v4099_v21, %v4095_v11 }
 0x356   : > { %5917 = vmatmul.msk.bf16.gmra.mxu0 %vm3420_vm2, %v6000_v54  ;;  %v4069_v47 = vshll.u32 %v7583_v49, 16  ;;  %v4073_v34 = vshrl.u32 %v7583_v49, 16  ;;  %v4352_v59 = vrot.slane %v7583_v49, 5 }
 0x358   : > { %5857 = vmatmul.msk.bf16.vlgmr.msrb.gmra.mxu2 %vm3420_vm2, %v4197_v58  ;;  %v4063_v58 = vshll.u32 %v3972_v17, 16  ;;  %v4071_v44 = vrot.slane %v4069_v47, 5  ;;  %v4354_v54 = vrot.slane %v4352_v59, 4  ;;  %v4355_v17 = vrot.slane %v3974_v23, 5 }
 0x35a   : > { %v4065_v38 = vrot.slane %v4063_v58, 5  ;;  %v4356_v45 = vsel %vm6250_vm7, %v4354_v54, %v4355_v17 }
 0x35b   : > { %v3574_v30 = vpop.f32.mrf.mxu2 }
 0x35c   : > { %v4066_v16 = vor.u32 %v4065_v38, %v4062_v13  ;;  %v4103_v13 = vshll.u32 %v3977_v62, 16 }
 0x35e   : > { %v4067_v26 = vrot.slane %v4066_v16, 4 }
 0x35f   : > { %5874 = vmatmul.msk.bf16.vlgmr.msra.gmra.mxu3 %vm3420_vm2, %v4403_v52  ;;  %v4075_v52 = vrot.slane %v4073_v34, 4 }
 0x360   : > { %v4072_v39 = vsel %vm6212_vm4, %v4067_v26, %v4071_v44 }
 0x361   : > { %v4076_v35 = vor.u32 %v4075_v52, %v4071_v44  ;;  %v4187_v49 = vunpack.c.l.b16 %v4072_v39  ;;  %v4394_v44 = vunpack.c.l.b16 %v4356_v45  ;;  %v3978_v52 = vld [vmem:[#allocation2 + $0x48] sm:$0xf]  ;;  %v7646_v45 = vld [vmem:[#allocation2 + $0x58] sm:$0xf] }
 0x362   : > { %v3756_v15 = vpop.f32.mrf.mxu3  ;;  %v3458_v5 = vpop.f32.mrf.mxu1  ;;  %v4108_v16 = vshrl.u32 %v3978_v52, 16  ;;  %v4111_v2 = vshll.u32 %v3978_v52, 16 }
 0x363   : > { %v3575_v4 = vadd.f32 %v3574_v30, %v3458_v5  ;;  %v3576_v1 = vpop.f32.mrf.mxu2  ;;  %v5991_v30 = vld [vmem:[#allocation2 + $0x18] sm:$0xff]  ;;  %v4077_v60 = vrot.slane %v4076_v35, 4 }
 0x365   : > { %v7579_v18 = vadd.f32 %v3756_v15, %v3575_v4  ;;  %5848 = vmatmul.msk.bf16.vlgmr.msrb.gmra.mxu1 %vm3420_vm2, %v5990_v41  ;;  %v6001_v15 = vld [vmem:[#allocation2 + $0x3c] sm:$0xff]  ;;  %v4082_v63 = vsel %vm6212_vm4, %v4077_v60, %v4081_v14 }
 0x366   : > { %v3975_v41 = vld [vmem:[#allocation2 + $0x3c] sm:$0xf]  ;;  %5918 = vmatmul.msk.bf16.gmra.mxu0 %vm3420_vm2, %v6001_v15 }
 0x367   : > { %v4084_v33 = vshrl.u32 %v3975_v41, 16  ;;  %v4087_v46 = vshll.u32 %v3975_v41, 16  ;;  %v5869_v41 = vrot.slane %v4301_v57, 9 }
 0x368   : > { %5858 = vmatmul.msk.bf16.gmra.mxu2 %vm3420_vm2, %v4198_v48  ;;  %v4300_v48 = vld [vmem:[#allocation2 + $0x30] sm:$0xe] }
 0x369   : > { %v4089_v51 = vrot.slane %v4087_v46, 5  ;;  %v5993_v46 = vld [vmem:[#allocation2 + $0x30] sm:$0xff] }
 0x36a   : > { %v3758_v9 = vpop.f32.mrf.mxu3  ;;  %v3460_v7 = vpop.f32.mrf.mxu1 }
 0x36b   : > { %v3577_v31 = vadd.f32 %v3576_v1, %v3460_v7  ;;  %v3579_v37 = vpop.f32.mrf.mxu2  ;;  %v4188_v7 = vunpack.c.l.b16 %v4082_v63 }
 0x36d   : > { %v7593_v36 = vadd.f32 %v3758_v9, %v3577_v31  ;;  %v5868_v9 = vrot.slane %v4300_v48, 9  ;;  %v5992_v31 = vld [vmem:[#allocation2 + $0x24] sm:$0xff]  ;;  %v4200_v50 = vpack.c.b16 %v4188_v7, %v4187_v49  ;;  %v3980_v48 = vld [vmem:[#allocation2 + $0x50] sm:$0x1] }
 0x36f   : > { %5875 = vmatmul.msk.bf16.gmra.mxu3 %vm3420_vm2, %v4404_v19  ;;  %v4353_v34 = vsel %vm6250_vm7, %v5868_v9, %v4352_v59 }
 0x370   : > { %v4393_v38 = vunpack.c.l.b16 %v4353_v34  ;;  %v3981_v34 = vld [vmem:[#allocation2 + $0x54] sm:$0xf] }
 0x372   : > { %v3761_v56 = vpop.f32.mrf.mxu3  ;;  %v3463_v27 = vpop.f32.mrf.mxu1  ;;  %v4406_v25 = vpack.c.b16 %v4394_v44, %v4393_v38 }
 0x373   : > { %v3580_v43 = vadd.f32 %v3579_v37, %v3463_v27  ;;  %v3581_v22 = vpop.f32.mrf.mxu2  ;;  %v4086_v37 = vrot.slane %v4084_v33, 4  ;;  %v4101_v27 = vrot.slane %v4100_v28, 4 }
 0x375   : > { %v7600_v6 = vadd.f32 %v3761_v56, %v3580_v43  ;;  %5849 = vmatmul.msk.bf16.gmra.mxu1 %vm3420_vm2, %v5991_v30  ;;  %v4090_v12 = vor.u32 %v4089_v51, %v4086_v37  ;;  %v7625_v56 = vld [vmem:[#allocation2 + $0x4c] sm:$0xf]  ;;  %v4105_v43 = vrot.slane %v4103_v13, 5 }
 0x376   : > { %v4117_v26 = vshll.u32 %v7625_v56, 16  ;;  %v4121_v60 = vshrl.u32 %v7625_v56, 16  ;;  %v4366_v52 = vrot.slane %v7625_v56, 5 }
 0x377   : > { %v4091_v23 = vrot.slane %v4090_v12, 4  ;;  %v4106_v15 = vsel %vm6212_vm4, %v4101_v27, %v4105_v43  ;;  %v4135_v27 = vshll.u32 %v3981_v34, 16  ;;  %v4141_v43 = vshll.u32 %v7646_v45, 16 }
 0x378   : > { %5859 = vmatmul.msk.bf16.gmra.mxu2 %vm3420_vm2, %v4199_v24  ;;  %v4359_v24 = vrot.slane %v7604_v8, 5  ;;  %v4110_v8 = vrot.slane %v4108_v16, 4  ;;  %v4123_v59 = vrot.slane %v4121_v60, 4  ;;  %v4190_v63 = vunpack.c.l.b16 %v4106_v15  ;;  %v3983_v15 = vld [vmem:[#allocation2 + $0x5c] sm:$0x1] }
 0x379   : > { %v4137_v56 = vrot.slane %v4135_v27, 5 }
 0x37a   : > { %v3763_v32 = vpop.f32.mrf.mxu3  ;;  %v3465_v5 = vpop.f32.mrf.mxu1  ;;  %v4360_v10 = vsel %vm6250_vm7, %v5869_v41, %v4359_v24 }
 0x37b   : > { %v3582_v4 = vadd.f32 %v3581_v22, %v3465_v5  ;;  %v3584_v1 = vpop.f32.mrf.mxu2  ;;  %v6002_v22 = vld [vmem:[#allocation2 + $0x48] sm:$0xff]  ;;  %v4361_v5 = vrot.slane %v4359_v24, 4  ;;  %v4395_v51 = vunpack.c.l.b16 %v4360_v10 }
 0x37c   : > { %5919 = vmatmul.msk.bf16.gmra.mxu0 %vm3420_vm2, %v6002_v22  ;;  %v4145_v22 = vshrl.u32 %v7646_v45, 16 }
 0x37d   : > { %v7612_v42 = vadd.f32 %v3763_v32, %v3582_v4  ;;  %v4096_v32 = vsel %vm6212_vm4, %v4091_v23, %v4095_v11  ;;  %v4113_v4 = vrot.slane %v4111_v2, 5  ;;  %v4132_v23 = vshrl.u32 %v3981_v34, 16 }
 0x37e   : > { %v4189_v39 = vunpack.c.l.b16 %v4096_v32  ;;  %v4143_v2 = vrot.slane %v4141_v43, 5  ;;  %v5994_v32 = vld [vmem:[#allocation2 + $0x3c] sm:$0xff] }
 0x37f   : > { %5876 = vmatmul.msk.bf16.gmra.mxu3 %vm3420_vm2, %v4405_v55  ;;  %v4362_v55 = vrot.slane %v3977_v62, 5  ;;  %v4114_v49 = vor.u32 %v4113_v4, %v4110_v8  ;;  %v4134_v57 = vrot.slane %v4132_v23, 4  ;;  %v5995_v23 = vld [vmem:[#allocation2 + $0x48] sm:$0xff] }
 0x381   : > { %v4363_v9 = vsel %vm6250_vm7, %v4361_v5, %v4362_v55  ;;  %v4115_v21 = vrot.slane %v4114_v49, 4  ;;  %v3984_v49 = vld [vmem:[#allocation2 + $0x60] sm:$0xf] }
 0x382   : > { %v3766_v19 = vpop.f32.mrf.mxu3  ;;  %v3468_v20 = vpop.f32.mrf.mxu1  ;;  %v4396_v11 = vunpack.c.l.b16 %v4363_v9 }
 0x383   : > { %v3585_v58 = vadd.f32 %v3584_v1, %v3468_v20  ;;  %v3586_v47 = vpop.f32.mrf.mxu2  ;;  %v4119_v1 = vrot.slane %v4117_v26, 5  ;;  %v4147_v26 = vrot.slane %v4145_v22, 4 }
 0x384   : > { %v4407_v12 = vpack.c.b16 %v4396_v11, %v4395_v51 }
 0x385   : > { %v7621_v61 = vadd.f32 %v3766_v19, %v3585_v58  ;;  %5850 = vmatmul.msk.bf16.gmra.mxu1 %vm3420_vm2, %v5992_v31  ;;  %v4124_v7 = vor.u32 %v4123_v59, %v4119_v1  ;;  %v4127_v19 = vshll.u32 %v3980_v48, 16  ;;  %v4201_v31 = vpack.c.b16 %v4190_v63, %v4189_v39 }
 0x386   : > { %v4120_v38 = vsel %vm6212_vm4, %v4115_v21, %v4119_v1  ;;  %v4138_v59 = vor.u32 %v4137_v56, %v4134_v57  ;;  %v4148_v39 = vor.u32 %v4147_v26, %v4143_v2  ;;  %v4151_v63 = vshll.u32 %v3983_v15, 16 }
 0x387   : > { %v4125_v20 = vrot.slane %v4124_v7, 4  ;;  %v4129_v62 = vrot.slane %v4127_v19, 5  ;;  %v4373_v21 = vrot.slane %v7646_v45, 5 }
 0x388   : > { %5860 = vmatmul.msk.bf16.gmra.mxu2 %vm3420_vm2, %v4200_v50  ;;  %v4149_v10 = vrot.slane %v4148_v39, 4  ;;  %v4153_v9 = vrot.slane %v4151_v63, 5 }
 0x389   : > { %v4130_v44 = vsel %vm6212_vm4, %v4125_v20, %v4129_v62 }
 0x38a   : > { %v3768_v30 = vpop.f32.mrf.mxu3  ;;  %v3470_v40 = vpop.f32.mrf.mxu1  ;;  %v4192_v24 = vunpack.c.l.b16 %v4130_v44  ;;  %v4154_v62 = vsel %vm6212_vm4, %v4149_v10, %v4153_v9  ;;  %v4304_v10 = vld [vmem:[#allocation2 + $0x60] sm:$0xe] }
 0x38b   : > { %v3587_v35 = vadd.f32 %v3586_v47, %v3470_v40  ;;  %v3589_v3 = vpop.f32.mrf.mxu2  ;;  %v6003_v47 = vld [vmem:[#allocation2 + $0x54] sm:$0xff] }
 0x38c   : > { %5920 = vmatmul.msk.bf16.gmra.mxu0 %vm3420_vm2, %v6003_v47  ;;  %v4156_v47 = vshrl.u32 %v3984_v49, 16 }
 0x38d   : > { %v7631_v14 = vadd.f32 %v3768_v30, %v3587_v35  ;;  %v4302_v30 = vld [vmem:[#allocation2 + $0x48] sm:$0xe]  ;;  %v4368_v35 = vrot.slane %v4366_v52, 4 }
 0x38e   : > { %v5870_v16 = vrot.slane %v4302_v30, 9  ;;  %v4158_v27 = vrot.slane %v4156_v47, 4 }
 0x38f   : > { %5877 = vmatmul.msk.bf16.gmra.mxu3 %vm3420_vm2, %v4406_v25  ;;  %v4191_v25 = vunpack.c.l.b16 %v4120_v38  ;;  %v4376_v38 = vrot.slane %v3983_v15, 5 }
 0x390   : > { %v4367_v8 = vsel %vm6250_vm7, %v5870_v16, %v4366_v52  ;;  %v4194_v52 = vunpack.c.l.b16 %v4154_v62  ;;  %v3986_v16 = vld [vmem:[#allocation2 + $0x68] sm:$0x1]  ;;  %v4655_v62 = vld [vmem:[#allocation2 + $0x1c] sm:$0xf] }
 0x391   : > { %v4202_v1 = vpack.c.b16 %v4192_v24, %v4191_v25  ;;  %v4175_v15 = vshll.u32 %v3986_v16, 16 }
 0x392   : > { %v3771_v33 = vpop.f32.mrf.mxu3  ;;  %v3473_v53 = vpop.f32.mrf.mxu1 }
 0x393   : > { %v3590_v54 = vadd.f32 %v3589_v3, %v3473_v53  ;;  %v3591_v17 = vpop.f32.mrf.mxu2  ;;  %v4369_v3 = vrot.slane %v3980_v48, 5  ;;  %v4139_v53 = vrot.slane %v4138_v59, 4  ;;  %v6005_v59 = vld [vmem:[#allocation2 + $0x6c] sm:$0xff] }
 0x395   : > { %v7642_v37 = vadd.f32 %v3771_v33, %v3590_v54  ;;  %5851 = vmatmul.msk.bf16.gmra.mxu1 %vm3420_vm2, %v5993_v46  ;;  %v4370_v4 = vsel %vm6250_vm7, %v4368_v35, %v4369_v3  ;;  %v4397_v33 = vunpack.c.l.b16 %v4367_v8  ;;  %v4144_v20 = vsel %vm6212_vm4, %v4139_v53, %v4143_v2 }
 0x396   : > { %v4398_v46 = vunpack.c.l.b16 %v4370_v4  ;;  %v4193_v44 = vunpack.c.l.b16 %v4144_v20 }
 0x398   : > { %5861 = vmatmul.msk.bf16.gmra.mxu2 %vm3420_vm2, %v4201_v31  ;;  %v4408_v19 = vpack.c.b16 %v4398_v46, %v4397_v33  ;;  %v7667_v31 = vld [vmem:[#allocation2 + $0x64] sm:$0xf]  ;;  %v4203_v2 = vpack.c.b16 %v4194_v52, %v4193_v44 }
 0x399   : > { %v4380_v53 = vrot.slane %v7667_v31, 5 }
 0x39a   : > { %v3773_v58 = vpop.f32.mrf.mxu3  ;;  %v3475_v50 = vpop.f32.mrf.mxu1 }
 0x39b   : > { %v3592_v28 = vadd.f32 %v3591_v17, %v3475_v50  ;;  %v3594_v13 = vpop.f32.mrf.mxu2  ;;  %v6004_v17 = vld [vmem:[#allocation2 + $0x60] sm:$0xff]  ;;  %v4159_v50 = vshll.u32 %v3984_v49, 16  ;;  %v5872_v49 = vrot.slane %v4304_v10, 9 }
 0x39c   : > { %5921 = vmatmul.msk.bf16.gmra.mxu0 %vm3420_vm2, %v6004_v17 }
 0x39d   : > { %v7656_v40 = vadd.f32 %v3773_v58, %v3592_v28  ;;  %v4303_v58 = vld [vmem:[#allocation2 + $0x54] sm:$0xe]  ;;  %v4169_v28 = vshrl.u32 %v7667_v31, 16  ;;  %v4161_v43 = vrot.slane %v4159_v50, 5  ;;  %v4381_v50 = vsel %vm6250_vm7, %v5872_v49, %v4380_v53 }
 0x39e   : > { %v5871_v45 = vrot.slane %v4303_v58, 9  ;;  %v4401_v44 = vunpack.c.l.b16 %v4381_v50 }
 0x39f   : > { %5878 = vmatmul.msk.bf16.gmra.mxu3 %vm3420_vm2, %v4407_v12  ;;  %v4165_v12 = vshll.u32 %v7667_v31, 16  ;;  %v4171_v25 = vrot.slane %v4169_v28, 4  ;;  %v5996_v31 = vld [vmem:[#allocation2 + $0x54] sm:$0xff] }
 0x3a0   : > { %v4374_v57 = vsel %vm6250_vm7, %v5871_v45, %v4373_v21  ;;  %v4654_v45 = vld [vmem:[#allocation2 + $0x18] sm:$0xf] }
 0x3a1   : > { %v4167_v22 = vrot.slane %v4165_v12, 5 }
 0x3a2   : > { %v3776_v60 = vpop.f32.mrf.mxu3  ;;  %v3478_v41 = vpop.f32.mrf.mxu1 }
 0x3a3   : > { %v3595_v5 = vadd.f32 %v3594_v13, %v3478_v41  ;;  %v3596_v55 = vpop.f32.mrf.mxu2  ;;  %v4375_v13 = vrot.slane %v4373_v21, 4  ;;  %v4399_v41 = vunpack.c.l.b16 %v4374_v57 }
 0x3a5   : > { %v7663_v48 = vadd.f32 %v3776_v60, %v3595_v5  ;;  %5852 = vmatmul.msk.bf16.gmra.mxu1 %vm3420_vm2, %v5994_v32  ;;  %v4377_v56 = vsel %vm6250_vm7, %v4375_v13, %v4376_v38  ;;  %v4162_v60 = vor.u32 %v4161_v43, %v4158_v27  ;;  %v4172_v32 = vor.u32 %v4171_v25, %v4167_v22 }
 0x3a6   : > { %v4400_v5 = vunpack.c.l.b16 %v4377_v56  ;;  %v5022_v38 = vrot.slane %v4655_v62, 5  ;;  %v4679_v27 = vshrl.u32 %v4654_v45, 16  ;;  %v4682_v43 = vshll.u32 %v4654_v45, 16 }
 0x3a7   : > { %v4163_v8 = vrot.slane %v4162_v60, 4  ;;  %v4173_v4 = vrot.slane %v4172_v32, 4  ;;  %v4692_v25 = vshrl.u32 %v4655_v62, 16 }
 0x3a8   : > { %5862 = vmatmul.msk.bf16.gmra.mxu2 %vm3420_vm2, %v4202_v1  ;;  %v4177_v1 = vrot.slane %v4175_v15, 5  ;;  %v4409_v63 = vpack.c.b16 %v4400_v5, %v4399_v41  ;;  %v4681_v32 = vrot.slane %v4679_v27, 4  ;;  %v4684_v15 = vrot.slane %v4682_v43, 5 }
 0x3a9   : > { %v4694_v5 = vrot.slane %v4692_v25, 4 }
 0x3aa   : > { %v3778_v54 = vpop.f32.mrf.mxu3  ;;  %v3480_v7 = vpop.f32.mrf.mxu1  ;;  %v4178_v17 = vsel %vm6212_vm4, %v4173_v4, %v4177_v1  ;;  %v4685_v1 = vor.u32 %v4684_v15, %v4681_v32 }
 0x3ab   : > { %v3597_v51 = vadd.f32 %v3596_v55, %v3480_v7  ;;  %v3599_v11 = vpop.f32.mrf.mxu2  ;;  %v4382_v7 = vrot.slane %v4380_v53, 4  ;;  %v5997_v53 = vld [vmem:[#allocation2 + $0x60] sm:$0xff] }
 0x3ac   : > { %5922 = vmatmul.msk.bf16.gmra.mxu0 %vm3420_vm2, %v6005_v59 }
 0x3ad   : > { %v7675_v34 = vadd.f32 %v3778_v54, %v3597_v51  ;;  %v4168_v54 = vsel %vm6212_vm4, %v4163_v8, %v4167_v22  ;;  %v4688_v22 = vshll.u32 %v4655_v62, 16  ;;  %v4657_v62 = vld [vmem:[#allocation2 + $0x24] sm:$0xf] }
 0x3ae   : > { %v4195_v51 = vunpack.c.l.b16 %v4168_v54  ;;  %v4658_v54 = vld [vmem:[#allocation2 + $0x28] sm:$0xf]  ;;  %v4706_v45 = vshll.u32 %v4657_v62, 16 }
 0x3af   : > { %5879 = vmatmul.msk.bf16.gmra.mxu3 %vm3420_vm2, %v4408_v19  ;;  %v4383_v19 = vrot.slane %v3986_v16, 5  ;;  %v4690_v41 = vrot.slane %v4688_v22, 5 }
 0x3b1   : > { %v4384_v12 = vsel %vm6250_vm7, %v4382_v7, %v4383_v19  ;;  %v4686_v7 = vrot.slane %v4685_v1, 4 }
 0x3b2   : > { %v3781_v30 = vpop.f32.mrf.mxu3  ;;  %v3483_v24 = vpop.f32.mrf.mxu1  ;;  %v4402_v52 = vunpack.c.l.b16 %v4384_v12 }
 0x3b3   : > { %v3600_v35 = vadd.f32 %v3599_v11, %v3483_v24  ;;  %v3601_v3 = vpop.f32.mrf.mxu2  ;;  %v4196_v11 = vunpack.c.l.b16 %v4178_v17 }
 0x3b4   : > { %v4410_v56 = vpack.c.b16 %v4402_v52, %v4401_v44  ;;  %v4712_v52 = vshll.u32 %v4658_v54, 16 }
 0x3b5   : > { %v7684_v26 = vadd.f32 %v3781_v30, %v3600_v35  ;;  %5853 = vmatmul.msk.bf16.gmra.mxu1 %vm3420_vm2, %v5995_v23  ;;  %v4204_v28 = vpack.c.b16 %v4196_v11, %v4195_v51  ;;  %v4656_v30 = vld [vmem:[#allocation2 + $0x20] sm:$0x1]  ;;  %v4988_v23 = vld [vmem:[#allocation2 + $0x18] sm:$0xe]  ;;  %v5024_v35 = vrot.slane %v5022_v38, 4 }
 0x3b6   : > { %v5932_v16 = vrot.slane %v4988_v23, 9 }
 0x3b8   : > { %5863 = vmatmul.msk.bf16.gmra.mxu2 %vm3420_vm2, %v4203_v2  ;;  %v5023_v8 = vsel %vm6250_vm7, %v5932_v16, %v5022_v38 }
 0x3b9   : > { %v5078_v59 = vunpack.c.l.b16 %v5023_v8 }
 0x3ba   : > { %v3783_v55 = vpop.f32.mrf.mxu3  ;;  %v3485_v39 = vpop.f32.mrf.mxu1 }
 0x3bb   : > { %v3602_v33 = vadd.f32 %v3601_v3, %v3485_v39  ;;  %v3604_v46 = vpop.f32.mrf.mxu2  ;;  %v5025_v3 = vrot.slane %v4656_v30, 5 }
 0x3bd   : > { %v7690_v9 = vadd.f32 %v3783_v55, %v3602_v33  ;;  %v5026_v4 = vsel %vm6250_vm7, %v5024_v35, %v5025_v3  ;;  %v4698_v33 = vshll.u32 %v4656_v30, 16  ;;  %v4716_v30 = vshrl.u32 %v4658_v54, 16 }
 0x3be   : > { %v5079_v39 = vunpack.c.l.b16 %v5026_v4  ;;  %v4708_v3 = vrot.slane %v4706_v45, 5 }
 0x3bf   : > { %5880 = vmatmul.msk.bf16.gmra.mxu3 %vm3420_vm2, %v4409_v63  ;;  %v4695_v63 = vor.u32 %v4694_v5, %v4690_v41  ;;  %v4700_v11 = vrot.slane %v4698_v33, 5 }
 0x3c0   : > { %v5094_v19 = vpack.c.b16 %v5079_v39, %v5078_v59  ;;  %v4661_v59 = vld [vmem:[#allocation2 + $0x34] sm:$0xf] }
 0x3c1   : > { %v4696_v51 = vrot.slane %v4695_v63, 4 }
 0x3c2   : > { %v3786_v21 = vpop.f32.mrf.mxu3  ;;  %v3488_v20 = vpop.f32.mrf.mxu1 }
 0x3c3   : > { %v3605_v58 = vadd.f32 %v3604_v46, %v3488_v20  ;;  %v3606_v47 = vpop.f32.mrf.mxu2  ;;  %v5029_v20 = vrot.slane %v4658_v54, 5  ;;  %v4701_v50 = vsel %vm6212_vm4, %v4696_v51, %v4700_v11 }
 0x3c5   : > { %v7701_v13 = vadd.f32 %v3786_v21, %v3605_v58  ;;  %5854 = vmatmul.msk.bf16.gmra.mxu1 %vm3420_vm2, %v5996_v31  ;;  %v4989_v31 = vld [vmem:[#allocation2 + $0x24] sm:$0xe]  ;;  %v4659_v58 = vld [vmem:[#allocation2 + $0x2c] sm:$0x1]  ;;  %v5031_v38 = vrot.slane %v5029_v20, 4 }
 0x3c6   : > { %v5933_v12 = vrot.slane %v4989_v31, 9  ;;  %v5032_v44 = vrot.slane %v4659_v58, 5  ;;  %v4722_v4 = vshll.u32 %v4659_v58, 16 }
 0x3c8   : > { %5864 = vmatmul.msk.bf16.gmra.mxu2 %vm3420_vm2, %v4204_v28  ;;  %v4703_v28 = vshrl.u32 %v4657_v62, 16  ;;  %v5030_v16 = vsel %vm6250_vm7, %v5933_v12, %v5029_v20  ;;  %v4724_v54 = vrot.slane %v4722_v4, 5  ;;  %v4740_v12 = vshrl.u32 %v4661_v59, 16 }
 0x3c9   : > { %v5080_v32 = vunpack.c.l.b16 %v5030_v16 }
 0x3ca   : > { %v3788_v24 = vpop.f32.mrf.mxu3  ;;  %v3490_v57 = vpop.f32.mrf.mxu1  ;;  %v4705_v35 = vrot.slane %v4703_v28, 4 }
 0x3cb   : > { %v3607_v2 = vadd.f32 %v3606_v47, %v3490_v57  ;;  %v3609_v60 = vpop.f32.mrf.mxu2  ;;  %v4691_v47 = vsel %vm6212_vm4, %v4686_v7, %v4690_v41  ;;  %v4990_v7 = vld [vmem:[#allocation2 + $0x30] sm:$0xe] }
 0x3cc   : > { %v4872_v25 = vunpack.c.l.b16 %v4691_v47  ;;  %v4709_v41 = vor.u32 %v4708_v3, %v4705_v35  ;;  %v5934_v11 = vrot.slane %v4990_v7, 9 }
 0x3cd   : > { %v7705_v55 = vadd.f32 %v3788_v24, %v3607_v2  ;;  %v4873_v24 = vunpack.c.l.b16 %v4701_v50  ;;  %v4714_v2 = vrot.slane %v4712_v52, 5  ;;  %v4736_v50 = vshll.u32 %v4661_v59, 16 }
 0x3cf   : > { %5881 = vmatmul.msk.bf16.gmra.mxu3 %vm3420_vm2, %v4410_v56  ;;  %v5033_v56 = vsel %vm6250_vm7, %v5031_v38, %v5032_v44  ;;  %v4888_v5 = vpack.c.b16 %v4873_v24, %v4872_v25  ;;  %v4742_v25 = vrot.slane %v4740_v12, 4 }
 0x3d0   : > { %v5081_v15 = vunpack.c.l.b16 %v5033_v56 }
 0x3d2   : > { %v3791_v46 = vpop.f32.mrf.mxu3  ;;  %v3493_v10 = vpop.f32.mrf.mxu1  ;;  %v5095_v33 = vpack.c.b16 %v5081_v15, %v5080_v32 }
 0x3d3   : > { %v3610_v17 = vadd.f32 %v3609_v60, %v3493_v10  ;;  %v3611_v49 = vpop.f32.mrf.mxu2  ;;  %v4718_v60 = vrot.slane %v4716_v30, 4 }
 0x3d5   : > { %v7712_v21 = vadd.f32 %v3791_v46, %v3610_v17  ;;  %5855 = vmatmul.msk.bf16.gmra.mxu1 %vm3420_vm2, %v5997_v53  ;;  %v4719_v8 = vor.u32 %v4718_v60, %v4714_v2  ;;  %v4710_v46 = vrot.slane %v4709_v41, 4  ;;  %v5036_v17 = vrot.slane %v4661_v59, 5  ;;  %v4664_v60 = vld [vmem:[#allocation2 + $0x40] sm:$0xf] }
 0x3d6   : > { %v5043_v4 = vrot.slane %v4664_v60, 5 }
 0x3d7   : > { %v4720_v10 = vrot.slane %v4719_v8, 4  ;;  %v4715_v51 = vsel %vm6212_vm4, %v4710_v46, %v4714_v2  ;;  %v5038_v31 = vrot.slane %v5036_v17, 4  ;;  %v5037_v30 = vsel %vm6250_vm7, %v5934_v11, %v5036_v17 }
 0x3d8   : > { %5941 = vmatmul.msk.bf16.vlgmr.msra.gmra.mxu2 %vm3420_vm2, %v5094_v19  ;;  %v4660_v19 = vld [vmem:[#allocation2 + $0x30] sm:$0xf]  ;;  %v4874_v38 = vunpack.c.l.b16 %v4715_v51  ;;  %v5082_v24 = vunpack.c.l.b16 %v5037_v30  ;;  %v4760_v17 = vshll.u32 %v4664_v60, 16 }
 0x3d9   : > { %v4727_v58 = vshrl.u32 %v4660_v19, 16  ;;  %v4730_v47 = vshll.u32 %v4660_v19, 16 }
 0x3da   : > { %v3495_v23 = vpop.f32.mrf.mxu1  ;;  %v3793_v27 = vpop.f32.mrf.mxu3 }
 0x3db   : > { %v3612_v43 = vadd.f32 %v3611_v49, %v3495_v23  ;;  %v4241_v22 = vpop.f32.mrf.mxu2  ;;  %v4662_v49 = vld [vmem:[#allocation2 + $0x38] sm:$0x1] }
 0x3dc   : > { %v5039_v20 = vrot.slane %v4662_v49, 5  ;;  %v4746_v2 = vshll.u32 %v4662_v49, 16  ;;  %v5045_v49 = vrot.slane %v5043_v4, 4 }
 0x3dd   : > { %v7722_v57 = vadd.f32 %v3793_v27, %v3612_v43  ;;  %v4729_v27 = vrot.slane %v4727_v58, 4  ;;  %v4732_v43 = vrot.slane %v4730_v47, 5  ;;  %v4762_v47 = vrot.slane %v4760_v17, 5 }
 0x3de   : > { %v5040_v23 = vsel %vm6250_vm7, %v5038_v31, %v5039_v20 }
 0x3df   : > { %v5083_v16 = vunpack.c.l.b16 %v5040_v23 }
 0x3e1   : > { %v5096_v41 = vpack.c.b16 %v5083_v16, %v5082_v24 }
 0x3e2   : > { %v3907_v1 = vpop.f32.mrf.mxu1 }
 0x3e3   : > { %v3947_v39 = vadd.f32 %v3907_v1, %v7579_v18  ;;  %v4243_v63 = vpop.f32.mrf.mxu2  ;;  %v4725_v18 = vsel %vm6212_vm4, %v4720_v10, %v4724_v54  ;;  %v4663_v1 = vld [vmem:[#allocation2 + $0x3c] sm:$0xf] }
 0x3e4   : > { %v4875_v52 = vunpack.c.l.b16 %v4725_v18  ;;  %v4751_v10 = vshrl.u32 %v4663_v1, 16  ;;  %v4754_v54 = vshll.u32 %v4663_v1, 16 }
 0x3e5   : > { %5924 = vmatmul.msk.bf16.vlgmr.msra.gmra.mxu1 %vm3420_vm2, %v4888_v5  ;;  %v7728_v53 = vadd.f32 %v4241_v22, %v3947_v39  ;;  %v4738_v22 = vrot.slane %v4736_v50, 5  ;;  %v4991_v5 = vld [vmem:[#allocation2 + $0x3c] sm:$0xe] }
 0x3e6   : > { %v4889_v35 = vpack.c.b16 %v4875_v52, %v4874_v38  ;;  %v5935_v46 = vrot.slane %v4991_v5, 9  ;;  %v4756_v58 = vrot.slane %v4754_v54, 5 }
 0x3e7   : > { %v4743_v56 = vor.u32 %v4742_v25, %v4738_v22  ;;  %v4667_v25 = vld [vmem:[#allocation2 + $0x4c] sm:$0xf] }
 0x3e8   : > { %5942 = vmatmul.msk.bf16.gmra.mxu2 %vm3420_vm2, %v5095_v33  ;;  %v4665_v33 = vld [vmem:[#allocation2 + $0x44] sm:$0x1]  ;;  %v5044_v20 = vsel %vm6250_vm7, %v5935_v46, %v5043_v4  ;;  %v4784_v46 = vshll.u32 %v4667_v25, 16 }
 0x3e9   : > { %v4744_v39 = vrot.slane %v4743_v56, 4  ;;  %v5046_v7 = vrot.slane %v4665_v33, 5  ;;  %v5084_v52 = vunpack.c.l.b16 %v5044_v20 }
 0x3ea   : > { %v3909_v62 = vpop.f32.mrf.mxu1 }
 0x3eb   : > { %v3948_v28 = vadd.f32 %v3909_v62, %v7593_v36  ;;  %v4246_v45 = vpop.f32.mrf.mxu2  ;;  %v4733_v36 = vor.u32 %v4732_v43, %v4729_v27  ;;  %v4753_v62 = vrot.slane %v4751_v10, 4  ;;  %v5047_v38 = vsel %vm6250_vm7, %v5045_v49, %v5046_v7 }
 0x3ec   : > { %v5085_v30 = vunpack.c.l.b16 %v5047_v38  ;;  %v4788_v10 = vshrl.u32 %v4667_v25, 16  ;;  %v4670_v38 = vld [vmem:[#allocation2 + $0x58] sm:$0xf] }
 0x3ed   : > { %v7736_v44 = vadd.f32 %v4243_v63, %v3948_v28  ;;  %v4734_v59 = vrot.slane %v4733_v36, 4  ;;  %v4748_v63 = vrot.slane %v4746_v2, 5  ;;  %v4757_v23 = vor.u32 %v4756_v58, %v4753_v62 }
 0x3ee   : > { %v4790_v20 = vrot.slane %v4788_v10, 4 }
 0x3ef   : > { %v4739_v51 = vsel %vm6212_vm4, %v4734_v59, %v4738_v22  ;;  %v4749_v18 = vsel %vm6212_vm4, %v4744_v39, %v4748_v63 }
 0x3f0   : > { %v4876_v28 = vunpack.c.l.b16 %v4739_v51 }
 0x3f2   : > { %v3912_v3 = vpop.f32.mrf.mxu1 }
 0x3f3   : > { %v3949_v32 = vadd.f32 %v3912_v3, %v7600_v6  ;;  %v4248_v15 = vpop.f32.mrf.mxu2  ;;  %v4764_v6 = vshrl.u32 %v4664_v60, 16  ;;  %v4758_v3 = vrot.slane %v4757_v23, 4  ;;  %v4992_v60 = vld [vmem:[#allocation2 + $0x48] sm:$0xe] }
 0x3f4   : > { %v5936_v4 = vrot.slane %v4992_v60, 9  ;;  %v4812_v60 = vshrl.u32 %v4670_v38, 16 }
 0x3f5   : > { %5925 = vmatmul.msk.bf16.gmra.mxu1 %vm3420_vm2, %v4889_v35  ;;  %v7744_v8 = vadd.f32 %v4246_v45, %v3949_v32  ;;  %v4766_v50 = vrot.slane %v4764_v6, 4  ;;  %v4877_v45 = vunpack.c.l.b16 %v4749_v18  ;;  %v5097_v35 = vpack.c.b16 %v5085_v30, %v5084_v52 }
 0x3f6   : > { %v5050_v32 = vrot.slane %v4667_v25, 5  ;;  %v4763_v5 = vsel %vm6212_vm4, %v4758_v3, %v4762_v47 }
 0x3f7   : > { %v4767_v27 = vor.u32 %v4766_v50, %v4762_v47  ;;  %v4890_v43 = vpack.c.b16 %v4877_v45, %v4876_v28  ;;  %v4878_v6 = vunpack.c.l.b16 %v4763_v5 }
 0x3f8   : > { %5943 = vmatmul.msk.bf16.gmra.mxu2 %vm3420_vm2, %v5096_v41  ;;  %v4666_v41 = vld [vmem:[#allocation2 + $0x48] sm:$0xf]  ;;  %v5052_v1 = vrot.slane %v5050_v32, 4  ;;  %v5051_v7 = vsel %vm6250_vm7, %v5936_v4, %v5050_v32 }
 0x3f9   : > { %v4768_v36 = vrot.slane %v4767_v27, 4  ;;  %v4775_v39 = vshrl.u32 %v4666_v41, 16  ;;  %v4778_v63 = vshll.u32 %v4666_v41, 16  ;;  %v5086_v62 = vunpack.c.l.b16 %v5051_v7  ;;  %v4669_v27 = vld [vmem:[#allocation2 + $0x54] sm:$0xf] }
 0x3fa   : > { %v3914_v19 = vpop.f32.mrf.mxu1  ;;  %v4799_v3 = vshrl.u32 %v4669_v27, 16 }
 0x3fb   : > { %v3950_v11 = vadd.f32 %v3914_v19, %v7612_v42  ;;  %v4251_v31 = vpop.f32.mrf.mxu2  ;;  %v4770_v42 = vshll.u32 %v4665_v33, 16  ;;  %v4777_v18 = vrot.slane %v4775_v39, 4 }
 0x3fd   : > { %v7754_v12 = vadd.f32 %v4248_v15, %v3950_v11  ;;  %v4772_v56 = vrot.slane %v4770_v42, 5  ;;  %v4668_v15 = vld [vmem:[#allocation2 + $0x50] sm:$0x1]  ;;  %v4780_v11 = vrot.slane %v4778_v63, 5 }
 0x3fe   : > { %v5053_v59 = vrot.slane %v4668_v15, 5  ;;  %v4794_v45 = vshll.u32 %v4668_v15, 16 }
 0x3ff   : > { %v4781_v50 = vor.u32 %v4780_v11, %v4777_v18 }
 0x400   : > { %v5054_v51 = vsel %vm6250_vm7, %v5052_v1, %v5053_v59  ;;  %v4801_v59 = vrot.slane %v4799_v3, 4 }
 0x401   : > { %v5087_v58 = vunpack.c.l.b16 %v5054_v51 }
 0x402   : > { %v3917_v22 = vpop.f32.mrf.mxu1 }
 0x403   : > { %v3951_v24 = vadd.f32 %v3917_v22, %v7621_v61  ;;  %v4253_v16 = vpop.f32.mrf.mxu2  ;;  %v4773_v61 = vsel %vm6212_vm4, %v4768_v36, %v4772_v56  ;;  %v5098_v23 = vpack.c.b16 %v5087_v58, %v5086_v62  ;;  %v5057_v22 = vrot.slane %v4670_v38, 5 }
 0x404   : > { %v4879_v49 = vunpack.c.l.b16 %v4773_v61  ;;  %v4802_v36 = vshll.u32 %v4669_v27, 16  ;;  %v4808_v56 = vshll.u32 %v4670_v38, 16  ;;  %v4994_v38 = vld [vmem:[#allocation2 + $0x60] sm:$0xe] }
 0x405   : > { %5926 = vmatmul.msk.bf16.gmra.mxu1 %vm3420_vm2, %v4890_v43  ;;  %v7760_v2 = vadd.f32 %v4251_v31, %v3951_v24  ;;  %v4786_v31 = vrot.slane %v4784_v46, 5  ;;  %v4782_v43 = vrot.slane %v4781_v50, 4  ;;  %v4796_v24 = vrot.slane %v4794_v45, 5 }
 0x406   : > { %v4891_v47 = vpack.c.b16 %v4879_v49, %v4878_v6  ;;  %v5059_v15 = vrot.slane %v5057_v22, 4  ;;  %v4804_v39 = vrot.slane %v4802_v36, 5  ;;  %v4814_v46 = vrot.slane %v4812_v60, 4 }
 0x407   : > { %v4791_v28 = vor.u32 %v4790_v20, %v4786_v31  ;;  %v4673_v20 = vld [vmem:[#allocation2 + $0x64] sm:$0xf] }
 0x408   : > { %5944 = vmatmul.msk.bf16.gmra.mxu2 %vm3420_vm2, %v5097_v35  ;;  %v4993_v35 = vld [vmem:[#allocation2 + $0x54] sm:$0xe]  ;;  %v4805_v49 = vor.u32 %v4804_v39, %v4801_v59  ;;  %v4836_v3 = vshrl.u32 %v4673_v20, 16 }
 0x409   : > { %v4792_v25 = vrot.slane %v4791_v28, 4  ;;  %v5937_v32 = vrot.slane %v4993_v35, 9  ;;  %v4832_v35 = vshll.u32 %v4673_v20, 16 }
 0x40a   : > { %v3919_v33 = vpop.f32.mrf.mxu1  ;;  %v4838_v59 = vrot.slane %v4836_v3, 4 }
 0x40b   : > { %v3952_v54 = vadd.f32 %v3919_v33, %v7631_v14  ;;  %v4256_v17 = vpop.f32.mrf.mxu2  ;;  %v4797_v61 = vsel %vm6212_vm4, %v4792_v25, %v4796_v24  ;;  %v4810_v33 = vrot.slane %v4808_v56, 5 }
 0x40d   : > { %v7770_v19 = vadd.f32 %v4253_v16, %v3952_v54  ;;  %v4671_v16 = vld [vmem:[#allocation2 + $0x5c] sm:$0x1]  ;;  %v4881_v54 = vunpack.c.l.b16 %v4797_v61  ;;  %v4815_v18 = vor.u32 %v4814_v46, %v4810_v33 }
 0x40e   : > { %v5060_v41 = vrot.slane %v4671_v16, 5 }
 0x410   : > { %v5061_v6 = vsel %vm6250_vm7, %v5059_v15, %v5060_v41 }
 0x411   : > { %v5089_v51 = vunpack.c.l.b16 %v5061_v6  ;;  %v4676_v6 = vld [vmem:[#allocation2 + $0x70] sm:$0xf] }
 0x412   : > { %v3922_v14 = vpop.f32.mrf.mxu1 }
 0x413   : > { %v3953_v52 = vadd.f32 %v3922_v14, %v7642_v37  ;;  %v4258_v30 = vpop.f32.mrf.mxu2  ;;  %v4787_v37 = vsel %vm6212_vm4, %v4782_v43, %v4786_v31  ;;  %v4816_v14 = vrot.slane %v4815_v18, 4  ;;  %v5938_v43 = vrot.slane %v4994_v38, 9 }
 0x414   : > { %v4880_v63 = vunpack.c.l.b16 %v4787_v37 }
 0x415   : > { %5927 = vmatmul.msk.bf16.gmra.mxu1 %vm3420_vm2, %v4891_v47  ;;  %v7776_v42 = vadd.f32 %v4256_v17, %v3953_v52  ;;  %v5058_v17 = vsel %vm6250_vm7, %v5937_v32, %v5057_v22  ;;  %v4806_v47 = vrot.slane %v4805_v49, 4  ;;  %v5064_v52 = vrot.slane %v4673_v20, 5 }
 0x416   : > { %v5088_v7 = vunpack.c.l.b16 %v5058_v17  ;;  %v4892_v11 = vpack.c.b16 %v4881_v54, %v4880_v63  ;;  %v5071_v20 = vrot.slane %v4676_v6, 5 }
 0x417   : > { %v4811_v27 = vsel %vm6212_vm4, %v4806_v47, %v4810_v33  ;;  %v5066_v24 = vrot.slane %v5064_v52, 4  ;;  %v5065_v15 = vsel %vm6250_vm7, %v5938_v43, %v5064_v52  ;;  %v4675_v47 = vld [vmem:[#allocation2 + $0x6c] sm:$0xf]  ;;  %v4447_v43 = vpop.f32.mrf.mxu3 }
 0x418   : > { %5945 = vmatmul.msk.bf16.gmra.mxu2 %vm3420_vm2, %v5098_v23  ;;  %v5099_v50 = vpack.c.b16 %v5089_v51, %v5088_v7  ;;  %v4674_v23 = vld [vmem:[#allocation2 + $0x68] sm:$0x1]  ;;  %v4882_v37 = vunpack.c.l.b16 %v4811_v27  ;;  %v5090_v39 = vunpack.c.l.b16 %v5065_v15  ;;  %v4856_v27 = vshll.u32 %v4676_v6, 16  ;;  %v4598_v15 = vpop.f32.mrf.mxu0 }
 0x419   : > { %v4842_v54 = vshll.u32 %v4674_v23, 16 }
 0x41a   : > { %v3924_v5 = vpop.f32.mrf.mxu1 }
 0x41b   : > { %v3954_v4 = vadd.f32 %v3924_v5, %v7656_v40  ;;  %v4261_v1 = vpop.f32.mrf.mxu2  ;;  %v4818_v40 = vshll.u32 %v4671_v16, 16  ;;  %v5067_v16 = vrot.slane %v4674_v23, 5  ;;  %v4850_v23 = vshll.u32 %v4675_v47, 16 }
 0x41d   : > { %v7784_v10 = vadd.f32 %v4258_v30, %v3954_v4  ;;  %v4820_v28 = vrot.slane %v4818_v40, 5  ;;  %v4672_v30 = vld [vmem:[#allocation2 + $0x60] sm:$0xf]  ;;  %v5068_v4 = vsel %vm6250_vm7, %v5066_v24, %v5067_v16 }
 0x41e   : > { %v4823_v22 = vshrl.u32 %v4672_v30, 16  ;;  %v4826_v25 = vshll.u32 %v4672_v30, 16  ;;  %v5091_v63 = vunpack.c.l.b16 %v5068_v4  ;;  %v4847_v30 = vshrl.u32 %v4675_v47, 16 }
 0x420   : > { %v4825_v41 = vrot.slane %v4823_v22, 4  ;;  %v4828_v5 = vrot.slane %v4826_v25, 5  ;;  %v5100_v51 = vpack.c.b16 %v5091_v63, %v5090_v39 }
 0x422   : > { %v3927_v31 = vpop.f32.mrf.mxu1  ;;  %v4829_v33 = vor.u32 %v4828_v5, %v4825_v41 }
 0x423   : > { %v3955_v62 = vadd.f32 %v3927_v31, %v7663_v48  ;;  %v4263_v58 = vpop.f32.mrf.mxu2  ;;  %v4821_v48 = vsel %vm6212_vm4, %v4816_v14, %v4820_v28  ;;  %v4844_v31 = vrot.slane %v4842_v54, 5  ;;  %v5073_v28 = vrot.slane %v5071_v20, 4 }
 0x424   : > { %v4883_v32 = vunpack.c.l.b16 %v4821_v48  ;;  %v4830_v18 = vrot.slane %v4829_v33, 4  ;;  %v4860_v48 = vshrl.u32 %v4676_v6, 16 }
 0x425   : > { %5928 = vmatmul.msk.bf16.gmra.mxu1 %vm3420_vm2, %v4892_v11  ;;  %v7792_v45 = vadd.f32 %v4261_v1, %v3955_v62  ;;  %v4834_v1 = vrot.slane %v4832_v35, 5  ;;  %v4677_v62 = vld [vmem:[#allocation2 + $0x74] sm:$0x1] }
 0x426   : > { %v4893_v46 = vpack.c.b16 %v4883_v32, %v4882_v37  ;;  %v5074_v38 = vrot.slane %v4677_v62, 5  ;;  %v4858_v37 = vrot.slane %v4856_v27, 5  ;;  %v4862_v32 = vrot.slane %v4860_v48, 4 }
 0x427   : > { %v4866_v39 = vshll.u32 %v4677_v62, 16 }
 0x428   : > { %5946 = vmatmul.msk.bf16.gmra.mxu2 %vm3420_vm2, %v5099_v50  ;;  %v4835_v50 = vsel %vm6212_vm4, %v4830_v18, %v4834_v1 }
 0x429   : > { %v4884_v24 = vunpack.c.l.b16 %v4835_v50  ;;  %v4868_v6 = vrot.slane %v4866_v39, 5 }
 0x42a   : > { %v3929_v36 = vpop.f32.mrf.mxu1 }
 0x42b   : > { %v3956_v56 = vadd.f32 %v3929_v36, %v7675_v34  ;;  %v4266_v60 = vpop.f32.mrf.mxu2  ;;  %v4839_v34 = vor.u32 %v4838_v59, %v4834_v1  ;;  %v5075_v36 = vsel %vm6250_vm7, %v5073_v28, %v5074_v38  ;;  %v4863_v59 = vor.u32 %v4862_v32, %v4858_v37 }
 0x42c   : > { %v5093_v5 = vunpack.c.l.b16 %v5075_v36 }
 0x42d   : > { %v7802_v61 = vadd.f32 %v4263_v58, %v3956_v56  ;;  %v4840_v11 = vrot.slane %v4839_v34, 4  ;;  %v4995_v58 = vld [vmem:[#allocation2 + $0x6c] sm:$0xe]  ;;  %v4849_v56 = vrot.slane %v4847_v30, 4  ;;  %v4449_v34 = vpop.f32.mrf.mxu3 }
 0x42e   : > { %v5939_v14 = vrot.slane %v4995_v58, 9  ;;  %v4488_v36 = vadd.f32 %v4449_v34, %v7736_v44 }
 0x430   : > { %v5072_v3 = vsel %vm6250_vm7, %v5939_v14, %v5071_v20 }
 0x431   : > { %v5092_v41 = vunpack.c.l.b16 %v5072_v3 }
 0x432   : > { %v3932_v17 = vpop.f32.mrf.mxu1 }
 0x433   : > { %v3957_v49 = vadd.f32 %v3932_v17, %v7684_v26  ;;  %v4268_v7 = vpop.f32.mrf.mxu2  ;;  %v4845_v26 = vsel %vm6212_vm4, %v4840_v11, %v4844_v31  ;;  %v4864_v17 = vrot.slane %v4863_v59, 4 }
 0x434   : > { %v4885_v35 = vunpack.c.l.b16 %v4845_v26 }
 0x435   : > { %5929 = vmatmul.msk.bf16.gmra.mxu1 %vm3420_vm2, %v4893_v46  ;;  %v7808_v40 = vadd.f32 %v4266_v60, %v3957_v49  ;;  %v4852_v60 = vrot.slane %v4850_v23, 5  ;;  %v5101_v46 = vpack.c.b16 %v5093_v5, %v5092_v41  ;;  %v4600_v49 = vpop.f32.mrf.mxu0  ;;  %v4452_v58 = vpop.f32.mrf.mxu3  ;;  %v4487_v23 = vadd.f32 %v4447_v43, %v7728_v53 }
 0x436   : > { %v4894_v4 = vpack.c.b16 %v4885_v35, %v4884_v24  ;;  %v7845_v35 = vld [vmem:[%s7929_s4] ss:$0 sm:$0xff]  ;;  %v4639_v43 = vadd.f32 %v4600_v49, %v4488_v36  ;;  %v4489_v5 = vadd.f32 %v4452_v58, %v7744_v8 }
 0x437   : > { %v4853_v1 = vor.u32 %v4852_v60, %v4849_v56 }
 0x438   : > { %5947 = vmatmul.msk.bf16.gmra.mxu2 %vm3420_vm2, %v5100_v51 }
 0x439   : > { %v4854_v54 = vrot.slane %v4853_v1, 4 }
 0x43a   : > { %v3934_v52 = vpop.f32.mrf.mxu1 }
 0x43b   : > { %v3958_v22 = vadd.f32 %v3934_v52, %v7690_v9  ;;  %v4271_v25 = vpop.f32.mrf.mxu2  ;;  %v4859_v51 = vsel %vm6212_vm4, %v4854_v54, %v4858_v37 }
 0x43c   : > { %v4886_v20 = vunpack.c.l.b16 %v4859_v51 }
 0x43d   : > { %v7816_v16 = vadd.f32 %v4268_v7, %v3958_v22  ;;  %v4603_v28 = vpop.f32.mrf.mxu0  ;;  %v4454_v29 = vpop.f32.mrf.mxu3  ;;  %v4638_v22 = vadd.f32 %v4598_v15, %v4487_v23 }
 0x43e   : > { %v4640_v44 = vadd.f32 %v4603_v28, %v4489_v5  ;;  %v4490_v54 = vadd.f32 %v4454_v29, %v7754_v12 }
 0x442   : > { %v3937_v9 = vpop.f32.mrf.mxu1 }
 0x443   : > { %v3959_v63 = vadd.f32 %v3937_v9, %v7701_v13  ;;  %v4273_v33 = vpop.f32.mrf.mxu2  ;;  %v4869_v13 = vsel %vm6212_vm4, %v4864_v17, %v4868_v6 }
 0x444   : > { %v4887_v62 = vunpack.c.l.b16 %v4869_v13 }
 0x445   : > { %5930 = vmatmul.msk.bf16.gmra.mxu1 %vm3420_vm2, %v4894_v4  ;;  %v7824_v0 = vadd.f32 %v4271_v25, %v3959_v63  ;;  %v4605_v48 = vpop.f32.mrf.mxu0  ;;  %v4457_v24 = vpop.f32.mrf.mxu3 }
 0x446   : > { %v4895_v47 = vpack.c.b16 %v4887_v62, %v4886_v20  ;;  %v4641_v49 = vadd.f32 %v4605_v48, %v4490_v54  ;;  %v4491_v62 = vadd.f32 %v4457_v24, %v7760_v2 }
 0x448   : > { %5948 = vmatmul.msk.bf16.gmra.mxu2 %vm3420_vm2, %v5101_v46 }
 0x44a   : > { %v3939_v7 = vpop.f32.mrf.mxu1 }
 0x44b   : > { %v3960_v18 = vadd.f32 %v3939_v7, %v7705_v55  ;;  %v4276_v11 = vpop.f32.mrf.mxu2 }
 0x44d   : > { %v7832_v31 = vadd.f32 %v4273_v33, %v3960_v18  ;;  %v4608_v53 = vpop.f32.mrf.mxu0  ;;  %v4459_v4 = vpop.f32.mrf.mxu3 }
 0x452   : > { %v3942_v50 = vpop.f32.mrf.mxu1 }
 0x453   : > { %v3961_v26 = vadd.f32 %v3942_v50, %v7712_v21  ;;  %v4278_v14 = vpop.f32.mrf.mxu2 }
 0x455   : > { %5931 = vmatmul.msk.bf16.gmra.mxu1 %vm3420_vm2, %v4895_v47  ;;  %v7836_v38 = vadd.f32 %v4276_v11, %v3961_v26  ;;  %v4610_v39 = vpop.f32.mrf.mxu0  ;;  %v4462_v8 = vpop.f32.mrf.mxu3  ;;  %v4642_v47 = vadd.f32 %v4608_v53, %v4491_v62 }
 0x45a   : > { %v3944_v52 = vpop.f32.mrf.mxu1 }
 0x45b   : > { %v3962_v55 = vadd.f32 %v3944_v52, %v7722_v57  ;;  %v5138_v30 = vpop.f32.mrf.mxu2 }
 0x45d   : > { %v7840_v27 = vadd.f32 %v4278_v14, %v3962_v55  ;;  %v4613_v20 = vpop.f32.mrf.mxu0  ;;  %v4464_v50 = vpop.f32.mrf.mxu3  ;;  %v4492_v55 = vadd.f32 %v4459_v4, %v7770_v19 }
 0x45e   : > { %v4494_v5 = vadd.f32 %v4464_v50, %v7784_v10 }
 0x45f   : > { %v4643_v48 = vadd.f32 %v4610_v39, %v4492_v55 }
 0x462   : > { %v4932_v25 = vpop.f32.mrf.mxu1 }
 0x463   : > { %v4972_v21 = vadd.f32 %v4932_v25, %v4638_v22  ;;  %v5140_v3 = vpop.f32.mrf.mxu2 }
 0x465   : > { %v5178_v57 = vadd.f32 %v5138_v30, %v4972_v21  ;;  %v4615_v23 = vpop.f32.mrf.mxu0  ;;  %v4467_v24 = vpop.f32.mrf.mxu3 }
 0x467   : > { %v5198_v56 = vadd.f32 %v7845_v35, %v5178_v57  ;;  %v4493_v57 = vadd.f32 %v4462_v8, %v7776_v42 }
 0x469   : > { %v5214_v60 = vmax.f32 %v5198_v56, 0.0 }
 0x46a   : > { %v4934_v37 = vpop.f32.mrf.mxu1 }
 0x46b   : > { %v5230_v32 = vpack.c.bf16 %v5214_v60, %v5214_v60  ;;  %v4973_v15 = vadd.f32 %v4934_v37, %v4639_v43  ;;  %v5143_v41 = vpop.f32.mrf.mxu2  ;;  %v4644_v43 = vadd.f32 %v4613_v20, %v4493_v57 }
 0x46d   : > { %5246 = vst.msk [vmem:[%s6188_s25] sm:$0xf] %vm3023_vm8, %v5230_v32  ;;  %v5179_v9 = vadd.f32 %v5140_v3, %v4973_v15  ;;  %v4618_v53 = vpop.f32.mrf.mxu0  ;;  %v4469_v4 = vpop.f32.mrf.mxu3 }
 0x46f   : > { %v5199_v1 = vadd.f32 %v7845_v35, %v5179_v9 }
 0x471   : > { %v5215_v59 = vmax.f32 %v5199_v1, 0.0  ;;  %v4645_v1 = vadd.f32 %v4615_v23, %v4494_v5 }
 0x472   : > { %v4937_v63 = vpop.f32.mrf.mxu1 }
 0x473   : > { %v5231_v33 = vpack.c.bf16 %v5215_v59, %v5215_v59  ;;  %v4974_v46 = vadd.f32 %v4937_v63, %v4640_v44  ;;  %v5145_v34 = vpop.f32.mrf.mxu2 }
 0x475   : > { %5247 = vst.msk [vmem:[%s6188_s25 + $0x4] sm:$0xf] %vm3023_vm8, %v5231_v33  ;;  %v5180_v17 = vadd.f32 %v5143_v41, %v4974_v46  ;;  %v4620_v59 = vpop.f32.mrf.mxu0  ;;  %v4472_v10 = vpop.f32.mrf.mxu3 }
 0x477   : > { %v5200_v6 = vadd.f32 %v7845_v35, %v5180_v17 }
 0x479   : > { %v5216_v7 = vmax.f32 %v5200_v6, 0.0 }
 0x47a   : > { %v4939_v51 = vpop.f32.mrf.mxu1 }
 0x47b   : > { %v5232_v13 = vpack.c.bf16 %v5216_v7, %v5216_v7  ;;  %v4975_v18 = vadd.f32 %v4939_v51, %v4641_v49  ;;  %v5148_v11 = vpop.f32.mrf.mxu2 }
 0x47d   : > { %5248 = vst.msk [vmem:[%s6188_s25 + $0x8] sm:$0xf] %vm3023_vm8, %v5232_v13  ;;  %v5181_v58 = vadd.f32 %v5145_v34, %v4975_v18  ;;  %v4495_v34 = vadd.f32 %v4467_v24, %v7792_v45  ;;  %v4623_v18 = vpop.f32.mrf.mxu0 }
 0x47f   : > { %v5201_v12 = vadd.f32 %v7845_v35, %v5181_v58  ;;  %v4646_v8 = vadd.f32 %v4618_v53, %v4495_v34  ;;  %v4474_v58 = vpop.f32.mrf.mxu3 }
 0x480   : > { %v4498_v24 = vadd.f32 %v4474_v58, %v7816_v16 }
 0x481   : > { %v5217_v26 = vmax.f32 %v5201_v12, 0.0 }
 0x482   : > { %v4942_v14 = vpop.f32.mrf.mxu1 }
 0x483   : > { %v5233_v28 = vpack.c.bf16 %v5217_v26, %v5217_v26  ;;  %v4976_v29 = vadd.f32 %v4942_v14, %v4642_v47  ;;  %v5150_v52 = vpop.f32.mrf.mxu2 }
 0x485   : > { %5249 = vst.msk [vmem:[%s6188_s25 + $0xc] sm:$0xf] %vm3023_vm8, %v5233_v28  ;;  %v5182_v30 = vadd.f32 %v5148_v11, %v4976_v29  ;;  %v4496_v11 = vadd.f32 %v4469_v4, %v7802_v61  ;;  %v4497_v28 = vadd.f32 %v4472_v10, %v7808_v40 }
 0x487   : > { %v5202_v2 = vadd.f32 %v7845_v35, %v5182_v30  ;;  %v4647_v62 = vadd.f32 %v4620_v59, %v4496_v11  ;;  %v4648_v55 = vadd.f32 %v4623_v18, %v4497_v28 }
 0x489   : > { %v5218_v22 = vmax.f32 %v5202_v2, 0.0  ;;  %v4477_v2 = vpop.f32.mrf.mxu3 }
 0x48a   : > { %v4944_v25 = vpop.f32.mrf.mxu1 }
 0x48b   : > { %v5234_v21 = vpack.c.bf16 %v5218_v22, %v5218_v22  ;;  %v4977_v3 = vadd.f32 %v4944_v25, %v4643_v48  ;;  %v5153_v36 = vpop.f32.mrf.mxu2 }
 0x48d   : > { %5250 = vst.msk [vmem:[%s6188_s25 + $0x10] sm:$0xf] %vm3023_vm8, %v5234_v21  ;;  %v5183_v56 = vadd.f32 %v5150_v52, %v4977_v3  ;;  %v4625_v52 = vpop.f32.mrf.mxu0 }
 0x48f   : > { %v5203_v19 = vadd.f32 %v7845_v35, %v5183_v56 }
 0x491   : > { %v5219_v60 = vmax.f32 %v5203_v19, 0.0 }
 0x492   : > { %v4947_v37 = vpop.f32.mrf.mxu1 }
 0x493   : > { %v5235_v32 = vpack.c.bf16 %v5219_v60, %v5219_v60  ;;  %v4978_v15 = vadd.f32 %v4947_v37, %v4644_v43  ;;  %v5155_v41 = vpop.f32.mrf.mxu2  ;;  %v4499_v43 = vadd.f32 %v4477_v2, %v7824_v0  ;;  %v4479_v60 = vpop.f32.mrf.mxu3 }
 0x495   : > { %5251 = vst.msk [vmem:[%s6188_s25 + $0x14] sm:$0xf] %vm3023_vm8, %v5235_v32  ;;  %v5184_v9 = vadd.f32 %v5153_v36, %v4978_v15  ;;  %v4628_v3 = vpop.f32.mrf.mxu0  ;;  %v4649_v36 = vadd.f32 %v4625_v52, %v4498_v24 }
 0x496   : > { %v4650_v15 = vadd.f32 %v4628_v3, %v4499_v43 }
 0x497   : > { %v5204_v42 = vadd.f32 %v7845_v35, %v5184_v9 }
 0x499   : > { %v5220_v44 = vmax.f32 %v5204_v42, 0.0 }
 0x49a   : > { %v4949_v39 = vpop.f32.mrf.mxu1 }
 0x49b   : > { %v5236_v63 = vpack.c.bf16 %v5220_v44, %v5220_v44  ;;  %v4979_v33 = vadd.f32 %v4949_v39, %v4645_v1  ;;  %v5158_v46 = vpop.f32.mrf.mxu2  ;;  %v4500_v1 = vadd.f32 %v4479_v60, %v7832_v31  ;;  %v4482_v0 = vpop.f32.mrf.mxu3 }
 0x49d   : > { %5252 = vst.msk [vmem:[%s6188_s25 + $0x18] sm:$0xf] %vm3023_vm8, %v5236_v63  ;;  %v5185_v54 = vadd.f32 %v5155_v41, %v4979_v33  ;;  %v4630_v5 = vpop.f32.mrf.mxu0 }
 0x49e   : > { %v4651_v63 = vadd.f32 %v4630_v5, %v4500_v1 }
 0x49f   : > { %v5205_v17 = vadd.f32 %v7845_v35, %v5185_v54 }
 0x4a1   : > { %v5221_v6 = vmax.f32 %v5205_v17, 0.0  ;;  %v4501_v17 = vadd.f32 %v4482_v0, %v7836_v38 }
 0x4a2   : > { %v4952_v49 = vpop.f32.mrf.mxu1 }
 0x4a3   : > { %v5237_v7 = vpack.c.bf16 %v5221_v6, %v5221_v6  ;;  %v4980_v51 = vadd.f32 %v4952_v49, %v4646_v8  ;;  %v5160_v13 = vpop.f32.mrf.mxu2  ;;  %v4484_v49 = vpop.f32.mrf.mxu3 }
 0x4a5   : > { %5253 = vst.msk [vmem:[%s6188_s25 + $0x1c] sm:$0xf] %vm3023_vm8, %v5237_v7  ;;  %v5186_v20 = vadd.f32 %v5158_v46, %v4980_v51  ;;  %v4633_v10 = vpop.f32.mrf.mxu0 }
 0x4a6   : > { %v4652_v6 = vadd.f32 %v4633_v10, %v4501_v17 }
 0x4a7   : > { %v5206_v45 = vadd.f32 %v7845_v35, %v5186_v20  ;;  %v4502_v20 = vadd.f32 %v4484_v49, %v7840_v27 }
 0x4a9   : > { %v5222_v12 = vmax.f32 %v5206_v45, 0.0 }
 0x4aa   : > { %v4954_v47 = vpop.f32.mrf.mxu1 }
 0x4ab   : > { %v5238_v50 = vpack.c.bf16 %v5222_v12, %v5222_v12  ;;  %v4981_v26 = vadd.f32 %v4954_v47, %v4647_v62  ;;  %v5163_v14 = vpop.f32.mrf.mxu2 }
 0x4ad   : > { %5254 = vst.msk [vmem:[%s6188_s25 + $0x20] sm:$0xf] %vm3023_vm8, %v5238_v50  ;;  %v5187_v29 = vadd.f32 %v5160_v13, %v4981_v26  ;;  %v4635_v38 = vpop.f32.mrf.mxu0 }
 0x4ae   : > { %v4653_v58 = vadd.f32 %v4635_v38, %v4502_v20 }
 0x4af   : > { %v5207_v61 = vadd.f32 %v7845_v35, %v5187_v29 }
 0x4b1   : > { %v5223_v30 = vmax.f32 %v5207_v61, 0.0 }
 0x4b2   : > { %v4957_v23 = vpop.f32.mrf.mxu1 }
 0x4b3   : > { %v5239_v48 = vpack.c.bf16 %v5223_v30, %v5223_v30  ;;  %v4982_v22 = vadd.f32 %v4957_v23, %v4648_v55  ;;  %v5165_v25 = vpop.f32.mrf.mxu2 }
 0x4b5   : > { %5255 = vst.msk [vmem:[%s6188_s25 + $0x24] sm:$0xf] %vm3023_vm8, %v5239_v48  ;;  %v5188_v21 = vadd.f32 %v5163_v14, %v4982_v22 }
 0x4b7   : > { %v5208_v40 = vadd.f32 %v7845_v35, %v5188_v21 }
 0x4b9   : > { %v5224_v57 = vmax.f32 %v5208_v40, 0.0 }
 0x4ba   : > { %v4959_v56 = vpop.f32.mrf.mxu1 }
 0x4bb   : > { %v5240_v19 = vpack.c.bf16 %v5224_v57, %v5224_v57  ;;  %v4983_v53 = vadd.f32 %v4959_v56, %v4649_v36  ;;  %v5168_v32 = vpop.f32.mrf.mxu2 }
 0x4bd   : > { %5256 = vst.msk [vmem:[%s6188_s25 + $0x28] sm:$0xf] %vm3023_vm8, %v5240_v19  ;;  %v5189_v37 = vadd.f32 %v5165_v25, %v4983_v53 }
 0x4bf   : > { %v5209_v16 = vadd.f32 %v7845_v35, %v5189_v37 }
 0x4c1   : > { %v5225_v41 = vmax.f32 %v5209_v16, 0.0 }
 0x4c2   : > { %v4962_v4 = vpop.f32.mrf.mxu1 }
 0x4c3   : > { %v5241_v9 = vpack.c.bf16 %v5225_v41, %v5225_v41  ;;  %v4984_v42 = vadd.f32 %v4962_v4, %v4650_v15  ;;  %v5170_v39 = vpop.f32.mrf.mxu2 }
 0x4c5   : > { %5257 = vst.msk [vmem:[%s6188_s25 + $0x2c] sm:$0xf] %vm3023_vm8, %v5241_v9  ;;  %v5190_v44 = vadd.f32 %v5168_v32, %v4984_v42 }
 0x4c7   : > { %v5210_v59 = vadd.f32 %v7845_v35, %v5190_v44 }
 0x4c9   : > { %v5226_v33 = vmax.f32 %v5210_v59, 0.0 }
 0x4ca   : > { %v4964_v46 = vpop.f32.mrf.mxu1 }
 0x4cb   : > { %v5242_v34 = vpack.c.bf16 %v5226_v33, %v5226_v33  ;;  %v4985_v54 = vadd.f32 %v4964_v46, %v4651_v63  ;;  %v5173_v51 = vpop.f32.mrf.mxu2 }
 0x4cd   : > { %5258 = vst.msk [vmem:[%s6188_s25 + $0x30] sm:$0xf] %vm3023_vm8, %v5242_v34  ;;  %v5191_v8 = vadd.f32 %v5170_v39, %v4985_v54 }
 0x4cf   : > { %v5211_v31 = vadd.f32 %v7845_v35, %v5191_v8 }
 0x4d1   : > { %v5227_v7 = vmax.f32 %v5211_v31, 0.0 }
 0x4d2   : > { %v4967_v13 = vpop.f32.mrf.mxu1 }
 0x4d3   : > { %v5243_v18 = vpack.c.bf16 %v5227_v7, %v5227_v7  ;;  %v4986_v11 = vadd.f32 %v4967_v13, %v4652_v6  ;;  %v5175_v14 = vpop.f32.mrf.mxu2 }
 0x4d5   : > { %5259 = vst.msk [vmem:[%s6188_s25 + $0x34] sm:$0xf] %vm3023_vm8, %v5243_v18  ;;  %v5192_v45 = vadd.f32 %v5173_v51, %v4986_v11 }
 0x4d7   : > { %v5212_v62 = vadd.f32 %v7845_v35, %v5192_v45 }
 0x4d9   : > { %v5228_v12 = vmax.f32 %v5212_v62, 0.0 }
 0x4da   : > { %v4969_v47 = vpop.f32.mrf.mxu1 }
 0x4db   : > { %v5244_v50 = vpack.c.bf16 %v5228_v12, %v5228_v12  ;;  %v4987_v26 = vadd.f32 %v4969_v47, %v4653_v58 }
 0x4dd   : > { %5260 = vst.msk [vmem:[%s6188_s25 + $0x38] sm:$0xf] %vm3023_vm8, %v5244_v50  ;;  %v5193_v28 = vadd.f32 %v5175_v14, %v4987_v26 }
 0x4df   : > { %v5213_v29 = vadd.f32 %v7845_v35, %v5193_v28 }
 0x4e1   : > { %v5229_v52 = vmax.f32 %v5213_v29, 0.0 }
 0x4e3   : > { %v5245_v27 = vpack.c.bf16 %v5229_v52, %v5229_v52 }
 0x4e5   : > { %5261 = vst.msk [vmem:[%s6188_s25 + $0x3c] sm:$0xf] %vm3023_vm8, %v5245_v27 }
 0x4e6 PF: > { %s15_s22 = sadd.s32 1, %s6100_s22   ;;  %s7958_s18 = smov %s6092_s20 }
 0x4e7   : > { %p12_p9 = scmp.ge.s32.totalorder %s15_s22, 6   ;;  %s7959_s19 = smov %s6096_s21 }
 0x4e8   : > { %s7960_s20 = smov %s7963_s23  ;;  %s7961_s21 = smov %s7967_s24 }
 0x4e9   :  { %14 = sbr.rel (!%p12_p9) target bundleno = 3 (0x3), region = 100 }

</bundles_post_ra>
